<compile_context>
chip_gen: v6e
topology: v6e:2x2x1
jax: 0.10.0
libtpu: 0.0.40
codegen_flags: <defaults>
</compile_context>

<pallas_src>
import functools

import jax
import jax.numpy as jnp
from jax.experimental import pallas as pl
from jax.experimental.pallas import tpu as pltpu


# --------------------------------------------------------------------------------------
# Model dimensions (toy sizes)
# --------------------------------------------------------------------------------------
INPUT_DIM = 16     # src vocab
OUTPUT_DIM = 16    # trg vocab (decoder.output_dim)
EMB_DIM = 32
HID_DIM = 32
N_LAYERS = 2
SRC_LEN = 8
TRG_LEN = 8
BATCH = 8

_VMEM = pl.BlockSpec(memory_space=pltpu.MemorySpace.VMEM)
_SMEM = pl.BlockSpec(memory_space=pltpu.MemorySpace.SMEM)


# --------------------------------------------------------------------------------------
# Shared in-kernel helper
# --------------------------------------------------------------------------------------
def _lstm_gates(gates, c, hid_dim):
    """gates: [B, 4H] f32 in torch (i, f, g, o) order; c: [B, H] f32 -> (h_new, c_new).

    Two full-width EUP passes (sigmoid + tanh over the whole gates vreg) instead of four
    quarter-width transcendental launches; slice only for the combine.
    """
    sg = jax.nn.sigmoid(gates)
    th = jnp.tanh(gates)
    i = sg[:, 0 * hid_dim:1 * hid_dim]
    f = sg[:, 1 * hid_dim:2 * hid_dim]
    g = th[:, 2 * hid_dim:3 * hid_dim]
    o = sg[:, 3 * hid_dim:4 * hid_dim]
    c_new = f * c + i * g
    return o * jnp.tanh(c_new), c_new


# --------------------------------------------------------------------------------------
# Fused encoder + decoder kernel
# --------------------------------------------------------------------------------------
def _make_seq2seq_kernel(src_len, trg_len, batch, hid_dim, out_dim, n_layers):
    def kernel(tf_ref, trg_ref, emb_ref, *refs):
        # refs layout (all weights packed in the wrapper):
        #   encoder: w_ih0[E,4H], w_hh0[H,4H], b0[1,4H], then (w_cat_l[2H,4H], b_l) l>=1
        #   decoder: w0_cat[V+H,4H] (emb @ W_ih0 + b0 stacked over W_hh0),
        #            then (w_cat_l[2H,4H], b_l) l>=1, w_out[H,V], b_out[1,V]
        #   out_ref: [B, trg_len*out_dim]
        idx = 0
        e_wih0 = refs[idx]; idx += 1
        e_whh0 = refs[idx]; idx += 1
        e_b0 = refs[idx]; idx += 1
        e_wcat, e_b = [], []
        for _ in range(n_layers - 1):
            e_wcat.append(refs[idx]); idx += 1
            e_b.append(refs[idx]); idx += 1
        d_w0cat = refs[idx]; idx += 1
        d_wcat, d_b = [], []
        for _ in range(n_layers - 1):
            d_wcat.append(refs[idx]); idx += 1
            d_b.append(refs[idx]); idx += 1
        w_out = refs[idx]; idx += 1
        b_out = refs[idx]; idx += 1
        out_ref = refs[idx]

        f32 = jnp.float32
        bf16 = jnp.bfloat16

        # ------------------------------ Encoder ------------------------------
        # Batched layer-0 input projection for the whole source sequence (one MXU pass)
        # with the layer-0 bias folded in once (not on the per-step chain).
        pre0 = (jnp.dot(emb_ref[...], e_wih0[...], preferred_element_type=f32)
                + jnp.broadcast_to(e_b0[...], (src_len * batch, 4 * hid_dim)))

        # Hoisted bias broadcasts for layers >= 1 (JAX does not CSE broadcast_in_dim).
        e_bb = [jnp.broadcast_to(b[...], (batch, 4 * hid_dim)) for b in e_b]

        hs = [jnp.zeros((batch, hid_dim), f32) for _ in range(n_layers)]
        cs = [jnp.zeros((batch, hid_dim), f32) for _ in range(n_layers)]

        # Fully unrolled recurrence. Layers >= 1 use ONE merged [h_{l-1} | h_l] matmul
        # per step; the resulting dependency DAG is a wavefront (layer-l step t only
        # depends on layer-(l-1) step t and layer-l step t-1), so the scheduler can
        # overlap layer 1 step t with layer 0 step t+1.
        for t in range(src_len):
            gates = (pre0[t * batch:(t + 1) * batch, :]
                     + jnp.dot(hs[0].astype(bf16), e_whh0[...],
                               preferred_element_type=f32))
            hs[0], cs[0] = _lstm_gates(gates, cs[0], hid_dim)
            for l in range(1, n_layers):
                xin = jnp.concatenate([hs[l - 1], hs[l]], axis=-1).astype(bf16)
                gates = (jnp.dot(xin, e_wcat[l - 1][...], preferred_element_type=f32)
                         + e_bb[l - 1])
                hs[l], cs[l] = _lstm_gates(gates, cs[l], hid_dim)

        # ------------------------------ Decoder ------------------------------
        # (hs, cs) carry straight into the decoder in vregs — no HBM round-trip.
        d_bb = [jnp.broadcast_to(b[...], (batch, 4 * hid_dim)) for b in d_b]
        b_out_b = jnp.broadcast_to(b_out[...], (batch, out_dim))

        lane_iota = jax.lax.broadcasted_iota(jnp.int32, (batch, out_dim), 1)
        lane_iota_f = lane_iota.astype(f32)

        logit_rows = [jnp.zeros((batch, out_dim), f32)]   # outputs[0] stays zero
        inp = trg_ref[:, 0:1]                             # [B, 1] int32

        for i in range(1, trg_len):                       # unrolled decode loop
            onehot = (inp == lane_iota).astype(f32)       # [B, V]
            # Layer 0: single merged matmul; embedding, W_ih0 and b0 are all folded
            # into the precomputed [V+H, 4H] table (one-hot rows sum to 1).
            x0 = jnp.concatenate([onehot, hs[0]], axis=-1).astype(bf16)
            gates = jnp.dot(x0, d_w0cat[...], preferred_element_type=f32)
            hs[0], cs[0] = _lstm_gates(gates, cs[0], hid_dim)
            for l in range(1, n_layers):
                xin = jnp.concatenate([hs[l - 1], hs[l]], axis=-1).astype(bf16)
                gates = (jnp.dot(xin, d_wcat[l - 1][...], preferred_element_type=f32)
                         + d_bb[l - 1])
                hs[l], cs[l] = _lstm_gates(gates, cs[l], hid_dim)

            logits = (jnp.dot(hs[-1].astype(bf16), w_out[...],
                              preferred_element_type=f32)
                      + b_out_b)                          # [B, V]
            logit_rows.append(logits)

            # first-max argmax (matches torch/jnp tie-breaking)
            mx = jnp.max(logits, axis=1, keepdims=True)
            idx_f = jnp.min(jnp.where(logits == mx, lane_iota_f,
                                      jnp.float32(out_dim)),
                            axis=1, keepdims=True)
            top1 = idx_f.astype(jnp.int32)                # [B, 1]

            # teacher forcing: single select driven by the SMEM mask (device-side RNG)
            inp = jnp.where(tf_ref[i] != 0, trg_ref[:, i:i + 1], top1)

        # Lane-dense output: one unmasked [B, trg_len*out_dim] (= [8, 128]) store.
        out_ref[...] = jnp.concatenate(logit_rows, axis=-1)
    return kernel


# --------------------------------------------------------------------------------------
# Parameters (torch.nn.LSTM-style init; the two nn.LSTM biases are folded into one) and
# one-time packing into the kernel-ready layout (merged/bf16 weights, folded dec table).
# --------------------------------------------------------------------------------------
def _make_lstm_params(key, in_dim, hid_dim, n_layers):
    layers = []
    for layer in range(n_layers):
        d_in = in_dim if layer == 0 else hid_dim
        key, k1, k2, k3, k4 = jax.random.split(key, 5)
        scale = 1.0 / jnp.sqrt(hid_dim)
        w_ih = jax.random.uniform(k1, (d_in, 4 * hid_dim), jnp.float32, -scale, scale)
        w_hh = jax.random.uniform(k2, (hid_dim, 4 * hid_dim), jnp.float32, -scale, scale)
        b_ih = jax.random.uniform(k3, (1, 4 * hid_dim), jnp.float32, -scale, scale)
        b_hh = jax.random.uniform(k4, (1, 4 * hid_dim), jnp.float32, -scale, scale)
        layers.append((w_ih, w_hh, b_ih + b_hh))   # fold b_ih + b_hh (torch adds both)
    return key, layers


def init_params(seed=0):
    key = jax.random.PRNGKey(seed)
    key, k_ee, k_de, k_wo = jax.random.split(key, 4)
    enc_emb = jax.random.normal(k_ee, (INPUT_DIM, EMB_DIM), jnp.float32) * 0.1
    dec_emb = jax.random.normal(k_de, (OUTPUT_DIM, EMB_DIM), jnp.float32) * 0.1
    key, enc_lstm = _make_lstm_params(key, EMB_DIM, HID_DIM, N_LAYERS)
    key, dec_lstm = _make_lstm_params(key, EMB_DIM, HID_DIM, N_LAYERS)
    w_out = jax.random.normal(k_wo, (HID_DIM, OUTPUT_DIM), jnp.float32) * 0.1
    b_out = jnp.zeros((1, OUTPUT_DIM), jnp.float32)

    bf16 = jnp.bfloat16
    weights = []
    # Encoder.
    e_wih0, e_whh0, e_b0 = enc_lstm[0]
    weights += [e_wih0.astype(bf16), e_whh0.astype(bf16), e_b0]
    for l in range(1, N_LAYERS):
        w_ih, w_hh, b = enc_lstm[l]
        weights += [jnp.concatenate([w_ih, w_hh], axis=0).astype(bf16), b]
    # Decoder layer 0: fold embedding lookup + W_ih0 + b0 into one [V+H, 4H] table.
    d_wih0, d_whh0, d_b0 = dec_lstm[0]
    table0 = jnp.dot(dec_emb, d_wih0) + d_b0                     # [V, 4H]
    weights.append(jnp.concatenate([table0, d_whh0], axis=0).astype(bf16))
    for l in range(1, N_LAYERS):
        w_ih, w_hh, b = dec_lstm[l]
        weights += [jnp.concatenate([w_ih, w_hh], axis=0).astype(bf16), b]
    weights += [w_out.astype(bf16), b_out]

    return {"enc_emb": enc_emb.astype(bf16), "weights": tuple(weights)}


# --------------------------------------------------------------------------------------
# Jitted forward (mirrors Seq2Seq.forward)
# --------------------------------------------------------------------------------------
@jax.jit
def seq2seq_forward(src, trg, params, key, teacher_forcing_ratio=0.5):
    """Returns outputs [trg_len, batch, trg_vocab_size]; outputs[0] == 0.

    Teacher-forcing decisions are drawn on-device (one bernoulli per step), replacing
    the host-side random.random() of the PyTorch reference so the whole forward jits.
    """
    emb = jnp.take(params["enc_emb"], src, axis=0)               # [S, B, E] bf16
    emb2d = emb.reshape(SRC_LEN * BATCH, EMB_DIM)
    tf_mask = jax.random.bernoulli(
        key, teacher_forcing_ratio, (TRG_LEN,)).astype(jnp.int32)

    kernel = _make_seq2seq_kernel(SRC_LEN, TRG_LEN, BATCH, HID_DIM,
                                  OUTPUT_DIM, N_LAYERS)
    n_w = len(params["weights"])
    out2d = pl.pallas_call(
        kernel,
        out_shape=jax.ShapeDtypeStruct((BATCH, TRG_LEN * OUTPUT_DIM), jnp.float32),
        in_specs=[_SMEM] + [_VMEM] * (2 + n_w),
        out_specs=_VMEM,
    )(tf_mask, trg.T, emb2d, *params["weights"])

    # Lane-dense kernel layout [b, t*V + v] -> reference layout [t, b, v].
    return out2d.reshape(BATCH, TRG_LEN, OUTPUT_DIM).transpose(1, 0, 2)


# --------------------------------------------------------------------------------------
if __name__ == "__main__":
    params = init_params(seed=0)

    key = jax.random.PRNGKey(0)
    k_src, k_trg, k_tf = jax.random.split(key, 3)
    src = jax.random.randint(k_src, (SRC_LEN, BATCH), 0, INPUT_DIM, dtype=jnp.int32)
    trg = jax.random.randint(k_trg, (TRG_LEN, BATCH), 0, OUTPUT_DIM, dtype=jnp.int32)

    outputs = seq2seq_forward(src, trg, params, k_tf, 0.5)
    outputs = jax.block_until_ready(outputs)

    assert outputs.shape == (TRG_LEN, BATCH, OUTPUT_DIM), outputs.shape
    assert bool(jnp.all(outputs[0] == 0.0))
    assert bool(jnp.all(jnp.isfinite(outputs)))
    print("KERNEL_OK")
</pallas_src>

<mosaic_0001>
module attributes {stable_mosaic.version = 11 : i64} {
  func.func @kernel(%arg0: memref<8xi32, #tpu.memory_space<smem>>, %arg1: memref<8x8xi32, #tpu.memory_space<vmem>>, %arg2: memref<64x32xbf16, #tpu.memory_space<vmem>>, %arg3: memref<32x128xbf16, #tpu.memory_space<vmem>>, %arg4: memref<32x128xbf16, #tpu.memory_space<vmem>>, %arg5: memref<1x128xf32, #tpu.memory_space<vmem>>, %arg6: memref<64x128xbf16, #tpu.memory_space<vmem>>, %arg7: memref<1x128xf32, #tpu.memory_space<vmem>>, %arg8: memref<48x128xbf16, #tpu.memory_space<vmem>>, %arg9: memref<64x128xbf16, #tpu.memory_space<vmem>>, %arg10: memref<1x128xf32, #tpu.memory_space<vmem>>, %arg11: memref<32x16xbf16, #tpu.memory_space<vmem>>, %arg12: memref<1x16xf32, #tpu.memory_space<vmem>>, %arg13: memref<8x128xf32, #tpu.memory_space<vmem>>) attributes {dimension_semantics = [], scalar_prefetch = 0 : i64, scratch_operands = 0 : i64, tpu.core_type = #tpu.core_type<tc>} {
    %c0 = arith.constant 0 : index
    %c0_0 = arith.constant 0 : index
    %0 = vector.load %arg2[%c0, %c0_0] : memref<64x32xbf16, #tpu.memory_space<vmem>>, vector<64x32xbf16>
    %c0_1 = arith.constant 0 : index
    %c0_2 = arith.constant 0 : index
    %1 = vector.load %arg3[%c0_1, %c0_2] : memref<32x128xbf16, #tpu.memory_space<vmem>>, vector<32x128xbf16>
    %cst = arith.constant dense<0.000000e+00> : vector<64x128xf32>
    %2 = tpu.matmul %0, %1, %cst {dimension_numbers = #tpu.dot_dimension_numbers<[1], [0], [0], [1], [0, 0, 1, 1], [], []>} : vector<64x32xbf16>, vector<32x128xbf16>, vector<64x128xf32> -> vector<64x128xf32>
    %c0_3 = arith.constant 0 : index
    %c0_4 = arith.constant 0 : index
    %3 = vector.load %arg5[%c0_3, %c0_4] : memref<1x128xf32, #tpu.memory_space<vmem>>, vector<1x128xf32>
    %4 = vector.shape_cast %3 : vector<1x128xf32> to vector<1x128xf32>
    %5 = vector.broadcast %4 : vector<1x128xf32> to vector<64x128xf32>
    %6 = arith.addf %2, %5 : vector<64x128xf32>
    %c0_5 = arith.constant 0 : index
    %c0_6 = arith.constant 0 : index
    %7 = vector.load %arg7[%c0_5, %c0_6] : memref<1x128xf32, #tpu.memory_space<vmem>>, vector<1x128xf32>
    %8 = vector.shape_cast %7 : vector<1x128xf32> to vector<1x128xf32>
    %9 = vector.broadcast %8 : vector<1x128xf32> to vector<8x128xf32>
    %cst_7 = arith.constant 0.000000e+00 : f32
    %10 = vector.broadcast %cst_7 : f32 to vector<8x32xf32>
    %cst_8 = arith.constant 0.000000e+00 : f32
    %11 = vector.broadcast %cst_8 : f32 to vector<8x32xf32>
    %cst_9 = arith.constant 0.000000e+00 : f32
    %12 = vector.broadcast %cst_9 : f32 to vector<8x32xf32>
    %cst_10 = arith.constant 0.000000e+00 : f32
    %13 = vector.broadcast %cst_10 : f32 to vector<8x32xf32>
    %14 = vector.extract_strided_slice %6 {offsets = [0, 0], sizes = [8, 128], strides = [1, 1]} : vector<64x128xf32> to vector<8x128xf32>
    %15 = arith.truncf %10 : vector<8x32xf32> to vector<8x32xbf16>
    %c0_11 = arith.constant 0 : index
    %c0_12 = arith.constant 0 : index
    %16 = vector.load %arg4[%c0_11, %c0_12] : memref<32x128xbf16, #tpu.memory_space<vmem>>, vector<32x128xbf16>
    %cst_13 = arith.constant dense<0.000000e+00> : vector<8x128xf32>
    %17 = tpu.matmul %15, %16, %cst_13 {dimension_numbers = #tpu.dot_dimension_numbers<[1], [0], [0], [1], [0, 0, 1, 1], [], []>} : vector<8x32xbf16>, vector<32x128xbf16>, vector<8x128xf32> -> vector<8x128xf32>
    %18 = arith.addf %14, %17 : vector<8x128xf32>
    %19 = arith.negf %18 : vector<8x128xf32>
    %20 = math.exp %19 : vector<8x128xf32>
    %cst_14 = arith.constant 1.000000e+00 : f32
    %21 = vector.broadcast %cst_14 : f32 to vector<8x128xf32>
    %22 = arith.addf %21, %20 : vector<8x128xf32>
    %23 = arith.divf %21, %22 : vector<8x128xf32>
    %24 = math.tanh %18 : vector<8x128xf32>
    %25 = vector.extract_strided_slice %23 {offsets = [0, 0], sizes = [8, 32], strides = [1, 1]} : vector<8x128xf32> to vector<8x32xf32>
    %26 = vector.extract_strided_slice %23 {offsets = [0, 32], sizes = [8, 32], strides = [1, 1]} : vector<8x128xf32> to vector<8x32xf32>
    %27 = vector.extract_strided_slice %24 {offsets = [0, 64], sizes = [8, 32], strides = [1, 1]} : vector<8x128xf32> to vector<8x32xf32>
    %28 = vector.extract_strided_slice %23 {offsets = [0, 96], sizes = [8, 32], strides = [1, 1]} : vector<8x128xf32> to vector<8x32xf32>
    %29 = arith.mulf %26, %12 : vector<8x32xf32>
    %30 = arith.mulf %25, %27 : vector<8x32xf32>
    %31 = arith.addf %29, %30 : vector<8x32xf32>
    %32 = math.tanh %31 : vector<8x32xf32>
    %33 = arith.mulf %28, %32 : vector<8x32xf32>
    %34 = tpu.concatenate %33, %11 in 1 : vector<8x32xf32>, vector<8x32xf32> -> vector<8x64xf32>
    %35 = arith.truncf %34 : vector<8x64xf32> to vector<8x64xbf16>
    %c0_15 = arith.constant 0 : index
    %c0_16 = arith.constant 0 : index
    %36 = vector.load %arg6[%c0_15, %c0_16] : memref<64x128xbf16, #tpu.memory_space<vmem>>, vector<64x128xbf16>
    %cst_17 = arith.constant dense<0.000000e+00> : vector<8x128xf32>
    %37 = tpu.matmul %35, %36, %cst_17 {dimension_numbers = #tpu.dot_dimension_numbers<[1], [0], [0], [1], [0, 0, 1, 1], [], []>} : vector<8x64xbf16>, vector<64x128xbf16>, vector<8x128xf32> -> vector<8x128xf32>
    %38 = arith.addf %37, %9 : vector<8x128xf32>
    %39 = arith.negf %38 : vector<8x128xf32>
    %40 = math.exp %39 : vector<8x128xf32>
    %cst_18 = arith.constant 1.000000e+00 : f32
    %41 = vector.broadcast %cst_18 : f32 to vector<8x128xf32>
    %42 = arith.addf %41, %40 : vector<8x128xf32>
    %43 = arith.divf %41, %42 : vector<8x128xf32>
    %44 = math.tanh %38 : vector<8x128xf32>
    %45 = vector.extract_strided_slice %43 {offsets = [0, 0], sizes = [8, 32], strides = [1, 1]} : vector<8x128xf32> to vector<8x32xf32>
    %46 = vector.extract_strided_slice %43 {offsets = [0, 32], sizes = [8, 32], strides = [1, 1]} : vector<8x128xf32> to vector<8x32xf32>
    %47 = vector.extract_strided_slice %44 {offsets = [0, 64], sizes = [8, 32], strides = [1, 1]} : vector<8x128xf32> to vector<8x32xf32>
    %48 = vector.extract_strided_slice %43 {offsets = [0, 96], sizes = [8, 32], strides = [1, 1]} : vector<8x128xf32> to vector<8x32xf32>
    %49 = arith.mulf %46, %13 : vector<8x32xf32>
    %50 = arith.mulf %45, %47 : vector<8x32xf32>
    %51 = arith.addf %49, %50 : vector<8x32xf32>
    %52 = math.tanh %51 : vector<8x32xf32>
    %53 = arith.mulf %48, %52 : vector<8x32xf32>
    %54 = vector.extract_strided_slice %6 {offsets = [8, 0], sizes = [8, 128], strides = [1, 1]} : vector<64x128xf32> to vector<8x128xf32>
    %55 = arith.truncf %33 : vector<8x32xf32> to vector<8x32xbf16>
    %c0_19 = arith.constant 0 : index
    %c0_20 = arith.constant 0 : index
    %56 = vector.load %arg4[%c0_19, %c0_20] : memref<32x128xbf16, #tpu.memory_space<vmem>>, vector<32x128xbf16>
    %cst_21 = arith.constant dense<0.000000e+00> : vector<8x128xf32>
    %57 = tpu.matmul %55, %56, %cst_21 {dimension_numbers = #tpu.dot_dimension_numbers<[1], [0], [0], [1], [0, 0, 1, 1], [], []>} : vector<8x32xbf16>, vector<32x128xbf16>, vector<8x128xf32> -> vector<8x128xf32>
    %58 = arith.addf %54, %57 : vector<8x128xf32>
    %59 = arith.negf %58 : vector<8x128xf32>
    %60 = math.exp %59 : vector<8x128xf32>
    %cst_22 = arith.constant 1.000000e+00 : f32
    %61 = vector.broadcast %cst_22 : f32 to vector<8x128xf32>
    %62 = arith.addf %61, %60 : vector<8x128xf32>
    %63 = arith.divf %61, %62 : vector<8x128xf32>
    %64 = math.tanh %58 : vector<8x128xf32>
    %65 = vector.extract_strided_slice %63 {offsets = [0, 0], sizes = [8, 32], strides = [1, 1]} : vector<8x128xf32> to vector<8x32xf32>
    %66 = vector.extract_strided_slice %63 {offsets = [0, 32], sizes = [8, 32], strides = [1, 1]} : vector<8x128xf32> to vector<8x32xf32>
    %67 = vector.extract_strided_slice %64 {offsets = [0, 64], sizes = [8, 32], strides = [1, 1]} : vector<8x128xf32> to vector<8x32xf32>
    %68 = vector.extract_strided_slice %63 {offsets = [0, 96], sizes = [8, 32], strides = [1, 1]} : vector<8x128xf32> to vector<8x32xf32>
    %69 = arith.mulf %66, %31 : vector<8x32xf32>
    %70 = arith.mulf %65, %67 : vector<8x32xf32>
    %71 = arith.addf %69, %70 : vector<8x32xf32>
    %72 = math.tanh %71 : vector<8x32xf32>
    %73 = arith.mulf %68, %72 : vector<8x32xf32>
    %74 = tpu.concatenate %73, %53 in 1 : vector<8x32xf32>, vector<8x32xf32> -> vector<8x64xf32>
    %75 = arith.truncf %74 : vector<8x64xf32> to vector<8x64xbf16>
    %c0_23 = arith.constant 0 : index
    %c0_24 = arith.constant 0 : index
    %76 = vector.load %arg6[%c0_23, %c0_24] : memref<64x128xbf16, #tpu.memory_space<vmem>>, vector<64x128xbf16>
    %cst_25 = arith.constant dense<0.000000e+00> : vector<8x128xf32>
    %77 = tpu.matmul %75, %76, %cst_25 {dimension_numbers = #tpu.dot_dimension_numbers<[1], [0], [0], [1], [0, 0, 1, 1], [], []>} : vector<8x64xbf16>, vector<64x128xbf16>, vector<8x128xf32> -> vector<8x128xf32>
    %78 = arith.addf %77, %9 : vector<8x128xf32>
    %79 = arith.negf %78 : vector<8x128xf32>
    %80 = math.exp %79 : vector<8x128xf32>
    %cst_26 = arith.constant 1.000000e+00 : f32
    %81 = vector.broadcast %cst_26 : f32 to vector<8x128xf32>
    %82 = arith.addf %81, %80 : vector<8x128xf32>
    %83 = arith.divf %81, %82 : vector<8x128xf32>
    %84 = math.tanh %78 : vector<8x128xf32>
    %85 = vector.extract_strided_slice %83 {offsets = [0, 0], sizes = [8, 32], strides = [1, 1]} : vector<8x128xf32> to vector<8x32xf32>
    %86 = vector.extract_strided_slice %83 {offsets = [0, 32], sizes = [8, 32], strides = [1, 1]} : vector<8x128xf32> to vector<8x32xf32>
    %87 = vector.extract_strided_slice %84 {offsets = [0, 64], sizes = [8, 32], strides = [1, 1]} : vector<8x128xf32> to vector<8x32xf32>
    %88 = vector.extract_strided_slice %83 {offsets = [0, 96], sizes = [8, 32], strides = [1, 1]} : vector<8x128xf32> to vector<8x32xf32>
    %89 = arith.mulf %86, %51 : vector<8x32xf32>
    %90 = arith.mulf %85, %87 : vector<8x32xf32>
    %91 = arith.addf %89, %90 : vector<8x32xf32>
    %92 = math.tanh %91 : vector<8x32xf32>
    %93 = arith.mulf %88, %92 : vector<8x32xf32>
    %94 = vector.extract_strided_slice %6 {offsets = [16, 0], sizes = [8, 128], strides = [1, 1]} : vector<64x128xf32> to vector<8x128xf32>
    %95 = arith.truncf %73 : vector<8x32xf32> to vector<8x32xbf16>
    %c0_27 = arith.constant 0 : index
    %c0_28 = arith.constant 0 : index
    %96 = vector.load %arg4[%c0_27, %c0_28] : memref<32x128xbf16, #tpu.memory_space<vmem>>, vector<32x128xbf16>
    %cst_29 = arith.constant dense<0.000000e+00> : vector<8x128xf32>
    %97 = tpu.matmul %95, %96, %cst_29 {dimension_numbers = #tpu.dot_dimension_numbers<[1], [0], [0], [1], [0, 0, 1, 1], [], []>} : vector<8x32xbf16>, vector<32x128xbf16>, vector<8x128xf32> -> vector<8x128xf32>
    %98 = arith.addf %94, %97 : vector<8x128xf32>
    %99 = arith.negf %98 : vector<8x128xf32>
    %100 = math.exp %99 : vector<8x128xf32>
    %cst_30 = arith.constant 1.000000e+00 : f32
    %101 = vector.broadcast %cst_30 : f32 to vector<8x128xf32>
    %102 = arith.addf %101, %100 : vector<8x128xf32>
    %103 = arith.divf %101, %102 : vector<8x128xf32>
    %104 = math.tanh %98 : vector<8x128xf32>
    %105 = vector.extract_strided_slice %103 {offsets = [0, 0], sizes = [8, 32], strides = [1, 1]} : vector<8x128xf32> to vector<8x32xf32>
    %106 = vector.extract_strided_slice %103 {offsets = [0, 32], sizes = [8, 32], strides = [1, 1]} : vector<8x128xf32> to vector<8x32xf32>
    %107 = vector.extract_strided_slice %104 {offsets = [0, 64], sizes = [8, 32], strides = [1, 1]} : vector<8x128xf32> to vector<8x32xf32>
    %108 = vector.extract_strided_slice %103 {offsets = [0, 96], sizes = [8, 32], strides = [1, 1]} : vector<8x128xf32> to vector<8x32xf32>
    %109 = arith.mulf %106, %71 : vector<8x32xf32>
    %110 = arith.mulf %105, %107 : vector<8x32xf32>
    %111 = arith.addf %109, %110 : vector<8x32xf32>
    %112 = math.tanh %111 : vector<8x32xf32>
    %113 = arith.mulf %108, %112 : vector<8x32xf32>
    %114 = tpu.concatenate %113, %93 in 1 : vector<8x32xf32>, vector<8x32xf32> -> vector<8x64xf32>
    %115 = arith.truncf %114 : vector<8x64xf32> to vector<8x64xbf16>
    %c0_31 = arith.constant 0 : index
    %c0_32 = arith.constant 0 : index
    %116 = vector.load %arg6[%c0_31, %c0_32] : memref<64x128xbf16, #tpu.memory_space<vmem>>, vector<64x128xbf16>
    %cst_33 = arith.constant dense<0.000000e+00> : vector<8x128xf32>
    %117 = tpu.matmul %115, %116, %cst_33 {dimension_numbers = #tpu.dot_dimension_numbers<[1], [0], [0], [1], [0, 0, 1, 1], [], []>} : vector<8x64xbf16>, vector<64x128xbf16>, vector<8x128xf32> -> vector<8x128xf32>
    %118 = arith.addf %117, %9 : vector<8x128xf32>
    %119 = arith.negf %118 : vector<8x128xf32>
    %120 = math.exp %119 : vector<8x128xf32>
    %cst_34 = arith.constant 1.000000e+00 : f32
    %121 = vector.broadcast %cst_34 : f32 to vector<8x128xf32>
    %122 = arith.addf %121, %120 : vector<8x128xf32>
    %123 = arith.divf %121, %122 : vector<8x128xf32>
    %124 = math.tanh %118 : vector<8x128xf32>
    %125 = vector.extract_strided_slice %123 {offsets = [0, 0], sizes = [8, 32], strides = [1, 1]} : vector<8x128xf32> to vector<8x32xf32>
    %126 = vector.extract_strided_slice %123 {offsets = [0, 32], sizes = [8, 32], strides = [1, 1]} : vector<8x128xf32> to vector<8x32xf32>
    %127 = vector.extract_strided_slice %124 {offsets = [0, 64], sizes = [8, 32], strides = [1, 1]} : vector<8x128xf32> to vector<8x32xf32>
    %128 = vector.extract_strided_slice %123 {offsets = [0, 96], sizes = [8, 32], strides = [1, 1]} : vector<8x128xf32> to vector<8x32xf32>
    %129 = arith.mulf %126, %91 : vector<8x32xf32>
    %130 = arith.mulf %125, %127 : vector<8x32xf32>
    %131 = arith.addf %129, %130 : vector<8x32xf32>
    %132 = math.tanh %131 : vector<8x32xf32>
    %133 = arith.mulf %128, %132 : vector<8x32xf32>
    %134 = vector.extract_strided_slice %6 {offsets = [24, 0], sizes = [8, 128], strides = [1, 1]} : vector<64x128xf32> to vector<8x128xf32>
    %135 = arith.truncf %113 : vector<8x32xf32> to vector<8x32xbf16>
    %c0_35 = arith.constant 0 : index
    %c0_36 = arith.constant 0 : index
    %136 = vector.load %arg4[%c0_35, %c0_36] : memref<32x128xbf16, #tpu.memory_space<vmem>>, vector<32x128xbf16>
    %cst_37 = arith.constant dense<0.000000e+00> : vector<8x128xf32>
    %137 = tpu.matmul %135, %136, %cst_37 {dimension_numbers = #tpu.dot_dimension_numbers<[1], [0], [0], [1], [0, 0, 1, 1], [], []>} : vector<8x32xbf16>, vector<32x128xbf16>, vector<8x128xf32> -> vector<8x128xf32>
    %138 = arith.addf %134, %137 : vector<8x128xf32>
    %139 = arith.negf %138 : vector<8x128xf32>
    %140 = math.exp %139 : vector<8x128xf32>
    %cst_38 = arith.constant 1.000000e+00 : f32
    %141 = vector.broadcast %cst_38 : f32 to vector<8x128xf32>
    %142 = arith.addf %141, %140 : vector<8x128xf32>
    %143 = arith.divf %141, %142 : vector<8x128xf32>
    %144 = math.tanh %138 : vector<8x128xf32>
    %145 = vector.extract_strided_slice %143 {offsets = [0, 0], sizes = [8, 32], strides = [1, 1]} : vector<8x128xf32> to vector<8x32xf32>
    %146 = vector.extract_strided_slice %143 {offsets = [0, 32], sizes = [8, 32], strides = [1, 1]} : vector<8x128xf32> to vector<8x32xf32>
    %147 = vector.extract_strided_slice %144 {offsets = [0, 64], sizes = [8, 32], strides = [1, 1]} : vector<8x128xf32> to vector<8x32xf32>
    %148 = vector.extract_strided_slice %143 {offsets = [0, 96], sizes = [8, 32], strides = [1, 1]} : vector<8x128xf32> to vector<8x32xf32>
    %149 = arith.mulf %146, %111 : vector<8x32xf32>
    %150 = arith.mulf %145, %147 : vector<8x32xf32>
    %151 = arith.addf %149, %150 : vector<8x32xf32>
    %152 = math.tanh %151 : vector<8x32xf32>
    %153 = arith.mulf %148, %152 : vector<8x32xf32>
    %154 = tpu.concatenate %153, %133 in 1 : vector<8x32xf32>, vector<8x32xf32> -> vector<8x64xf32>
    %155 = arith.truncf %154 : vector<8x64xf32> to vector<8x64xbf16>
    %c0_39 = arith.constant 0 : index
    %c0_40 = arith.constant 0 : index
    %156 = vector.load %arg6[%c0_39, %c0_40] : memref<64x128xbf16, #tpu.memory_space<vmem>>, vector<64x128xbf16>
    %cst_41 = arith.constant dense<0.000000e+00> : vector<8x128xf32>
    %157 = tpu.matmul %155, %156, %cst_41 {dimension_numbers = #tpu.dot_dimension_numbers<[1], [0], [0], [1], [0, 0, 1, 1], [], []>} : vector<8x64xbf16>, vector<64x128xbf16>, vector<8x128xf32> -> vector<8x128xf32>
    %158 = arith.addf %157, %9 : vector<8x128xf32>
    %159 = arith.negf %158 : vector<8x128xf32>
    %160 = math.exp %159 : vector<8x128xf32>
    %cst_42 = arith.constant 1.000000e+00 : f32
    %161 = vector.broadcast %cst_42 : f32 to vector<8x128xf32>
    %162 = arith.addf %161, %160 : vector<8x128xf32>
    %163 = arith.divf %161, %162 : vector<8x128xf32>
    %164 = math.tanh %158 : vector<8x128xf32>
    %165 = vector.extract_strided_slice %163 {offsets = [0, 0], sizes = [8, 32], strides = [1, 1]} : vector<8x128xf32> to vector<8x32xf32>
    %166 = vector.extract_strided_slice %163 {offsets = [0, 32], sizes = [8, 32], strides = [1, 1]} : vector<8x128xf32> to vector<8x32xf32>
    %167 = vector.extract_strided_slice %164 {offsets = [0, 64], sizes = [8, 32], strides = [1, 1]} : vector<8x128xf32> to vector<8x32xf32>
    %168 = vector.extract_strided_slice %163 {offsets = [0, 96], sizes = [8, 32], strides = [1, 1]} : vector<8x128xf32> to vector<8x32xf32>
    %169 = arith.mulf %166, %131 : vector<8x32xf32>
    %170 = arith.mulf %165, %167 : vector<8x32xf32>
    %171 = arith.addf %169, %170 : vector<8x32xf32>
    %172 = math.tanh %171 : vector<8x32xf32>
    %173 = arith.mulf %168, %172 : vector<8x32xf32>
    %174 = vector.extract_strided_slice %6 {offsets = [32, 0], sizes = [8, 128], strides = [1, 1]} : vector<64x128xf32> to vector<8x128xf32>
    %175 = arith.truncf %153 : vector<8x32xf32> to vector<8x32xbf16>
    %c0_43 = arith.constant 0 : index
    %c0_44 = arith.constant 0 : index
    %176 = vector.load %arg4[%c0_43, %c0_44] : memref<32x128xbf16, #tpu.memory_space<vmem>>, vector<32x128xbf16>
    %cst_45 = arith.constant dense<0.000000e+00> : vector<8x128xf32>
    %177 = tpu.matmul %175, %176, %cst_45 {dimension_numbers = #tpu.dot_dimension_numbers<[1], [0], [0], [1], [0, 0, 1, 1], [], []>} : vector<8x32xbf16>, vector<32x128xbf16>, vector<8x128xf32> -> vector<8x128xf32>
    %178 = arith.addf %174, %177 : vector<8x128xf32>
    %179 = arith.negf %178 : vector<8x128xf32>
    %180 = math.exp %179 : vector<8x128xf32>
    %cst_46 = arith.constant 1.000000e+00 : f32
    %181 = vector.broadcast %cst_46 : f32 to vector<8x128xf32>
    %182 = arith.addf %181, %180 : vector<8x128xf32>
    %183 = arith.divf %181, %182 : vector<8x128xf32>
    %184 = math.tanh %178 : vector<8x128xf32>
    %185 = vector.extract_strided_slice %183 {offsets = [0, 0], sizes = [8, 32], strides = [1, 1]} : vector<8x128xf32> to vector<8x32xf32>
    %186 = vector.extract_strided_slice %183 {offsets = [0, 32], sizes = [8, 32], strides = [1, 1]} : vector<8x128xf32> to vector<8x32xf32>
    %187 = vector.extract_strided_slice %184 {offsets = [0, 64], sizes = [8, 32], strides = [1, 1]} : vector<8x128xf32> to vector<8x32xf32>
    %188 = vector.extract_strided_slice %183 {offsets = [0, 96], sizes = [8, 32], strides = [1, 1]} : vector<8x128xf32> to vector<8x32xf32>
    %189 = arith.mulf %186, %151 : vector<8x32xf32>
    %190 = arith.mulf %185, %187 : vector<8x32xf32>
    %191 = arith.addf %189, %190 : vector<8x32xf32>
    %192 = math.tanh %191 : vector<8x32xf32>
    %193 = arith.mulf %188, %192 : vector<8x32xf32>
    %194 = tpu.concatenate %193, %173 in 1 : vector<8x32xf32>, vector<8x32xf32> -> vector<8x64xf32>
    %195 = arith.truncf %194 : vector<8x64xf32> to vector<8x64xbf16>
    %c0_47 = arith.constant 0 : index
    %c0_48 = arith.constant 0 : index
    %196 = vector.load %arg6[%c0_47, %c0_48] : memref<64x128xbf16, #tpu.memory_space<vmem>>, vector<64x128xbf16>
    %cst_49 = arith.constant dense<0.000000e+00> : vector<8x128xf32>
    %197 = tpu.matmul %195, %196, %cst_49 {dimension_numbers = #tpu.dot_dimension_numbers<[1], [0], [0], [1], [0, 0, 1, 1], [], []>} : vector<8x64xbf16>, vector<64x128xbf16>, vector<8x128xf32> -> vector<8x128xf32>
    %198 = arith.addf %197, %9 : vector<8x128xf32>
    %199 = arith.negf %198 : vector<8x128xf32>
    %200 = math.exp %199 : vector<8x128xf32>
    %cst_50 = arith.constant 1.000000e+00 : f32
    %201 = vector.broadcast %cst_50 : f32 to vector<8x128xf32>
    %202 = arith.addf %201, %200 : vector<8x128xf32>
    %203 = arith.divf %201, %202 : vector<8x128xf32>
    %204 = math.tanh %198 : vector<8x128xf32>
    %205 = vector.extract_strided_slice %203 {offsets = [0, 0], sizes = [8, 32], strides = [1, 1]} : vector<8x128xf32> to vector<8x32xf32>
    %206 = vector.extract_strided_slice %203 {offsets = [0, 32], sizes = [8, 32], strides = [1, 1]} : vector<8x128xf32> to vector<8x32xf32>
    %207 = vector.extract_strided_slice %204 {offsets = [0, 64], sizes = [8, 32], strides = [1, 1]} : vector<8x128xf32> to vector<8x32xf32>
    %208 = vector.extract_strided_slice %203 {offsets = [0, 96], sizes = [8, 32], strides = [1, 1]} : vector<8x128xf32> to vector<8x32xf32>
    %209 = arith.mulf %206, %171 : vector<8x32xf32>
    %210 = arith.mulf %205, %207 : vector<8x32xf32>
    %211 = arith.addf %209, %210 : vector<8x32xf32>
    %212 = math.tanh %211 : vector<8x32xf32>
    %213 = arith.mulf %208, %212 : vector<8x32xf32>
    %214 = vector.extract_strided_slice %6 {offsets = [40, 0], sizes = [8, 128], strides = [1, 1]} : vector<64x128xf32> to vector<8x128xf32>
    %215 = arith.truncf %193 : vector<8x32xf32> to vector<8x32xbf16>
    %c0_51 = arith.constant 0 : index
    %c0_52 = arith.constant 0 : index
    %216 = vector.load %arg4[%c0_51, %c0_52] : memref<32x128xbf16, #tpu.memory_space<vmem>>, vector<32x128xbf16>
    %cst_53 = arith.constant dense<0.000000e+00> : vector<8x128xf32>
    %217 = tpu.matmul %215, %216, %cst_53 {dimension_numbers = #tpu.dot_dimension_numbers<[1], [0], [0], [1], [0, 0, 1, 1], [], []>} : vector<8x32xbf16>, vector<32x128xbf16>, vector<8x128xf32> -> vector<8x128xf32>
    %218 = arith.addf %214, %217 : vector<8x128xf32>
    %219 = arith.negf %218 : vector<8x128xf32>
    %220 = math.exp %219 : vector<8x128xf32>
    %cst_54 = arith.constant 1.000000e+00 : f32
    %221 = vector.broadcast %cst_54 : f32 to vector<8x128xf32>
    %222 = arith.addf %221, %220 : vector<8x128xf32>
    %223 = arith.divf %221, %222 : vector<8x128xf32>
    %224 = math.tanh %218 : vector<8x128xf32>
    %225 = vector.extract_strided_slice %223 {offsets = [0, 0], sizes = [8, 32], strides = [1, 1]} : vector<8x128xf32> to vector<8x32xf32>
    %226 = vector.extract_strided_slice %223 {offsets = [0, 32], sizes = [8, 32], strides = [1, 1]} : vector<8x128xf32> to vector<8x32xf32>
    %227 = vector.extract_strided_slice %224 {offsets = [0, 64], sizes = [8, 32], strides = [1, 1]} : vector<8x128xf32> to vector<8x32xf32>
    %228 = vector.extract_strided_slice %223 {offsets = [0, 96], sizes = [8, 32], strides = [1, 1]} : vector<8x128xf32> to vector<8x32xf32>
    %229 = arith.mulf %226, %191 : vector<8x32xf32>
    %230 = arith.mulf %225, %227 : vector<8x32xf32>
    %231 = arith.addf %229, %230 : vector<8x32xf32>
    %232 = math.tanh %231 : vector<8x32xf32>
    %233 = arith.mulf %228, %232 : vector<8x32xf32>
    %234 = tpu.concatenate %233, %213 in 1 : vector<8x32xf32>, vector<8x32xf32> -> vector<8x64xf32>
    %235 = arith.truncf %234 : vector<8x64xf32> to vector<8x64xbf16>
    %c0_55 = arith.constant 0 : index
    %c0_56 = arith.constant 0 : index
    %236 = vector.load %arg6[%c0_55, %c0_56] : memref<64x128xbf16, #tpu.memory_space<vmem>>, vector<64x128xbf16>
    %cst_57 = arith.constant dense<0.000000e+00> : vector<8x128xf32>
    %237 = tpu.matmul %235, %236, %cst_57 {dimension_numbers = #tpu.dot_dimension_numbers<[1], [0], [0], [1], [0, 0, 1, 1], [], []>} : vector<8x64xbf16>, vector<64x128xbf16>, vector<8x128xf32> -> vector<8x128xf32>
    %238 = arith.addf %237, %9 : vector<8x128xf32>
    %239 = arith.negf %238 : vector<8x128xf32>
    %240 = math.exp %239 : vector<8x128xf32>
    %cst_58 = arith.constant 1.000000e+00 : f32
    %241 = vector.broadcast %cst_58 : f32 to vector<8x128xf32>
    %242 = arith.addf %241, %240 : vector<8x128xf32>
    %243 = arith.divf %241, %242 : vector<8x128xf32>
    %244 = math.tanh %238 : vector<8x128xf32>
    %245 = vector.extract_strided_slice %243 {offsets = [0, 0], sizes = [8, 32], strides = [1, 1]} : vector<8x128xf32> to vector<8x32xf32>
    %246 = vector.extract_strided_slice %243 {offsets = [0, 32], sizes = [8, 32], strides = [1, 1]} : vector<8x128xf32> to vector<8x32xf32>
    %247 = vector.extract_strided_slice %244 {offsets = [0, 64], sizes = [8, 32], strides = [1, 1]} : vector<8x128xf32> to vector<8x32xf32>
    %248 = vector.extract_strided_slice %243 {offsets = [0, 96], sizes = [8, 32], strides = [1, 1]} : vector<8x128xf32> to vector<8x32xf32>
    %249 = arith.mulf %246, %211 : vector<8x32xf32>
    %250 = arith.mulf %245, %247 : vector<8x32xf32>
    %251 = arith.addf %249, %250 : vector<8x32xf32>
    %252 = math.tanh %251 : vector<8x32xf32>
    %253 = arith.mulf %248, %252 : vector<8x32xf32>
    %254 = vector.extract_strided_slice %6 {offsets = [48, 0], sizes = [8, 128], strides = [1, 1]} : vector<64x128xf32> to vector<8x128xf32>
    %255 = arith.truncf %233 : vector<8x32xf32> to vector<8x32xbf16>
    %c0_59 = arith.constant 0 : index
    %c0_60 = arith.constant 0 : index
    %256 = vector.load %arg4[%c0_59, %c0_60] : memref<32x128xbf16, #tpu.memory_space<vmem>>, vector<32x128xbf16>
    %cst_61 = arith.constant dense<0.000000e+00> : vector<8x128xf32>
    %257 = tpu.matmul %255, %256, %cst_61 {dimension_numbers = #tpu.dot_dimension_numbers<[1], [0], [0], [1], [0, 0, 1, 1], [], []>} : vector<8x32xbf16>, vector<32x128xbf16>, vector<8x128xf32> -> vector<8x128xf32>
    %258 = arith.addf %254, %257 : vector<8x128xf32>
    %259 = arith.negf %258 : vector<8x128xf32>
    %260 = math.exp %259 : vector<8x128xf32>
    %cst_62 = arith.constant 1.000000e+00 : f32
    %261 = vector.broadcast %cst_62 : f32 to vector<8x128xf32>
    %262 = arith.addf %261, %260 : vector<8x128xf32>
    %263 = arith.divf %261, %262 : vector<8x128xf32>
    %264 = math.tanh %258 : vector<8x128xf32>
    %265 = vector.extract_strided_slice %263 {offsets = [0, 0], sizes = [8, 32], strides = [1, 1]} : vector<8x128xf32> to vector<8x32xf32>
    %266 = vector.extract_strided_slice %263 {offsets = [0, 32], sizes = [8, 32], strides = [1, 1]} : vector<8x128xf32> to vector<8x32xf32>
    %267 = vector.extract_strided_slice %264 {offsets = [0, 64], sizes = [8, 32], strides = [1, 1]} : vector<8x128xf32> to vector<8x32xf32>
    %268 = vector.extract_strided_slice %263 {offsets = [0, 96], sizes = [8, 32], strides = [1, 1]} : vector<8x128xf32> to vector<8x32xf32>
    %269 = arith.mulf %266, %231 : vector<8x32xf32>
    %270 = arith.mulf %265, %267 : vector<8x32xf32>
    %271 = arith.addf %269, %270 : vector<8x32xf32>
    %272 = math.tanh %271 : vector<8x32xf32>
    %273 = arith.mulf %268, %272 : vector<8x32xf32>
    %274 = tpu.concatenate %273, %253 in 1 : vector<8x32xf32>, vector<8x32xf32> -> vector<8x64xf32>
    %275 = arith.truncf %274 : vector<8x64xf32> to vector<8x64xbf16>
    %c0_63 = arith.constant 0 : index
    %c0_64 = arith.constant 0 : index
    %276 = vector.load %arg6[%c0_63, %c0_64] : memref<64x128xbf16, #tpu.memory_space<vmem>>, vector<64x128xbf16>
    %cst_65 = arith.constant dense<0.000000e+00> : vector<8x128xf32>
    %277 = tpu.matmul %275, %276, %cst_65 {dimension_numbers = #tpu.dot_dimension_numbers<[1], [0], [0], [1], [0, 0, 1, 1], [], []>} : vector<8x64xbf16>, vector<64x128xbf16>, vector<8x128xf32> -> vector<8x128xf32>
    %278 = arith.addf %277, %9 : vector<8x128xf32>
    %279 = arith.negf %278 : vector<8x128xf32>
    %280 = math.exp %279 : vector<8x128xf32>
    %cst_66 = arith.constant 1.000000e+00 : f32
    %281 = vector.broadcast %cst_66 : f32 to vector<8x128xf32>
    %282 = arith.addf %281, %280 : vector<8x128xf32>
    %283 = arith.divf %281, %282 : vector<8x128xf32>
    %284 = math.tanh %278 : vector<8x128xf32>
    %285 = vector.extract_strided_slice %283 {offsets = [0, 0], sizes = [8, 32], strides = [1, 1]} : vector<8x128xf32> to vector<8x32xf32>
    %286 = vector.extract_strided_slice %283 {offsets = [0, 32], sizes = [8, 32], strides = [1, 1]} : vector<8x128xf32> to vector<8x32xf32>
    %287 = vector.extract_strided_slice %284 {offsets = [0, 64], sizes = [8, 32], strides = [1, 1]} : vector<8x128xf32> to vector<8x32xf32>
    %288 = vector.extract_strided_slice %283 {offsets = [0, 96], sizes = [8, 32], strides = [1, 1]} : vector<8x128xf32> to vector<8x32xf32>
    %289 = arith.mulf %286, %251 : vector<8x32xf32>
    %290 = arith.mulf %285, %287 : vector<8x32xf32>
    %291 = arith.addf %289, %290 : vector<8x32xf32>
    %292 = math.tanh %291 : vector<8x32xf32>
    %293 = arith.mulf %288, %292 : vector<8x32xf32>
    %294 = vector.extract_strided_slice %6 {offsets = [56, 0], sizes = [8, 128], strides = [1, 1]} : vector<64x128xf32> to vector<8x128xf32>
    %295 = arith.truncf %273 : vector<8x32xf32> to vector<8x32xbf16>
    %c0_67 = arith.constant 0 : index
    %c0_68 = arith.constant 0 : index
    %296 = vector.load %arg4[%c0_67, %c0_68] : memref<32x128xbf16, #tpu.memory_space<vmem>>, vector<32x128xbf16>
    %cst_69 = arith.constant dense<0.000000e+00> : vector<8x128xf32>
    %297 = tpu.matmul %295, %296, %cst_69 {dimension_numbers = #tpu.dot_dimension_numbers<[1], [0], [0], [1], [0, 0, 1, 1], [], []>} : vector<8x32xbf16>, vector<32x128xbf16>, vector<8x128xf32> -> vector<8x128xf32>
    %298 = arith.addf %294, %297 : vector<8x128xf32>
    %299 = arith.negf %298 : vector<8x128xf32>
    %300 = math.exp %299 : vector<8x128xf32>
    %cst_70 = arith.constant 1.000000e+00 : f32
    %301 = vector.broadcast %cst_70 : f32 to vector<8x128xf32>
    %302 = arith.addf %301, %300 : vector<8x128xf32>
    %303 = arith.divf %301, %302 : vector<8x128xf32>
    %304 = math.tanh %298 : vector<8x128xf32>
    %305 = vector.extract_strided_slice %303 {offsets = [0, 0], sizes = [8, 32], strides = [1, 1]} : vector<8x128xf32> to vector<8x32xf32>
    %306 = vector.extract_strided_slice %303 {offsets = [0, 32], sizes = [8, 32], strides = [1, 1]} : vector<8x128xf32> to vector<8x32xf32>
    %307 = vector.extract_strided_slice %304 {offsets = [0, 64], sizes = [8, 32], strides = [1, 1]} : vector<8x128xf32> to vector<8x32xf32>
    %308 = vector.extract_strided_slice %303 {offsets = [0, 96], sizes = [8, 32], strides = [1, 1]} : vector<8x128xf32> to vector<8x32xf32>
    %309 = arith.mulf %306, %271 : vector<8x32xf32>
    %310 = arith.mulf %305, %307 : vector<8x32xf32>
    %311 = arith.addf %309, %310 : vector<8x32xf32>
    %312 = math.tanh %311 : vector<8x32xf32>
    %313 = arith.mulf %308, %312 : vector<8x32xf32>
    %314 = tpu.concatenate %313, %293 in 1 : vector<8x32xf32>, vector<8x32xf32> -> vector<8x64xf32>
    %315 = arith.truncf %314 : vector<8x64xf32> to vector<8x64xbf16>
    %c0_71 = arith.constant 0 : index
    %c0_72 = arith.constant 0 : index
    %316 = vector.load %arg6[%c0_71, %c0_72] : memref<64x128xbf16, #tpu.memory_space<vmem>>, vector<64x128xbf16>
    %cst_73 = arith.constant dense<0.000000e+00> : vector<8x128xf32>
    %317 = tpu.matmul %315, %316, %cst_73 {dimension_numbers = #tpu.dot_dimension_numbers<[1], [0], [0], [1], [0, 0, 1, 1], [], []>} : vector<8x64xbf16>, vector<64x128xbf16>, vector<8x128xf32> -> vector<8x128xf32>
    %318 = arith.addf %317, %9 : vector<8x128xf32>
    %319 = arith.negf %318 : vector<8x128xf32>
    %320 = math.exp %319 : vector<8x128xf32>
    %cst_74 = arith.constant 1.000000e+00 : f32
    %321 = vector.broadcast %cst_74 : f32 to vector<8x128xf32>
    %322 = arith.addf %321, %320 : vector<8x128xf32>
    %323 = arith.divf %321, %322 : vector<8x128xf32>
    %324 = math.tanh %318 : vector<8x128xf32>
    %325 = vector.extract_strided_slice %323 {offsets = [0, 0], sizes = [8, 32], strides = [1, 1]} : vector<8x128xf32> to vector<8x32xf32>
    %326 = vector.extract_strided_slice %323 {offsets = [0, 32], sizes = [8, 32], strides = [1, 1]} : vector<8x128xf32> to vector<8x32xf32>
    %327 = vector.extract_strided_slice %324 {offsets = [0, 64], sizes = [8, 32], strides = [1, 1]} : vector<8x128xf32> to vector<8x32xf32>
    %328 = vector.extract_strided_slice %323 {offsets = [0, 96], sizes = [8, 32], strides = [1, 1]} : vector<8x128xf32> to vector<8x32xf32>
    %329 = arith.mulf %326, %291 : vector<8x32xf32>
    %330 = arith.mulf %325, %327 : vector<8x32xf32>
    %331 = arith.addf %329, %330 : vector<8x32xf32>
    %332 = math.tanh %331 : vector<8x32xf32>
    %333 = arith.mulf %328, %332 : vector<8x32xf32>
    %c0_75 = arith.constant 0 : index
    %c0_76 = arith.constant 0 : index
    %334 = vector.load %arg10[%c0_75, %c0_76] : memref<1x128xf32, #tpu.memory_space<vmem>>, vector<1x128xf32>
    %335 = vector.shape_cast %334 : vector<1x128xf32> to vector<1x128xf32>
    %336 = vector.broadcast %335 : vector<1x128xf32> to vector<8x128xf32>
    %c0_77 = arith.constant 0 : index
    %c0_78 = arith.constant 0 : index
    %337 = vector.load %arg12[%c0_77, %c0_78] : memref<1x16xf32, #tpu.memory_space<vmem>>, vector<1x16xf32>
    %338 = vector.shape_cast %337 : vector<1x16xf32> to vector<1x16xf32>
    %339 = vector.broadcast %338 : vector<1x16xf32> to vector<8x16xf32>
    %340 = tpu.iota {dimensions = array<i32: 1>} : vector<8x16xi32>
    %341 = arith.sitofp %340 : vector<8x16xi32> to vector<8x16xf32>
    %cst_79 = arith.constant 0.000000e+00 : f32
    %342 = vector.broadcast %cst_79 : f32 to vector<8x16xf32>
    %c0_80 = arith.constant 0 : index
    %c0_81 = arith.constant 0 : index
    %343 = vector.load %arg1[%c0_80, %c0_81] : memref<8x8xi32, #tpu.memory_space<vmem>>, vector<8x1xi32>
    %344 = vector.broadcast %343 : vector<8x1xi32> to vector<8x16xi32>
    %345 = arith.cmpi eq, %344, %340 : vector<8x16xi32>
    %346 = arith.extui %345 : vector<8x16xi1> to vector<8x16xi32>
    %347 = arith.sitofp %346 : vector<8x16xi32> to vector<8x16xf32>
    %348 = tpu.concatenate %347, %313 in 1 : vector<8x16xf32>, vector<8x32xf32> -> vector<8x48xf32>
    %349 = arith.truncf %348 : vector<8x48xf32> to vector<8x48xbf16>
    %c0_82 = arith.constant 0 : index
    %c0_83 = arith.constant 0 : index
    %350 = vector.load %arg8[%c0_82, %c0_83] : memref<48x128xbf16, #tpu.memory_space<vmem>>, vector<48x128xbf16>
    %cst_84 = arith.constant dense<0.000000e+00> : vector<8x128xf32>
    %351 = tpu.matmul %349, %350, %cst_84 {dimension_numbers = #tpu.dot_dimension_numbers<[1], [0], [0], [1], [0, 0, 1, 1], [], []>} : vector<8x48xbf16>, vector<48x128xbf16>, vector<8x128xf32> -> vector<8x128xf32>
    %352 = arith.negf %351 : vector<8x128xf32>
    %353 = math.exp %352 : vector<8x128xf32>
    %cst_85 = arith.constant 1.000000e+00 : f32
    %354 = vector.broadcast %cst_85 : f32 to vector<8x128xf32>
    %355 = arith.addf %354, %353 : vector<8x128xf32>
    %356 = arith.divf %354, %355 : vector<8x128xf32>
    %357 = math.tanh %351 : vector<8x128xf32>
    %358 = vector.extract_strided_slice %356 {offsets = [0, 0], sizes = [8, 32], strides = [1, 1]} : vector<8x128xf32> to vector<8x32xf32>
    %359 = vector.extract_strided_slice %356 {offsets = [0, 32], sizes = [8, 32], strides = [1, 1]} : vector<8x128xf32> to vector<8x32xf32>
    %360 = vector.extract_strided_slice %357 {offsets = [0, 64], sizes = [8, 32], strides = [1, 1]} : vector<8x128xf32> to vector<8x32xf32>
    %361 = vector.extract_strided_slice %356 {offsets = [0, 96], sizes = [8, 32], strides = [1, 1]} : vector<8x128xf32> to vector<8x32xf32>
    %362 = arith.mulf %359, %311 : vector<8x32xf32>
    %363 = arith.mulf %358, %360 : vector<8x32xf32>
    %364 = arith.addf %362, %363 : vector<8x32xf32>
    %365 = math.tanh %364 : vector<8x32xf32>
    %366 = arith.mulf %361, %365 : vector<8x32xf32>
    %367 = tpu.concatenate %366, %333 in 1 : vector<8x32xf32>, vector<8x32xf32> -> vector<8x64xf32>
    %368 = arith.truncf %367 : vector<8x64xf32> to vector<8x64xbf16>
    %c0_86 = arith.constant 0 : index
    %c0_87 = arith.constant 0 : index
    %369 = vector.load %arg9[%c0_86, %c0_87] : memref<64x128xbf16, #tpu.memory_space<vmem>>, vector<64x128xbf16>
    %cst_88 = arith.constant dense<0.000000e+00> : vector<8x128xf32>
    %370 = tpu.matmul %368, %369, %cst_88 {dimension_numbers = #tpu.dot_dimension_numbers<[1], [0], [0], [1], [0, 0, 1, 1], [], []>} : vector<8x64xbf16>, vector<64x128xbf16>, vector<8x128xf32> -> vector<8x128xf32>
    %371 = arith.addf %370, %336 : vector<8x128xf32>
    %372 = arith.negf %371 : vector<8x128xf32>
    %373 = math.exp %372 : vector<8x128xf32>
    %cst_89 = arith.constant 1.000000e+00 : f32
    %374 = vector.broadcast %cst_89 : f32 to vector<8x128xf32>
    %375 = arith.addf %374, %373 : vector<8x128xf32>
    %376 = arith.divf %374, %375 : vector<8x128xf32>
    %377 = math.tanh %371 : vector<8x128xf32>
    %378 = vector.extract_strided_slice %376 {offsets = [0, 0], sizes = [8, 32], strides = [1, 1]} : vector<8x128xf32> to vector<8x32xf32>
    %379 = vector.extract_strided_slice %376 {offsets = [0, 32], sizes = [8, 32], strides = [1, 1]} : vector<8x128xf32> to vector<8x32xf32>
    %380 = vector.extract_strided_slice %377 {offsets = [0, 64], sizes = [8, 32], strides = [1, 1]} : vector<8x128xf32> to vector<8x32xf32>
    %381 = vector.extract_strided_slice %376 {offsets = [0, 96], sizes = [8, 32], strides = [1, 1]} : vector<8x128xf32> to vector<8x32xf32>
    %382 = arith.mulf %379, %331 : vector<8x32xf32>
    %383 = arith.mulf %378, %380 : vector<8x32xf32>
    %384 = arith.addf %382, %383 : vector<8x32xf32>
    %385 = math.tanh %384 : vector<8x32xf32>
    %386 = arith.mulf %381, %385 : vector<8x32xf32>
    %387 = arith.truncf %386 : vector<8x32xf32> to vector<8x32xbf16>
    %c0_90 = arith.constant 0 : index
    %c0_91 = arith.constant 0 : index
    %388 = vector.load %arg11[%c0_90, %c0_91] : memref<32x16xbf16, #tpu.memory_space<vmem>>, vector<32x16xbf16>
    %cst_92 = arith.constant dense<0.000000e+00> : vector<8x16xf32>
    %389 = tpu.matmul %387, %388, %cst_92 {dimension_numbers = #tpu.dot_dimension_numbers<[1], [0], [0], [1], [0, 0, 1, 1], [], []>} : vector<8x32xbf16>, vector<32x16xbf16>, vector<8x16xf32> -> vector<8x16xf32>
    %390 = arith.addf %389, %339 : vector<8x16xf32>
    %cst_93 = arith.constant dense<0xFF800000> : vector<8xf32>
    %391 = vector.multi_reduction <maximumf>, %390, %cst_93 [1] : vector<8x16xf32> to vector<8xf32>
    %392 = vector.shape_cast %391 : vector<8xf32> to vector<8x1xf32>
    %393 = vector.broadcast %392 : vector<8x1xf32> to vector<8x16xf32>
    %394 = arith.cmpf oeq, %390, %393 : vector<8x16xf32>
    %cst_94 = arith.constant 1.600000e+01 : f32
    %395 = vector.broadcast %cst_94 : f32 to vector<8x16xf32>
    %396 = arith.select %394, %341, %395 : vector<8x16xi1>, vector<8x16xf32>
    %cst_95 = arith.constant dense<0x7F800000> : vector<8xf32>
    %397 = vector.multi_reduction <minimumf>, %396, %cst_95 [1] : vector<8x16xf32> to vector<8xf32>
    %398 = vector.shape_cast %397 : vector<8xf32> to vector<8x1xf32>
    %399 = arith.fptosi %398 : vector<8x1xf32> to vector<8x1xi32>
    %c1 = arith.constant 1 : index
    %400 = memref.load %arg0[%c1] : memref<8xi32, #tpu.memory_space<smem>>
    %c0_i32 = arith.constant 0 : i32
    %401 = arith.cmpi ne, %400, %c0_i32 : i32
    %c0_96 = arith.constant 0 : index
    %c1_97 = arith.constant 1 : index
    %402 = vector.load %arg1[%c0_96, %c1_97] : memref<8x8xi32, #tpu.memory_space<vmem>>, vector<8x1xi32>
    %403 = arith.select %401, %402, %399 : vector<8x1xi32>
    %404 = vector.broadcast %403 : vector<8x1xi32> to vector<8x16xi32>
    %405 = arith.cmpi eq, %404, %340 : vector<8x16xi32>
    %406 = arith.extui %405 : vector<8x16xi1> to vector<8x16xi32>
    %407 = arith.sitofp %406 : vector<8x16xi32> to vector<8x16xf32>
    %408 = tpu.concatenate %407, %366 in 1 : vector<8x16xf32>, vector<8x32xf32> -> vector<8x48xf32>
    %409 = arith.truncf %408 : vector<8x48xf32> to vector<8x48xbf16>
    %c0_98 = arith.constant 0 : index
    %c0_99 = arith.constant 0 : index
    %410 = vector.load %arg8[%c0_98, %c0_99] : memref<48x128xbf16, #tpu.memory_space<vmem>>, vector<48x128xbf16>
    %cst_100 = arith.constant dense<0.000000e+00> : vector<8x128xf32>
    %411 = tpu.matmul %409, %410, %cst_100 {dimension_numbers = #tpu.dot_dimension_numbers<[1], [0], [0], [1], [0, 0, 1, 1], [], []>} : vector<8x48xbf16>, vector<48x128xbf16>, vector<8x128xf32> -> vector<8x128xf32>
    %412 = arith.negf %411 : vector<8x128xf32>
    %413 = math.exp %412 : vector<8x128xf32>
    %cst_101 = arith.constant 1.000000e+00 : f32
    %414 = vector.broadcast %cst_101 : f32 to vector<8x128xf32>
    %415 = arith.addf %414, %413 : vector<8x128xf32>
    %416 = arith.divf %414, %415 : vector<8x128xf32>
    %417 = math.tanh %411 : vector<8x128xf32>
    %418 = vector.extract_strided_slice %416 {offsets = [0, 0], sizes = [8, 32], strides = [1, 1]} : vector<8x128xf32> to vector<8x32xf32>
    %419 = vector.extract_strided_slice %416 {offsets = [0, 32], sizes = [8, 32], strides = [1, 1]} : vector<8x128xf32> to vector<8x32xf32>
    %420 = vector.extract_strided_slice %417 {offsets = [0, 64], sizes = [8, 32], strides = [1, 1]} : vector<8x128xf32> to vector<8x32xf32>
    %421 = vector.extract_strided_slice %416 {offsets = [0, 96], sizes = [8, 32], strides = [1, 1]} : vector<8x128xf32> to vector<8x32xf32>
    %422 = arith.mulf %419, %364 : vector<8x32xf32>
    %423 = arith.mulf %418, %420 : vector<8x32xf32>
    %424 = arith.addf %422, %423 : vector<8x32xf32>
    %425 = math.tanh %424 : vector<8x32xf32>
    %426 = arith.mulf %421, %425 : vector<8x32xf32>
    %427 = tpu.concatenate %426, %386 in 1 : vector<8x32xf32>, vector<8x32xf32> -> vector<8x64xf32>
    %428 = arith.truncf %427 : vector<8x64xf32> to vector<8x64xbf16>
    %c0_102 = arith.constant 0 : index
    %c0_103 = arith.constant 0 : index
    %429 = vector.load %arg9[%c0_102, %c0_103] : memref<64x128xbf16, #tpu.memory_space<vmem>>, vector<64x128xbf16>
    %cst_104 = arith.constant dense<0.000000e+00> : vector<8x128xf32>
    %430 = tpu.matmul %428, %429, %cst_104 {dimension_numbers = #tpu.dot_dimension_numbers<[1], [0], [0], [1], [0, 0, 1, 1], [], []>} : vector<8x64xbf16>, vector<64x128xbf16>, vector<8x128xf32> -> vector<8x128xf32>
    %431 = arith.addf %430, %336 : vector<8x128xf32>
    %432 = arith.negf %431 : vector<8x128xf32>
    %433 = math.exp %432 : vector<8x128xf32>
    %cst_105 = arith.constant 1.000000e+00 : f32
    %434 = vector.broadcast %cst_105 : f32 to vector<8x128xf32>
    %435 = arith.addf %434, %433 : vector<8x128xf32>
    %436 = arith.divf %434, %435 : vector<8x128xf32>
    %437 = math.tanh %431 : vector<8x128xf32>
    %438 = vector.extract_strided_slice %436 {offsets = [0, 0], sizes = [8, 32], strides = [1, 1]} : vector<8x128xf32> to vector<8x32xf32>
    %439 = vector.extract_strided_slice %436 {offsets = [0, 32], sizes = [8, 32], strides = [1, 1]} : vector<8x128xf32> to vector<8x32xf32>
    %440 = vector.extract_strided_slice %437 {offsets = [0, 64], sizes = [8, 32], strides = [1, 1]} : vector<8x128xf32> to vector<8x32xf32>
    %441 = vector.extract_strided_slice %436 {offsets = [0, 96], sizes = [8, 32], strides = [1, 1]} : vector<8x128xf32> to vector<8x32xf32>
    %442 = arith.mulf %439, %384 : vector<8x32xf32>
    %443 = arith.mulf %438, %440 : vector<8x32xf32>
    %444 = arith.addf %442, %443 : vector<8x32xf32>
    %445 = math.tanh %444 : vector<8x32xf32>
    %446 = arith.mulf %441, %445 : vector<8x32xf32>
    %447 = arith.truncf %446 : vector<8x32xf32> to vector<8x32xbf16>
    %c0_106 = arith.constant 0 : index
    %c0_107 = arith.constant 0 : index
    %448 = vector.load %arg11[%c0_106, %c0_107] : memref<32x16xbf16, #tpu.memory_space<vmem>>, vector<32x16xbf16>
    %cst_108 = arith.constant dense<0.000000e+00> : vector<8x16xf32>
    %449 = tpu.matmul %447, %448, %cst_108 {dimension_numbers = #tpu.dot_dimension_numbers<[1], [0], [0], [1], [0, 0, 1, 1], [], []>} : vector<8x32xbf16>, vector<32x16xbf16>, vector<8x16xf32> -> vector<8x16xf32>
    %450 = arith.addf %449, %339 : vector<8x16xf32>
    %cst_109 = arith.constant dense<0xFF800000> : vector<8xf32>
    %451 = vector.multi_reduction <maximumf>, %450, %cst_109 [1] : vector<8x16xf32> to vector<8xf32>
    %452 = vector.shape_cast %451 : vector<8xf32> to vector<8x1xf32>
    %453 = vector.broadcast %452 : vector<8x1xf32> to vector<8x16xf32>
    %454 = arith.cmpf oeq, %450, %453 : vector<8x16xf32>
    %cst_110 = arith.constant 1.600000e+01 : f32
    %455 = vector.broadcast %cst_110 : f32 to vector<8x16xf32>
    %456 = arith.select %454, %341, %455 : vector<8x16xi1>, vector<8x16xf32>
    %cst_111 = arith.constant dense<0x7F800000> : vector<8xf32>
    %457 = vector.multi_reduction <minimumf>, %456, %cst_111 [1] : vector<8x16xf32> to vector<8xf32>
    %458 = vector.shape_cast %457 : vector<8xf32> to vector<8x1xf32>
    %459 = arith.fptosi %458 : vector<8x1xf32> to vector<8x1xi32>
    %c2 = arith.constant 2 : index
    %460 = memref.load %arg0[%c2] : memref<8xi32, #tpu.memory_space<smem>>
    %c0_i32_112 = arith.constant 0 : i32
    %461 = arith.cmpi ne, %460, %c0_i32_112 : i32
    %c0_113 = arith.constant 0 : index
    %c2_114 = arith.constant 2 : index
    %462 = vector.load %arg1[%c0_113, %c2_114] : memref<8x8xi32, #tpu.memory_space<vmem>>, vector<8x1xi32>
    %463 = arith.select %461, %462, %459 : vector<8x1xi32>
    %464 = vector.broadcast %463 : vector<8x1xi32> to vector<8x16xi32>
    %465 = arith.cmpi eq, %464, %340 : vector<8x16xi32>
    %466 = arith.extui %465 : vector<8x16xi1> to vector<8x16xi32>
    %467 = arith.sitofp %466 : vector<8x16xi32> to vector<8x16xf32>
    %468 = tpu.concatenate %467, %426 in 1 : vector<8x16xf32>, vector<8x32xf32> -> vector<8x48xf32>
    %469 = arith.truncf %468 : vector<8x48xf32> to vector<8x48xbf16>
    %c0_115 = arith.constant 0 : index
    %c0_116 = arith.constant 0 : index
    %470 = vector.load %arg8[%c0_115, %c0_116] : memref<48x128xbf16, #tpu.memory_space<vmem>>, vector<48x128xbf16>
    %cst_117 = arith.constant dense<0.000000e+00> : vector<8x128xf32>
    %471 = tpu.matmul %469, %470, %cst_117 {dimension_numbers = #tpu.dot_dimension_numbers<[1], [0], [0], [1], [0, 0, 1, 1], [], []>} : vector<8x48xbf16>, vector<48x128xbf16>, vector<8x128xf32> -> vector<8x128xf32>
    %472 = arith.negf %471 : vector<8x128xf32>
    %473 = math.exp %472 : vector<8x128xf32>
    %cst_118 = arith.constant 1.000000e+00 : f32
    %474 = vector.broadcast %cst_118 : f32 to vector<8x128xf32>
    %475 = arith.addf %474, %473 : vector<8x128xf32>
    %476 = arith.divf %474, %475 : vector<8x128xf32>
    %477 = math.tanh %471 : vector<8x128xf32>
    %478 = vector.extract_strided_slice %476 {offsets = [0, 0], sizes = [8, 32], strides = [1, 1]} : vector<8x128xf32> to vector<8x32xf32>
    %479 = vector.extract_strided_slice %476 {offsets = [0, 32], sizes = [8, 32], strides = [1, 1]} : vector<8x128xf32> to vector<8x32xf32>
    %480 = vector.extract_strided_slice %477 {offsets = [0, 64], sizes = [8, 32], strides = [1, 1]} : vector<8x128xf32> to vector<8x32xf32>
    %481 = vector.extract_strided_slice %476 {offsets = [0, 96], sizes = [8, 32], strides = [1, 1]} : vector<8x128xf32> to vector<8x32xf32>
    %482 = arith.mulf %479, %424 : vector<8x32xf32>
    %483 = arith.mulf %478, %480 : vector<8x32xf32>
    %484 = arith.addf %482, %483 : vector<8x32xf32>
    %485 = math.tanh %484 : vector<8x32xf32>
    %486 = arith.mulf %481, %485 : vector<8x32xf32>
    %487 = tpu.concatenate %486, %446 in 1 : vector<8x32xf32>, vector<8x32xf32> -> vector<8x64xf32>
    %488 = arith.truncf %487 : vector<8x64xf32> to vector<8x64xbf16>
    %c0_119 = arith.constant 0 : index
    %c0_120 = arith.constant 0 : index
    %489 = vector.load %arg9[%c0_119, %c0_120] : memref<64x128xbf16, #tpu.memory_space<vmem>>, vector<64x128xbf16>
    %cst_121 = arith.constant dense<0.000000e+00> : vector<8x128xf32>
    %490 = tpu.matmul %488, %489, %cst_121 {dimension_numbers = #tpu.dot_dimension_numbers<[1], [0], [0], [1], [0, 0, 1, 1], [], []>} : vector<8x64xbf16>, vector<64x128xbf16>, vector<8x128xf32> -> vector<8x128xf32>
    %491 = arith.addf %490, %336 : vector<8x128xf32>
    %492 = arith.negf %491 : vector<8x128xf32>
    %493 = math.exp %492 : vector<8x128xf32>
    %cst_122 = arith.constant 1.000000e+00 : f32
    %494 = vector.broadcast %cst_122 : f32 to vector<8x128xf32>
    %495 = arith.addf %494, %493 : vector<8x128xf32>
    %496 = arith.divf %494, %495 : vector<8x128xf32>
    %497 = math.tanh %491 : vector<8x128xf32>
    %498 = vector.extract_strided_slice %496 {offsets = [0, 0], sizes = [8, 32], strides = [1, 1]} : vector<8x128xf32> to vector<8x32xf32>
    %499 = vector.extract_strided_slice %496 {offsets = [0, 32], sizes = [8, 32], strides = [1, 1]} : vector<8x128xf32> to vector<8x32xf32>
    %500 = vector.extract_strided_slice %497 {offsets = [0, 64], sizes = [8, 32], strides = [1, 1]} : vector<8x128xf32> to vector<8x32xf32>
    %501 = vector.extract_strided_slice %496 {offsets = [0, 96], sizes = [8, 32], strides = [1, 1]} : vector<8x128xf32> to vector<8x32xf32>
    %502 = arith.mulf %499, %444 : vector<8x32xf32>
    %503 = arith.mulf %498, %500 : vector<8x32xf32>
    %504 = arith.addf %502, %503 : vector<8x32xf32>
    %505 = math.tanh %504 : vector<8x32xf32>
    %506 = arith.mulf %501, %505 : vector<8x32xf32>
    %507 = arith.truncf %506 : vector<8x32xf32> to vector<8x32xbf16>
    %c0_123 = arith.constant 0 : index
    %c0_124 = arith.constant 0 : index
    %508 = vector.load %arg11[%c0_123, %c0_124] : memref<32x16xbf16, #tpu.memory_space<vmem>>, vector<32x16xbf16>
    %cst_125 = arith.constant dense<0.000000e+00> : vector<8x16xf32>
    %509 = tpu.matmul %507, %508, %cst_125 {dimension_numbers = #tpu.dot_dimension_numbers<[1], [0], [0], [1], [0, 0, 1, 1], [], []>} : vector<8x32xbf16>, vector<32x16xbf16>, vector<8x16xf32> -> vector<8x16xf32>
    %510 = arith.addf %509, %339 : vector<8x16xf32>
    %cst_126 = arith.constant dense<0xFF800000> : vector<8xf32>
    %511 = vector.multi_reduction <maximumf>, %510, %cst_126 [1] : vector<8x16xf32> to vector<8xf32>
    %512 = vector.shape_cast %511 : vector<8xf32> to vector<8x1xf32>
    %513 = vector.broadcast %512 : vector<8x1xf32> to vector<8x16xf32>
    %514 = arith.cmpf oeq, %510, %513 : vector<8x16xf32>
    %cst_127 = arith.constant 1.600000e+01 : f32
    %515 = vector.broadcast %cst_127 : f32 to vector<8x16xf32>
    %516 = arith.select %514, %341, %515 : vector<8x16xi1>, vector<8x16xf32>
    %cst_128 = arith.constant dense<0x7F800000> : vector<8xf32>
    %517 = vector.multi_reduction <minimumf>, %516, %cst_128 [1] : vector<8x16xf32> to vector<8xf32>
    %518 = vector.shape_cast %517 : vector<8xf32> to vector<8x1xf32>
    %519 = arith.fptosi %518 : vector<8x1xf32> to vector<8x1xi32>
    %c3 = arith.constant 3 : index
    %520 = memref.load %arg0[%c3] : memref<8xi32, #tpu.memory_space<smem>>
    %c0_i32_129 = arith.constant 0 : i32
    %521 = arith.cmpi ne, %520, %c0_i32_129 : i32
    %c0_130 = arith.constant 0 : index
    %c3_131 = arith.constant 3 : index
    %522 = vector.load %arg1[%c0_130, %c3_131] : memref<8x8xi32, #tpu.memory_space<vmem>>, vector<8x1xi32>
    %523 = arith.select %521, %522, %519 : vector<8x1xi32>
    %524 = vector.broadcast %523 : vector<8x1xi32> to vector<8x16xi32>
    %525 = arith.cmpi eq, %524, %340 : vector<8x16xi32>
    %526 = arith.extui %525 : vector<8x16xi1> to vector<8x16xi32>
    %527 = arith.sitofp %526 : vector<8x16xi32> to vector<8x16xf32>
    %528 = tpu.concatenate %527, %486 in 1 : vector<8x16xf32>, vector<8x32xf32> -> vector<8x48xf32>
    %529 = arith.truncf %528 : vector<8x48xf32> to vector<8x48xbf16>
    %c0_132 = arith.constant 0 : index
    %c0_133 = arith.constant 0 : index
    %530 = vector.load %arg8[%c0_132, %c0_133] : memref<48x128xbf16, #tpu.memory_space<vmem>>, vector<48x128xbf16>
    %cst_134 = arith.constant dense<0.000000e+00> : vector<8x128xf32>
    %531 = tpu.matmul %529, %530, %cst_134 {dimension_numbers = #tpu.dot_dimension_numbers<[1], [0], [0], [1], [0, 0, 1, 1], [], []>} : vector<8x48xbf16>, vector<48x128xbf16>, vector<8x128xf32> -> vector<8x128xf32>
    %532 = arith.negf %531 : vector<8x128xf32>
    %533 = math.exp %532 : vector<8x128xf32>
    %cst_135 = arith.constant 1.000000e+00 : f32
    %534 = vector.broadcast %cst_135 : f32 to vector<8x128xf32>
    %535 = arith.addf %534, %533 : vector<8x128xf32>
    %536 = arith.divf %534, %535 : vector<8x128xf32>
    %537 = math.tanh %531 : vector<8x128xf32>
    %538 = vector.extract_strided_slice %536 {offsets = [0, 0], sizes = [8, 32], strides = [1, 1]} : vector<8x128xf32> to vector<8x32xf32>
    %539 = vector.extract_strided_slice %536 {offsets = [0, 32], sizes = [8, 32], strides = [1, 1]} : vector<8x128xf32> to vector<8x32xf32>
    %540 = vector.extract_strided_slice %537 {offsets = [0, 64], sizes = [8, 32], strides = [1, 1]} : vector<8x128xf32> to vector<8x32xf32>
    %541 = vector.extract_strided_slice %536 {offsets = [0, 96], sizes = [8, 32], strides = [1, 1]} : vector<8x128xf32> to vector<8x32xf32>
    %542 = arith.mulf %539, %484 : vector<8x32xf32>
    %543 = arith.mulf %538, %540 : vector<8x32xf32>
    %544 = arith.addf %542, %543 : vector<8x32xf32>
    %545 = math.tanh %544 : vector<8x32xf32>
    %546 = arith.mulf %541, %545 : vector<8x32xf32>
    %547 = tpu.concatenate %546, %506 in 1 : vector<8x32xf32>, vector<8x32xf32> -> vector<8x64xf32>
    %548 = arith.truncf %547 : vector<8x64xf32> to vector<8x64xbf16>
    %c0_136 = arith.constant 0 : index
    %c0_137 = arith.constant 0 : index
    %549 = vector.load %arg9[%c0_136, %c0_137] : memref<64x128xbf16, #tpu.memory_space<vmem>>, vector<64x128xbf16>
    %cst_138 = arith.constant dense<0.000000e+00> : vector<8x128xf32>
    %550 = tpu.matmul %548, %549, %cst_138 {dimension_numbers = #tpu.dot_dimension_numbers<[1], [0], [0], [1], [0, 0, 1, 1], [], []>} : vector<8x64xbf16>, vector<64x128xbf16>, vector<8x128xf32> -> vector<8x128xf32>
    %551 = arith.addf %550, %336 : vector<8x128xf32>
    %552 = arith.negf %551 : vector<8x128xf32>
    %553 = math.exp %552 : vector<8x128xf32>
    %cst_139 = arith.constant 1.000000e+00 : f32
    %554 = vector.broadcast %cst_139 : f32 to vector<8x128xf32>
    %555 = arith.addf %554, %553 : vector<8x128xf32>
    %556 = arith.divf %554, %555 : vector<8x128xf32>
    %557 = math.tanh %551 : vector<8x128xf32>
    %558 = vector.extract_strided_slice %556 {offsets = [0, 0], sizes = [8, 32], strides = [1, 1]} : vector<8x128xf32> to vector<8x32xf32>
    %559 = vector.extract_strided_slice %556 {offsets = [0, 32], sizes = [8, 32], strides = [1, 1]} : vector<8x128xf32> to vector<8x32xf32>
    %560 = vector.extract_strided_slice %557 {offsets = [0, 64], sizes = [8, 32], strides = [1, 1]} : vector<8x128xf32> to vector<8x32xf32>
    %561 = vector.extract_strided_slice %556 {offsets = [0, 96], sizes = [8, 32], strides = [1, 1]} : vector<8x128xf32> to vector<8x32xf32>
    %562 = arith.mulf %559, %504 : vector<8x32xf32>
    %563 = arith.mulf %558, %560 : vector<8x32xf32>
    %564 = arith.addf %562, %563 : vector<8x32xf32>
    %565 = math.tanh %564 : vector<8x32xf32>
    %566 = arith.mulf %561, %565 : vector<8x32xf32>
    %567 = arith.truncf %566 : vector<8x32xf32> to vector<8x32xbf16>
    %c0_140 = arith.constant 0 : index
    %c0_141 = arith.constant 0 : index
    %568 = vector.load %arg11[%c0_140, %c0_141] : memref<32x16xbf16, #tpu.memory_space<vmem>>, vector<32x16xbf16>
    %cst_142 = arith.constant dense<0.000000e+00> : vector<8x16xf32>
    %569 = tpu.matmul %567, %568, %cst_142 {dimension_numbers = #tpu.dot_dimension_numbers<[1], [0], [0], [1], [0, 0, 1, 1], [], []>} : vector<8x32xbf16>, vector<32x16xbf16>, vector<8x16xf32> -> vector<8x16xf32>
    %570 = arith.addf %569, %339 : vector<8x16xf32>
    %cst_143 = arith.constant dense<0xFF800000> : vector<8xf32>
    %571 = vector.multi_reduction <maximumf>, %570, %cst_143 [1] : vector<8x16xf32> to vector<8xf32>
    %572 = vector.shape_cast %571 : vector<8xf32> to vector<8x1xf32>
    %573 = vector.broadcast %572 : vector<8x1xf32> to vector<8x16xf32>
    %574 = arith.cmpf oeq, %570, %573 : vector<8x16xf32>
    %cst_144 = arith.constant 1.600000e+01 : f32
    %575 = vector.broadcast %cst_144 : f32 to vector<8x16xf32>
    %576 = arith.select %574, %341, %575 : vector<8x16xi1>, vector<8x16xf32>
    %cst_145 = arith.constant dense<0x7F800000> : vector<8xf32>
    %577 = vector.multi_reduction <minimumf>, %576, %cst_145 [1] : vector<8x16xf32> to vector<8xf32>
    %578 = vector.shape_cast %577 : vector<8xf32> to vector<8x1xf32>
    %579 = arith.fptosi %578 : vector<8x1xf32> to vector<8x1xi32>
    %c4 = arith.constant 4 : index
    %580 = memref.load %arg0[%c4] : memref<8xi32, #tpu.memory_space<smem>>
    %c0_i32_146 = arith.constant 0 : i32
    %581 = arith.cmpi ne, %580, %c0_i32_146 : i32
    %c0_147 = arith.constant 0 : index
    %c4_148 = arith.constant 4 : index
    %582 = vector.load %arg1[%c0_147, %c4_148] : memref<8x8xi32, #tpu.memory_space<vmem>>, vector<8x1xi32>
    %583 = arith.select %581, %582, %579 : vector<8x1xi32>
    %584 = vector.broadcast %583 : vector<8x1xi32> to vector<8x16xi32>
    %585 = arith.cmpi eq, %584, %340 : vector<8x16xi32>
    %586 = arith.extui %585 : vector<8x16xi1> to vector<8x16xi32>
    %587 = arith.sitofp %586 : vector<8x16xi32> to vector<8x16xf32>
    %588 = tpu.concatenate %587, %546 in 1 : vector<8x16xf32>, vector<8x32xf32> -> vector<8x48xf32>
    %589 = arith.truncf %588 : vector<8x48xf32> to vector<8x48xbf16>
    %c0_149 = arith.constant 0 : index
    %c0_150 = arith.constant 0 : index
    %590 = vector.load %arg8[%c0_149, %c0_150] : memref<48x128xbf16, #tpu.memory_space<vmem>>, vector<48x128xbf16>
    %cst_151 = arith.constant dense<0.000000e+00> : vector<8x128xf32>
    %591 = tpu.matmul %589, %590, %cst_151 {dimension_numbers = #tpu.dot_dimension_numbers<[1], [0], [0], [1], [0, 0, 1, 1], [], []>} : vector<8x48xbf16>, vector<48x128xbf16>, vector<8x128xf32> -> vector<8x128xf32>
    %592 = arith.negf %591 : vector<8x128xf32>
    %593 = math.exp %592 : vector<8x128xf32>
    %cst_152 = arith.constant 1.000000e+00 : f32
    %594 = vector.broadcast %cst_152 : f32 to vector<8x128xf32>
    %595 = arith.addf %594, %593 : vector<8x128xf32>
    %596 = arith.divf %594, %595 : vector<8x128xf32>
    %597 = math.tanh %591 : vector<8x128xf32>
    %598 = vector.extract_strided_slice %596 {offsets = [0, 0], sizes = [8, 32], strides = [1, 1]} : vector<8x128xf32> to vector<8x32xf32>
    %599 = vector.extract_strided_slice %596 {offsets = [0, 32], sizes = [8, 32], strides = [1, 1]} : vector<8x128xf32> to vector<8x32xf32>
    %600 = vector.extract_strided_slice %597 {offsets = [0, 64], sizes = [8, 32], strides = [1, 1]} : vector<8x128xf32> to vector<8x32xf32>
    %601 = vector.extract_strided_slice %596 {offsets = [0, 96], sizes = [8, 32], strides = [1, 1]} : vector<8x128xf32> to vector<8x32xf32>
    %602 = arith.mulf %599, %544 : vector<8x32xf32>
    %603 = arith.mulf %598, %600 : vector<8x32xf32>
    %604 = arith.addf %602, %603 : vector<8x32xf32>
    %605 = math.tanh %604 : vector<8x32xf32>
    %606 = arith.mulf %601, %605 : vector<8x32xf32>
    %607 = tpu.concatenate %606, %566 in 1 : vector<8x32xf32>, vector<8x32xf32> -> vector<8x64xf32>
    %608 = arith.truncf %607 : vector<8x64xf32> to vector<8x64xbf16>
    %c0_153 = arith.constant 0 : index
    %c0_154 = arith.constant 0 : index
    %609 = vector.load %arg9[%c0_153, %c0_154] : memref<64x128xbf16, #tpu.memory_space<vmem>>, vector<64x128xbf16>
    %cst_155 = arith.constant dense<0.000000e+00> : vector<8x128xf32>
    %610 = tpu.matmul %608, %609, %cst_155 {dimension_numbers = #tpu.dot_dimension_numbers<[1], [0], [0], [1], [0, 0, 1, 1], [], []>} : vector<8x64xbf16>, vector<64x128xbf16>, vector<8x128xf32> -> vector<8x128xf32>
    %611 = arith.addf %610, %336 : vector<8x128xf32>
    %612 = arith.negf %611 : vector<8x128xf32>
    %613 = math.exp %612 : vector<8x128xf32>
    %cst_156 = arith.constant 1.000000e+00 : f32
    %614 = vector.broadcast %cst_156 : f32 to vector<8x128xf32>
    %615 = arith.addf %614, %613 : vector<8x128xf32>
    %616 = arith.divf %614, %615 : vector<8x128xf32>
    %617 = math.tanh %611 : vector<8x128xf32>
    %618 = vector.extract_strided_slice %616 {offsets = [0, 0], sizes = [8, 32], strides = [1, 1]} : vector<8x128xf32> to vector<8x32xf32>
    %619 = vector.extract_strided_slice %616 {offsets = [0, 32], sizes = [8, 32], strides = [1, 1]} : vector<8x128xf32> to vector<8x32xf32>
    %620 = vector.extract_strided_slice %617 {offsets = [0, 64], sizes = [8, 32], strides = [1, 1]} : vector<8x128xf32> to vector<8x32xf32>
    %621 = vector.extract_strided_slice %616 {offsets = [0, 96], sizes = [8, 32], strides = [1, 1]} : vector<8x128xf32> to vector<8x32xf32>
    %622 = arith.mulf %619, %564 : vector<8x32xf32>
    %623 = arith.mulf %618, %620 : vector<8x32xf32>
    %624 = arith.addf %622, %623 : vector<8x32xf32>
    %625 = math.tanh %624 : vector<8x32xf32>
    %626 = arith.mulf %621, %625 : vector<8x32xf32>
    %627 = arith.truncf %626 : vector<8x32xf32> to vector<8x32xbf16>
    %c0_157 = arith.constant 0 : index
    %c0_158 = arith.constant 0 : index
    %628 = vector.load %arg11[%c0_157, %c0_158] : memref<32x16xbf16, #tpu.memory_space<vmem>>, vector<32x16xbf16>
    %cst_159 = arith.constant dense<0.000000e+00> : vector<8x16xf32>
    %629 = tpu.matmul %627, %628, %cst_159 {dimension_numbers = #tpu.dot_dimension_numbers<[1], [0], [0], [1], [0, 0, 1, 1], [], []>} : vector<8x32xbf16>, vector<32x16xbf16>, vector<8x16xf32> -> vector<8x16xf32>
    %630 = arith.addf %629, %339 : vector<8x16xf32>
    %cst_160 = arith.constant dense<0xFF800000> : vector<8xf32>
    %631 = vector.multi_reduction <maximumf>, %630, %cst_160 [1] : vector<8x16xf32> to vector<8xf32>
    %632 = vector.shape_cast %631 : vector<8xf32> to vector<8x1xf32>
    %633 = vector.broadcast %632 : vector<8x1xf32> to vector<8x16xf32>
    %634 = arith.cmpf oeq, %630, %633 : vector<8x16xf32>
    %cst_161 = arith.constant 1.600000e+01 : f32
    %635 = vector.broadcast %cst_161 : f32 to vector<8x16xf32>
    %636 = arith.select %634, %341, %635 : vector<8x16xi1>, vector<8x16xf32>
    %cst_162 = arith.constant dense<0x7F800000> : vector<8xf32>
    %637 = vector.multi_reduction <minimumf>, %636, %cst_162 [1] : vector<8x16xf32> to vector<8xf32>
    %638 = vector.shape_cast %637 : vector<8xf32> to vector<8x1xf32>
    %639 = arith.fptosi %638 : vector<8x1xf32> to vector<8x1xi32>
    %c5 = arith.constant 5 : index
    %640 = memref.load %arg0[%c5] : memref<8xi32, #tpu.memory_space<smem>>
    %c0_i32_163 = arith.constant 0 : i32
    %641 = arith.cmpi ne, %640, %c0_i32_163 : i32
    %c0_164 = arith.constant 0 : index
    %c5_165 = arith.constant 5 : index
    %642 = vector.load %arg1[%c0_164, %c5_165] : memref<8x8xi32, #tpu.memory_space<vmem>>, vector<8x1xi32>
    %643 = arith.select %641, %642, %639 : vector<8x1xi32>
    %644 = vector.broadcast %643 : vector<8x1xi32> to vector<8x16xi32>
    %645 = arith.cmpi eq, %644, %340 : vector<8x16xi32>
    %646 = arith.extui %645 : vector<8x16xi1> to vector<8x16xi32>
    %647 = arith.sitofp %646 : vector<8x16xi32> to vector<8x16xf32>
    %648 = tpu.concatenate %647, %606 in 1 : vector<8x16xf32>, vector<8x32xf32> -> vector<8x48xf32>
    %649 = arith.truncf %648 : vector<8x48xf32> to vector<8x48xbf16>
    %c0_166 = arith.constant 0 : index
    %c0_167 = arith.constant 0 : index
    %650 = vector.load %arg8[%c0_166, %c0_167] : memref<48x128xbf16, #tpu.memory_space<vmem>>, vector<48x128xbf16>
    %cst_168 = arith.constant dense<0.000000e+00> : vector<8x128xf32>
    %651 = tpu.matmul %649, %650, %cst_168 {dimension_numbers = #tpu.dot_dimension_numbers<[1], [0], [0], [1], [0, 0, 1, 1], [], []>} : vector<8x48xbf16>, vector<48x128xbf16>, vector<8x128xf32> -> vector<8x128xf32>
    %652 = arith.negf %651 : vector<8x128xf32>
    %653 = math.exp %652 : vector<8x128xf32>
    %cst_169 = arith.constant 1.000000e+00 : f32
    %654 = vector.broadcast %cst_169 : f32 to vector<8x128xf32>
    %655 = arith.addf %654, %653 : vector<8x128xf32>
    %656 = arith.divf %654, %655 : vector<8x128xf32>
    %657 = math.tanh %651 : vector<8x128xf32>
    %658 = vector.extract_strided_slice %656 {offsets = [0, 0], sizes = [8, 32], strides = [1, 1]} : vector<8x128xf32> to vector<8x32xf32>
    %659 = vector.extract_strided_slice %656 {offsets = [0, 32], sizes = [8, 32], strides = [1, 1]} : vector<8x128xf32> to vector<8x32xf32>
    %660 = vector.extract_strided_slice %657 {offsets = [0, 64], sizes = [8, 32], strides = [1, 1]} : vector<8x128xf32> to vector<8x32xf32>
    %661 = vector.extract_strided_slice %656 {offsets = [0, 96], sizes = [8, 32], strides = [1, 1]} : vector<8x128xf32> to vector<8x32xf32>
    %662 = arith.mulf %659, %604 : vector<8x32xf32>
    %663 = arith.mulf %658, %660 : vector<8x32xf32>
    %664 = arith.addf %662, %663 : vector<8x32xf32>
    %665 = math.tanh %664 : vector<8x32xf32>
    %666 = arith.mulf %661, %665 : vector<8x32xf32>
    %667 = tpu.concatenate %666, %626 in 1 : vector<8x32xf32>, vector<8x32xf32> -> vector<8x64xf32>
    %668 = arith.truncf %667 : vector<8x64xf32> to vector<8x64xbf16>
    %c0_170 = arith.constant 0 : index
    %c0_171 = arith.constant 0 : index
    %669 = vector.load %arg9[%c0_170, %c0_171] : memref<64x128xbf16, #tpu.memory_space<vmem>>, vector<64x128xbf16>
    %cst_172 = arith.constant dense<0.000000e+00> : vector<8x128xf32>
    %670 = tpu.matmul %668, %669, %cst_172 {dimension_numbers = #tpu.dot_dimension_numbers<[1], [0], [0], [1], [0, 0, 1, 1], [], []>} : vector<8x64xbf16>, vector<64x128xbf16>, vector<8x128xf32> -> vector<8x128xf32>
    %671 = arith.addf %670, %336 : vector<8x128xf32>
    %672 = arith.negf %671 : vector<8x128xf32>
    %673 = math.exp %672 : vector<8x128xf32>
    %cst_173 = arith.constant 1.000000e+00 : f32
    %674 = vector.broadcast %cst_173 : f32 to vector<8x128xf32>
    %675 = arith.addf %674, %673 : vector<8x128xf32>
    %676 = arith.divf %674, %675 : vector<8x128xf32>
    %677 = math.tanh %671 : vector<8x128xf32>
    %678 = vector.extract_strided_slice %676 {offsets = [0, 0], sizes = [8, 32], strides = [1, 1]} : vector<8x128xf32> to vector<8x32xf32>
    %679 = vector.extract_strided_slice %676 {offsets = [0, 32], sizes = [8, 32], strides = [1, 1]} : vector<8x128xf32> to vector<8x32xf32>
    %680 = vector.extract_strided_slice %677 {offsets = [0, 64], sizes = [8, 32], strides = [1, 1]} : vector<8x128xf32> to vector<8x32xf32>
    %681 = vector.extract_strided_slice %676 {offsets = [0, 96], sizes = [8, 32], strides = [1, 1]} : vector<8x128xf32> to vector<8x32xf32>
    %682 = arith.mulf %679, %624 : vector<8x32xf32>
    %683 = arith.mulf %678, %680 : vector<8x32xf32>
    %684 = arith.addf %682, %683 : vector<8x32xf32>
    %685 = math.tanh %684 : vector<8x32xf32>
    %686 = arith.mulf %681, %685 : vector<8x32xf32>
    %687 = arith.truncf %686 : vector<8x32xf32> to vector<8x32xbf16>
    %c0_174 = arith.constant 0 : index
    %c0_175 = arith.constant 0 : index
    %688 = vector.load %arg11[%c0_174, %c0_175] : memref<32x16xbf16, #tpu.memory_space<vmem>>, vector<32x16xbf16>
    %cst_176 = arith.constant dense<0.000000e+00> : vector<8x16xf32>
    %689 = tpu.matmul %687, %688, %cst_176 {dimension_numbers = #tpu.dot_dimension_numbers<[1], [0], [0], [1], [0, 0, 1, 1], [], []>} : vector<8x32xbf16>, vector<32x16xbf16>, vector<8x16xf32> -> vector<8x16xf32>
    %690 = arith.addf %689, %339 : vector<8x16xf32>
    %cst_177 = arith.constant dense<0xFF800000> : vector<8xf32>
    %691 = vector.multi_reduction <maximumf>, %690, %cst_177 [1] : vector<8x16xf32> to vector<8xf32>
    %692 = vector.shape_cast %691 : vector<8xf32> to vector<8x1xf32>
    %693 = vector.broadcast %692 : vector<8x1xf32> to vector<8x16xf32>
    %694 = arith.cmpf oeq, %690, %693 : vector<8x16xf32>
    %cst_178 = arith.constant 1.600000e+01 : f32
    %695 = vector.broadcast %cst_178 : f32 to vector<8x16xf32>
    %696 = arith.select %694, %341, %695 : vector<8x16xi1>, vector<8x16xf32>
    %cst_179 = arith.constant dense<0x7F800000> : vector<8xf32>
    %697 = vector.multi_reduction <minimumf>, %696, %cst_179 [1] : vector<8x16xf32> to vector<8xf32>
    %698 = vector.shape_cast %697 : vector<8xf32> to vector<8x1xf32>
    %699 = arith.fptosi %698 : vector<8x1xf32> to vector<8x1xi32>
    %c6 = arith.constant 6 : index
    %700 = memref.load %arg0[%c6] : memref<8xi32, #tpu.memory_space<smem>>
    %c0_i32_180 = arith.constant 0 : i32
    %701 = arith.cmpi ne, %700, %c0_i32_180 : i32
    %c0_181 = arith.constant 0 : index
    %c6_182 = arith.constant 6 : index
    %702 = vector.load %arg1[%c0_181, %c6_182] : memref<8x8xi32, #tpu.memory_space<vmem>>, vector<8x1xi32>
    %703 = arith.select %701, %702, %699 : vector<8x1xi32>
    %704 = vector.broadcast %703 : vector<8x1xi32> to vector<8x16xi32>
    %705 = arith.cmpi eq, %704, %340 : vector<8x16xi32>
    %706 = arith.extui %705 : vector<8x16xi1> to vector<8x16xi32>
    %707 = arith.sitofp %706 : vector<8x16xi32> to vector<8x16xf32>
    %708 = tpu.concatenate %707, %666 in 1 : vector<8x16xf32>, vector<8x32xf32> -> vector<8x48xf32>
    %709 = arith.truncf %708 : vector<8x48xf32> to vector<8x48xbf16>
    %c0_183 = arith.constant 0 : index
    %c0_184 = arith.constant 0 : index
    %710 = vector.load %arg8[%c0_183, %c0_184] : memref<48x128xbf16, #tpu.memory_space<vmem>>, vector<48x128xbf16>
    %cst_185 = arith.constant dense<0.000000e+00> : vector<8x128xf32>
    %711 = tpu.matmul %709, %710, %cst_185 {dimension_numbers = #tpu.dot_dimension_numbers<[1], [0], [0], [1], [0, 0, 1, 1], [], []>} : vector<8x48xbf16>, vector<48x128xbf16>, vector<8x128xf32> -> vector<8x128xf32>
    %712 = arith.negf %711 : vector<8x128xf32>
    %713 = math.exp %712 : vector<8x128xf32>
    %cst_186 = arith.constant 1.000000e+00 : f32
    %714 = vector.broadcast %cst_186 : f32 to vector<8x128xf32>
    %715 = arith.addf %714, %713 : vector<8x128xf32>
    %716 = arith.divf %714, %715 : vector<8x128xf32>
    %717 = math.tanh %711 : vector<8x128xf32>
    %718 = vector.extract_strided_slice %716 {offsets = [0, 0], sizes = [8, 32], strides = [1, 1]} : vector<8x128xf32> to vector<8x32xf32>
    %719 = vector.extract_strided_slice %716 {offsets = [0, 32], sizes = [8, 32], strides = [1, 1]} : vector<8x128xf32> to vector<8x32xf32>
    %720 = vector.extract_strided_slice %717 {offsets = [0, 64], sizes = [8, 32], strides = [1, 1]} : vector<8x128xf32> to vector<8x32xf32>
    %721 = vector.extract_strided_slice %716 {offsets = [0, 96], sizes = [8, 32], strides = [1, 1]} : vector<8x128xf32> to vector<8x32xf32>
    %722 = arith.mulf %719, %664 : vector<8x32xf32>
    %723 = arith.mulf %718, %720 : vector<8x32xf32>
    %724 = arith.addf %722, %723 : vector<8x32xf32>
    %725 = math.tanh %724 : vector<8x32xf32>
    %726 = arith.mulf %721, %725 : vector<8x32xf32>
    %727 = tpu.concatenate %726, %686 in 1 : vector<8x32xf32>, vector<8x32xf32> -> vector<8x64xf32>
    %728 = arith.truncf %727 : vector<8x64xf32> to vector<8x64xbf16>
    %c0_187 = arith.constant 0 : index
    %c0_188 = arith.constant 0 : index
    %729 = vector.load %arg9[%c0_187, %c0_188] : memref<64x128xbf16, #tpu.memory_space<vmem>>, vector<64x128xbf16>
    %cst_189 = arith.constant dense<0.000000e+00> : vector<8x128xf32>
    %730 = tpu.matmul %728, %729, %cst_189 {dimension_numbers = #tpu.dot_dimension_numbers<[1], [0], [0], [1], [0, 0, 1, 1], [], []>} : vector<8x64xbf16>, vector<64x128xbf16>, vector<8x128xf32> -> vector<8x128xf32>
    %731 = arith.addf %730, %336 : vector<8x128xf32>
    %732 = arith.negf %731 : vector<8x128xf32>
    %733 = math.exp %732 : vector<8x128xf32>
    %cst_190 = arith.constant 1.000000e+00 : f32
    %734 = vector.broadcast %cst_190 : f32 to vector<8x128xf32>
    %735 = arith.addf %734, %733 : vector<8x128xf32>
    %736 = arith.divf %734, %735 : vector<8x128xf32>
    %737 = math.tanh %731 : vector<8x128xf32>
    %738 = vector.extract_strided_slice %736 {offsets = [0, 0], sizes = [8, 32], strides = [1, 1]} : vector<8x128xf32> to vector<8x32xf32>
    %739 = vector.extract_strided_slice %736 {offsets = [0, 32], sizes = [8, 32], strides = [1, 1]} : vector<8x128xf32> to vector<8x32xf32>
    %740 = vector.extract_strided_slice %737 {offsets = [0, 64], sizes = [8, 32], strides = [1, 1]} : vector<8x128xf32> to vector<8x32xf32>
    %741 = vector.extract_strided_slice %736 {offsets = [0, 96], sizes = [8, 32], strides = [1, 1]} : vector<8x128xf32> to vector<8x32xf32>
    %742 = arith.mulf %739, %684 : vector<8x32xf32>
    %743 = arith.mulf %738, %740 : vector<8x32xf32>
    %744 = arith.addf %742, %743 : vector<8x32xf32>
    %745 = math.tanh %744 : vector<8x32xf32>
    %746 = arith.mulf %741, %745 : vector<8x32xf32>
    %747 = arith.truncf %746 : vector<8x32xf32> to vector<8x32xbf16>
    %c0_191 = arith.constant 0 : index
    %c0_192 = arith.constant 0 : index
    %748 = vector.load %arg11[%c0_191, %c0_192] : memref<32x16xbf16, #tpu.memory_space<vmem>>, vector<32x16xbf16>
    %cst_193 = arith.constant dense<0.000000e+00> : vector<8x16xf32>
    %749 = tpu.matmul %747, %748, %cst_193 {dimension_numbers = #tpu.dot_dimension_numbers<[1], [0], [0], [1], [0, 0, 1, 1], [], []>} : vector<8x32xbf16>, vector<32x16xbf16>, vector<8x16xf32> -> vector<8x16xf32>
    %750 = arith.addf %749, %339 : vector<8x16xf32>
    %751 = tpu.concatenate %342, %390, %450, %510, %570, %630, %690, %750 in 1 : vector<8x16xf32>, vector<8x16xf32>, vector<8x16xf32>, vector<8x16xf32>, vector<8x16xf32>, vector<8x16xf32>, vector<8x16xf32>, vector<8x16xf32> -> vector<8x128xf32>
    %c0_194 = arith.constant 0 : index
    %c0_195 = arith.constant 0 : index
    %752 = vector.load %arg13[%c0_194, %c0_195] : memref<8x128xf32, #tpu.memory_space<vmem>>, vector<8x128xf32>
    tpu.vector_store %arg13[%c0_194, %c0_195], %751 {strides = array<i32>} : memref<8x128xf32, #tpu.memory_space<vmem>>, vector<8x128xf32>,
    return
  }
}

</mosaic_0001>

<bundles_post_ra>
// kernel: seq2seq_forward.1
= control target key start
LH: loop header
LB: loop body
LE: loop exit
PB: predicated region body
PF: predicated region fallthrough
CT: control target
= control target key end

     0   :  { %18 = vsyncpa [#allocation3], 0  ;;  %s5090_s0 = inlined_call_operand.vmem [shape: s32[8], index: 0, kind: input, shape index: {}]   ;;  %s5091_s1 = inlined_call_operand.vmem [shape: s32[8,8], index: 1, kind: input, shape index: {}]   ;;  %s5092_s2 = inlined_call_operand.vmem [shape: bf16[64,32], index: 2, kind: input, shape index: {}]   ;;  %s5093_s3 = inlined_call_operand.vmem [shape: bf16[32,128], index: 3, kind: input, shape index: {}]   ;;  %s5094_s4 = inlined_call_operand.vmem [shape: bf16[32,128], index: 4, kind: input, shape index: {}]   ;;  %s5095_s5 = inlined_call_operand.vmem [shape: f32[1,128], index: 5, kind: input, shape index: {}]   ;;  %s5096_s6 = inlined_call_operand.vmem [shape: bf16[64,128], index: 6, kind: input, shape index: {}]   ;;  %s5097_s7 = inlined_call_operand.vmem [shape: f32[1,128], index: 7, kind: input, shape index: {}]   ;;  %s5098_s8 = inlined_call_operand.vmem [shape: bf16[48,128], index: 8, kind: input, shape index: {}]   ;;  %s5099_s9 = inlined_call_operand.vmem [shape: bf16[64,128], index: 9, kind: input, shape index: {}]   ;;  %s5100_s10 = inlined_call_operand.vmem [shape: f32[1,128], index: 10, kind: input, shape index: {}]   ;;  %s5101_s11 = inlined_call_operand.vmem [shape: bf16[32,16], index: 11, kind: input, shape index: {}]   ;;  %s5102_s12 = inlined_call_operand.vmem [shape: f32[1,16], index: 12, kind: input, shape index: {}]   ;;  %s5103_s13 = inlined_call_operand.vmem [shape: f32[8,128], index: 13, kind: output, shape index: {}]  }
   0x1   :  { %s25_s27 = sshll.u32 %s5090_s0, 4  ;;  %s26_s27 = int_to_ptr.vmem [resolvable:$true] %s25_s27 }
   0x2   :  { %s4022_s28 = scalar_lea.vmem %s26_s27, 16  ;;  %p4027_p1 = scmp.lt.s32.totalorder %s26_s27, %s26_s27 }
   0x3   :  { %p4023_p0 = scmp.ne.s32.totalorder %s26_s27, %s4022_s28  ;;  %p4028_p2 = scmp.lt.s32.totalorder %s4022_s28, %s4022_s28 }
   0x5   :  { %p4029_p3 = por %p4028_p2, %p4027_p1 }
   0x7   :  { %p4030_p4 = pnand %p4029_p3, %p4023_p0 }
   0x9   :  { %4033 = shalt.err (!%p4030_p4)
}
   0xa   :  { %s4036_s29 = smov [#allocation2]  }
   0xb   :  { %28 = dma.vmem_to_smem %s26_s27, 16, %s4036_s29, [#allocation3]  }
   0xc   :  { %4034 = dma.done.wait [#allocation3], 16  }
   0xd   :  { %4035 = vsyncadd [#allocation3], 4294967280 }
   0xe   :  { %56 = sfence }
   0xf   :  { %v3747_v0 = vld [vmem:[%s5093_s3 + $0x8] sm:$0xff]   ;;  %v4037_v1 = vmov 0.0   ;;  %v3749_v3 = vld [vmem:[%s5093_s3] sm:$0xff]   ;;  %vm4038_vm0 = vmmov 0   ;;  %vm109_vm1 = vcmask 261120   ;;  %v4039_v7 = vmov 0  }
  0x10   :  { %3341 = vmatprep.subr.bf16.mxu1 %v4037_v1  ;;  %v4133_v2 = vld [vmem:[%s5094_s4 + $0x8] sm:$0xff]   ;;  %3329 = vmatprep.subr.bf16.mxu0 %v3747_v0  ;;  %v4144_v4 = vld [vmem:[%s5094_s4] sm:$0xff]   ;;  %s4040_s24 = smov 64   ;;  %s4041_s25 = smov 32   ;;  %v4180_v27 = vld [vmem:[%s5096_s6 + $0x18] sm:$0xff]   ;;  %vm316_vm2 = vcmask 523264  }
  0x11   :  { %3345 = vmatprep.mubr.msk.bf16.mxu1 %vm4038_vm0, %v4037_v1  ;;  %3342 = vmatpush3.bf16.msra.mxu1 %v4133_v2  ;;  %v3751_v5 = vld [vmem:[%s5092_s2] sm:$0xff]   ;;  %v3752_v6 = vld [vmem:[%s5092_s2 + $0x8] sm:$0xff]   ;;  %v3755_v28 = vld [vmem:[%s5092_s2 + $0x10] sm:$0xff]   ;;  %s4042_s29 = smov 48   ;;  %vm1454_vm4 = vcmask 130048   ;;  %vm1481_vm5 = vcmask 392192  }
  0x12   :  { %3330 = vmatpush3.bf16.msra.mxu0 %v3747_v0  ;;  %3343 = vmatprep.subr.bf16.mxu1 %v4037_v1  ;;  %v4169_v10 = vld [vmem:[%s5095_s5] ss:$0 sm:$0xff]  ;;  %v3756_v29 = vld [vmem:[%s5092_s2 + $0x18] sm:$0xff]   ;;  %v4192_v30 = vld [vmem:[%s5096_s6 + $0x10] sm:$0xff]   ;;  %s3133_s26 = sld [smem:[#allocation2 + $0x1]]  ;;  %s4051_s17 = smov 96  }
  0x13   :  { %3331 = vmatprep.subr.bf16.mxu0 %v3749_v3  ;;  %3740 = vset.pattern.permute.xlu1 %v4039_v7  ;;  %v4203_v31 = vld [vmem:[%s5096_s6 + $0x8] sm:$0xff]   ;;  %v4212_v33 = vld [vmem:[%s5096_s6] sm:$0xff]   ;;  %s3140_s28 = sld [smem:[#allocation2 + $0x2]] }
  0x14   :  { %3333 = vmatprep.mubr.msk.bf16.mxu0 %vm109_vm1, %v3751_v5  ;;  %v4251_v48 = vld [vmem:[%s5097_s7] ss:$0 sm:$0xff]  ;;  %s3147_s14 = sld [smem:[#allocation2 + $0x3]] }
  0x15   :  { %3344 = vmatpush3.bf16.msra.mxu1 %v4144_v4  ;;  %s3154_s0 = sld [smem:[#allocation2 + $0x4]] }
  0x16   :  { %3332 = vmatpush3.bf16.msra.mxu0 %v3749_v3  ;;  %3361 = vmatprep.subr.bf16.mxu1 %v4037_v1 }
  0x17   :  { %3349 = vmatprep.subr.bf16.mxu0 %v4037_v1 }
  0x18   :  { %3346 = vmatmul.mubr.bf16.vlgmr.msra.gmra.mxu1 %v4039_v7  ;;  %p1731_p5 = scmp.ne.s32.totalorder %s3133_s26, 0 }
  0x19   :  { %3334 = vmatmul.mubr.msk.bf16.vlgmr.msra.gmra.mxu0 %vm109_vm1, %v3752_v6  ;;  %3362 = vmatpush3.bf16.msra.mxu1 %v4133_v2  ;;  %p1948_p6 = scmp.ne.s32.totalorder %s3140_s28, 0 }
  0x1a   :  { %3365 = vmatprep.mubr.msk.bf16.mxu1 %vm4038_vm0, %v4037_v1  ;;  %3363 = vmatprep.subr.bf16.mxu1 %v4037_v1  ;;  %s1732_s27 = scalar_select %p1731_p5, 1, 0 }
  0x1b   :  { %3350 = vmatpush3.bf16.msra.mxu0 %v4180_v27  ;;  %3337 = vmatprep.mubr.msk.bf16.mxu0 %vm109_vm1, %v3755_v28  ;;  %s1949_s30 = scalar_select %p1948_p6, 1, 0 }
  0x1c   :  { %3351 = vmatprep.subr.bf16.mxu0 %v4037_v1  ;;  %p2165_p7 = scmp.ne.s32.totalorder %s3147_s14, 0  ;;  %p2382_p8 = scmp.ne.s32.totalorder %s3154_s0, 0 }
  0x1d   :  { %3364 = vmatpush3.bf16.msra.mxu1 %v4144_v4 }
  0x1e   :  { %3369 = vmatprep.subr.bf16.mxu1 %v4037_v1  ;;  %s2383_s15 = scalar_select %p2382_p8, 1, 0 }
  0x1f   :  { %3352 = vmatpush3.bf16.msra.mxu0 %v4192_v30 }
  0x20   :  { %3353 = vmatprep.subr.bf16.mxu0 %v4037_v1 }
  0x21   :  { %3338 = vmatmul.mubr.msk.bf16.gmra.mxu0 %vm109_vm1, %v3756_v29 }
  0x22   :  { %3357 = vmatprep.mubr.msk.bf16.mxu0 %vm4038_vm0, %v4037_v1 }
  0x23   :  { %3354 = vmatpush3.bf16.msra.mxu0 %v4203_v31 }
  0x24   :  { %3355 = vmatprep.subr.bf16.mxu0 %v4037_v1 }
  0x27   :  { %3356 = vmatpush3.bf16.msra.mxu0 %v4212_v33 }
  0x28   :  { %3381 = vmatprep.subr.bf16.mxu0 %v4037_v1 }
  0xd8   :  { %v247_v8 = vpop.f32.mrf.mxu1 }
  0xd9   :  { %v4164_v9 = vpop.f32.mrf.mxu0 }
  0xda   :  { %v3347_v11 = vpop.f32.mrf.mxu1 }
  0xdb   :  { %v156_v12 = vpop.f32.mrf.mxu0 }
  0xdc   :  { %v157_v13 = vadd.f32 %v4169_v10, %v156_v12  ;;  %v250_v14 = vpop.f32.mrf.mxu1 }
  0xdd   :  { %v4237_v41 = vpop.f32.mrf.mxu0 }
  0xde   :  { %v253_v15 = vadd.f32 %v247_v8, %v157_v13  ;;  %v3348_v16 = vpop.f32.mrf.mxu1 }
  0xdf   :  { %v159_v42 = vpop.f32.mrf.mxu0 }
  0xe0   :  { %3768 = vtanh.f32 %v253_v15  ;;  %v3081_v18 = vmul.f32 -1.442695, %v253_v15  ;;  %v160_v47 = vadd.f32 %v4169_v10, %v159_v42 }
  0xe1   :  { %v4239_v43 = vpop.f32.mrf.mxu0 }
  0xe2   :  { %3770 = vpow2.f32 %v3081_v18 }
  0xe3   :  { %v4241_v44 = vpop.f32.mrf.mxu0 }
  0xe5   :  { %v4243_v45 = vpop.f32.mrf.mxu0 }
  0xe7   :  { %v4245_v46 = vpop.f32.mrf.mxu0 }
  0xed   :  { %v3769_v17 = vpop.eup %3768 }
  0xee   :  { %263 = vrot.lane.b32.xlu0 %v3769_v17, %s4040_s24 }
  0xef   :  { %v3771_v19 = vpop.eup %3770 }
  0xf0   :  { %v257_v20 = vadd.f32 1.0, %v3771_v19 }
  0xf2   :  { %3772 = vrcp.f32 %v257_v20 }
  0xff   :  { %v3773_v21 = vpop.eup %3772 }
 0x100   :  { %v261_v24 = vmul.f32 0.0, %v3773_v21 }
 0x160   :  { %v264_v22 = vpop.permute.xlu0 %263 }
 0x161   :  { %v266_v23 = vmul.f32 %v3773_v21, %v264_v22 }
 0x163   :  { %268 = vrot.lane.b32.xlu0 %v266_v23, %s4041_s25 }
 0x1d5   :  { %v269_v25 = vpop.permute.xlu0 %268 }
 0x1d6   :  { %v4174_v26 = vadd.f32 %v269_v25, %v261_v24 }
 0x1d8   :  { %3774 = vtanh.f32 %v4174_v26 }
 0x1e5   :  { %v3775_v32 = vpop.eup %3774 }
 0x1e6   :  { %274 = vrot.lane.b32.xlu1 %v3775_v32, %s4040_s24 }
 0x258   :  { %v275_v34 = vpop.permute.xlu1 %274 }
 0x259   :  { %v277_v35 = vmul.f32 %v3773_v21, %v275_v34 }
 0x25b   :  { %v384_v36 = vpack.c.bf16 %v277_v35, %v277_v35  ;;  %279 = vrot.lane.b32.xlu1 %v277_v35, %s4041_s25 }
 0x25d   :  { %386 = vrot.lane.b32.xlu0 %v384_v36, %s4041_s25  ;;  %v165_v36 = vadd.f32 %v4164_v9, %v4169_v10 }
 0x2cd   :  { %v280_v37 = vpop.permute.xlu1 %279 }
 0x2ce   :  { %v282_v38 = vsel %vm109_vm1, %v280_v37, 0.0 }
 0x2cf   :  { %v283_v39 = vpack.c.bf16 %v282_v38, %v282_v38  ;;  %v387_v40 = vpop.permute.xlu0 %386 }
 0x2d0   :  { %3366 = vmatmul.mubr.msk.bf16.vlgmr.msra.gmra.mxu1 %vm109_vm1, %v387_v40 }
 0x2d1   :  { %3358 = vmatmul.mubr.msk.bf16.vlgmr.msra.gmra.mxu0 %vm316_vm2, %v283_v39  ;;  %3370 = vmatpush3.bf16.msra.mxu1 %v4180_v27 }
 0x2d2   :  { %3371 = vmatprep.subr.bf16.mxu1 %v4037_v1  ;;  %3382 = vmatpush3.bf16.msra.mxu0 %v4133_v2 }
 0x2d3   :  { %3383 = vmatprep.subr.bf16.mxu0 %v4037_v1  ;;  %3377 = vmatprep.mubr.msk.bf16.mxu1 %vm4038_vm0, %v4037_v1 }
 0x2d4   :  { %3385 = vmatprep.mubr.msk.bf16.mxu0 %vm4038_vm0, %v4037_v1 }
 0x2d5   :  { %3372 = vmatpush3.bf16.msra.mxu1 %v4192_v30 }
 0x2d6   :  { %3373 = vmatprep.subr.bf16.mxu1 %v4037_v1  ;;  %3384 = vmatpush3.bf16.msra.mxu0 %v4144_v4 }
 0x2d7   :  { %3389 = vmatprep.subr.bf16.mxu0 %v4037_v1 }
 0x2d9   :  { %3374 = vmatpush3.bf16.msra.mxu1 %v4203_v31 }
 0x2da   :  { %3375 = vmatprep.subr.bf16.mxu1 %v4037_v1 }
 0x2dd   :  { %3376 = vmatpush3.bf16.msra.mxu1 %v4212_v33 }
 0x2de   :  { %3401 = vmatprep.subr.bf16.mxu1 %v4037_v1 }
 0x390   :  { %v425_v49 = vpop.f32.mrf.mxu1 }
 0x391   :  { %v431_v50 = vadd.f32 %v425_v49, %v160_v47  ;;  %v354_v51 = vpop.f32.mrf.mxu0 }
 0x392   :  { %v355_v52 = vadd.f32 %v4251_v48, %v354_v51  ;;  %v3367_v53 = vpop.f32.mrf.mxu1 }
 0x393   :  { %3776 = vtanh.f32 %v431_v50  ;;  %v3359_v54 = vpop.f32.mrf.mxu0  ;;  %v3089_v61 = vmul.f32 -1.442695, %v431_v50 }
 0x394   :  { %3778 = vtanh.f32 %v355_v52  ;;  %v428_v55 = vpop.f32.mrf.mxu1  ;;  %v3087_v62 = vmul.f32 -1.442695, %v355_v52 }
 0x395   :  { %v357_v56 = vpop.f32.mrf.mxu0  ;;  %3780 = vpow2.f32 %v3089_v61 }
 0x396   :  { %v3368_v57 = vpop.f32.mrf.mxu1  ;;  %3782 = vpow2.f32 %v3087_v62 }
 0x397   :  { %v3360_v58 = vpop.f32.mrf.mxu0 }
 0x3a0   :  { %v3777_v59 = vpop.eup %3776 }
 0x3a1   :  { %v3779_v60 = vpop.eup %3778  ;;  %441 = vrot.lane.b32.xlu0 %v3777_v59, %s4040_s24 }
 0x3a2   :  { %369 = vrot.lane.b32.xlu1 %v3779_v60, %s4040_s24  ;;  %v3781_v63 = vpop.eup %3780 }
 0x3a3   :  { %v3783_v0 = vpop.eup %3782  ;;  %v435_v3 = vadd.f32 1.0, %v3781_v63 }
 0x3a4   :  { %v363_v5 = vadd.f32 1.0, %v3783_v0 }
 0x3a5   :  { %3784 = vrcp.f32 %v435_v3 }
 0x3a6   :  { %3786 = vrcp.f32 %v363_v5 }
 0x3b2   :  { %v3785_v6 = vpop.eup %3784 }
 0x3b3   :  { %v3787_v8 = vpop.eup %3786  ;;  %v439_v14 = vmul.f32 %v3785_v6, %v4174_v26 }
 0x3b4   :  { %v367_v16 = vmul.f32 0.0, %v3787_v8 }
 0x413   :  { %v442_v7 = vpop.permute.xlu0 %441 }
 0x414   :  { %v444_v11 = vmul.f32 %v3785_v6, %v442_v7  ;;  %v370_v12 = vpop.permute.xlu1 %369 }
 0x415   :  { %v372_v13 = vmul.f32 %v3787_v8, %v370_v12 }
 0x416   :  { %446 = vrot.lane.b32.xlu0 %v444_v11, %s4041_s25 }
 0x417   :  { %374 = vrot.lane.b32.xlu1 %v372_v13, %s4041_s25 }
 0x488   :  { %v447_v15 = vpop.permute.xlu0 %446 }
 0x489   :  { %v4259_v17 = vadd.f32 %v447_v15, %v439_v14  ;;  %v375_v18 = vpop.permute.xlu1 %374 }
 0x48a   :  { %v4261_v19 = vadd.f32 %v375_v18, %v367_v16 }
 0x48b   :  { %3788 = vtanh.f32 %v4259_v17 }
 0x48c   :  { %3790 = vtanh.f32 %v4261_v19 }
 0x498   :  { %v3789_v20 = vpop.eup %3788 }
 0x499   :  { %v3791_v21 = vpop.eup %3790  ;;  %452 = vrot.lane.b32.xlu0 %v3789_v20, %s4040_s24 }
 0x49a   :  { %380 = vrot.lane.b32.xlu1 %v3791_v21, %s4040_s24 }
 0x50b   :  { %v453_v22 = vpop.permute.xlu0 %452 }
 0x50c   :  { %v455_v23 = vmul.f32 %v3785_v6, %v453_v22  ;;  %v381_v24 = vpop.permute.xlu1 %380 }
 0x50d   :  { %v383_v25 = vmul.f32 %v3787_v8, %v381_v24 }
 0x50e   :  { %457 = vrot.lane.b32.xlu1 %v455_v23, %s4041_s25  ;;  %v533_v26 = vpack.c.bf16 %v455_v23, %v455_v23 }
 0x50f   :  { %461 = vrot.lane.b32.xlu0 %v383_v25, %s4040_s24  ;;  %v168_v25 = vadd.f32 %v4237_v41, %v4169_v10 }
 0x512   :  { %535 = vrot.lane.b32.xlu1 %v533_v26, %s4041_s25 }
 0x580   :  { %v458_v28 = vpop.permute.xlu1 %457 }
 0x581   :  { %v462_v29 = vpop.permute.xlu0 %461 }
 0x582   :  { %v464_v32 = vsel %vm109_vm1, %v458_v28, %v462_v29 }
 0x583   :  { %v465_v34 = vpack.c.bf16 %v464_v32, %v464_v32 }
 0x584   :  { %v536_v35 = vpop.permute.xlu1 %535 }
 0x585   :  { %3378 = vmatmul.mubr.msk.bf16.vlgmr.msra.gmra.mxu1 %vm316_vm2, %v465_v34  ;;  %3386 = vmatmul.mubr.msk.bf16.vlgmr.msra.gmra.mxu0 %vm109_vm1, %v536_v35 }
 0x586   :  { %3390 = vmatpush3.bf16.msra.mxu0 %v4180_v27  ;;  %3402 = vmatpush3.bf16.msra.mxu1 %v4133_v2 }
 0x587   :  { %3391 = vmatprep.subr.bf16.mxu0 %v4037_v1  ;;  %3403 = vmatprep.subr.bf16.mxu1 %v4037_v1 }
 0x588   :  { %3397 = vmatprep.mubr.msk.bf16.mxu0 %vm4038_vm0, %v4037_v1  ;;  %3405 = vmatprep.mubr.msk.bf16.mxu1 %vm4038_vm0, %v4037_v1 }
 0x58a   :  { %3392 = vmatpush3.bf16.msra.mxu0 %v4192_v30  ;;  %3404 = vmatpush3.bf16.msra.mxu1 %v4144_v4 }
 0x58b   :  { %3393 = vmatprep.subr.bf16.mxu0 %v4037_v1  ;;  %3409 = vmatprep.subr.bf16.mxu1 %v4037_v1 }
 0x58e   :  { %3394 = vmatpush3.bf16.msra.mxu0 %v4203_v31 }
 0x58f   :  { %3395 = vmatprep.subr.bf16.mxu0 %v4037_v1 }
 0x592   :  { %3396 = vmatpush3.bf16.msra.mxu0 %v4212_v33 }
 0x593   :  { %3421 = vmatprep.subr.bf16.mxu0 %v4037_v1 }
 0x645   :  { %v503_v37 = vpop.f32.mrf.mxu1  ;;  %v574_v38 = vpop.f32.mrf.mxu0 }
 0x646   :  { %v504_v39 = vadd.f32 %v4251_v48, %v503_v37  ;;  %v580_v40 = vadd.f32 %v574_v38, %v165_v36 }
 0x647   :  { %v3379_v42 = vpop.f32.mrf.mxu1  ;;  %v3387_v47 = vpop.f32.mrf.mxu0 }
 0x648   :  { %3792 = vtanh.f32 %v504_v39  ;;  %v3091_v9 = vmul.f32 -1.442695, %v504_v39  ;;  %v3093_v55 = vmul.f32 -1.442695, %v580_v40 }
 0x649   :  { %3794 = vtanh.f32 %v580_v40  ;;  %v506_v49 = vpop.f32.mrf.mxu1  ;;  %v577_v50 = vpop.f32.mrf.mxu0 }
 0x64a   :  { %3796 = vpow2.f32 %v3091_v9 }
 0x64b   :  { %v3380_v51 = vpop.f32.mrf.mxu1  ;;  %v3388_v52 = vpop.f32.mrf.mxu0  ;;  %3798 = vpow2.f32 %v3093_v55 }
 0x655   :  { %v3793_v53 = vpop.eup %3792 }
 0x656   :  { %v3795_v54 = vpop.eup %3794  ;;  %518 = vrot.lane.b32.xlu0 %v3793_v53, %s4040_s24 }
 0x657   :  { %590 = vrot.lane.b32.xlu1 %v3795_v54, %s4040_s24  ;;  %v3797_v56 = vpop.eup %3796 }
 0x658   :  { %v3799_v57 = vpop.eup %3798  ;;  %v512_v58 = vadd.f32 1.0, %v3797_v56 }
 0x659   :  { %v584_v59 = vadd.f32 1.0, %v3799_v57 }
 0x65a   :  { %3800 = vrcp.f32 %v512_v58 }
 0x65b   :  { %3802 = vrcp.f32 %v584_v59 }
 0x667   :  { %v3801_v60 = vpop.eup %3800 }
 0x668   :  { %v3803_v62 = vpop.eup %3802  ;;  %v516_v5 = vmul.f32 %v3801_v60, %v4261_v19 }
 0x669   :  { %v588_v6 = vmul.f32 %v3803_v62, %v4259_v17 }
 0x6c8   :  { %v519_v61 = vpop.permute.xlu0 %518 }
 0x6c9   :  { %v591_v63 = vpop.permute.xlu1 %590  ;;  %v521_v0 = vmul.f32 %v3801_v60, %v519_v61 }
 0x6ca   :  { %v593_v3 = vmul.f32 %v3803_v62, %v591_v63 }
 0x6cb   :  { %523 = vrot.lane.b32.xlu0 %v521_v0, %s4041_s25 }
 0x6cc   :  { %595 = vrot.lane.b32.xlu1 %v593_v3, %s4041_s25 }
 0x73d   :  { %v524_v7 = vpop.permute.xlu0 %523 }
 0x73e   :  { %v596_v8 = vpop.permute.xlu1 %595  ;;  %v4298_v11 = vadd.f32 %v524_v7, %v516_v5 }
 0x73f   :  { %v4300_v12 = vadd.f32 %v596_v8, %v588_v6 }
 0x740   :  { %3804 = vtanh.f32 %v4298_v11 }
 0x741   :  { %3806 = vtanh.f32 %v4300_v12 }
 0x74d   :  { %v3805_v13 = vpop.eup %3804 }
 0x74e   :  { %v3807_v14 = vpop.eup %3806  ;;  %529 = vrot.lane.b32.xlu0 %v3805_v13, %s4040_s24 }
 0x74f   :  { %601 = vrot.lane.b32.xlu1 %v3807_v14, %s4040_s24 }
 0x7c0   :  { %v530_v15 = vpop.permute.xlu0 %529 }
 0x7c1   :  { %v602_v16 = vpop.permute.xlu1 %601  ;;  %v532_v18 = vmul.f32 %v3801_v60, %v530_v15 }
 0x7c2   :  { %v604_v17 = vmul.f32 %v3803_v62, %v602_v16 }
 0x7c3   :  { %610 = vrot.lane.b32.xlu1 %v532_v18, %s4040_s24  ;;  %v173_v18 = vadd.f32 %v4169_v10, %v4241_v44 }
 0x7c4   :  { %606 = vrot.lane.b32.xlu0 %v604_v17, %s4041_s25  ;;  %v682_v19 = vpack.c.bf16 %v604_v17, %v604_v17 }
 0x7c8   :  { %684 = vrot.lane.b32.xlu0 %v682_v19, %s4041_s25 }
 0x835   :  { %v611_v20 = vpop.permute.xlu1 %610 }
 0x836   :  { %v607_v21 = vpop.permute.xlu0 %606 }
 0x837   :  { %v613_v22 = vsel %vm109_vm1, %v607_v21, %v611_v20 }
 0x838   :  { %v614_v23 = vpack.c.bf16 %v613_v22, %v613_v22 }
 0x83a   :  { %3398 = vmatmul.mubr.msk.bf16.vlgmr.msra.gmra.mxu0 %vm316_vm2, %v614_v23  ;;  %v685_v24 = vpop.permute.xlu0 %684 }
 0x83b   :  { %3406 = vmatmul.mubr.msk.bf16.vlgmr.msra.gmra.mxu1 %vm109_vm1, %v685_v24  ;;  %3422 = vmatpush3.bf16.msra.mxu0 %v4133_v2 }
 0x83c   :  { %3410 = vmatpush3.bf16.msra.mxu1 %v4180_v27  ;;  %3423 = vmatprep.subr.bf16.mxu0 %v4037_v1 }
 0x83d   :  { %3411 = vmatprep.subr.bf16.mxu1 %v4037_v1  ;;  %3417 = vmatprep.mubr.msk.bf16.mxu1 %vm4038_vm0, %v4037_v1 }
 0x83e   :  { %3425 = vmatprep.mubr.msk.bf16.mxu0 %vm4038_vm0, %v4037_v1 }
 0x83f   :  { %3424 = vmatpush3.bf16.msra.mxu0 %v4144_v4 }
 0x840   :  { %3412 = vmatpush3.bf16.msra.mxu1 %v4192_v30  ;;  %3429 = vmatprep.subr.bf16.mxu0 %v4037_v1 }
 0x841   :  { %3413 = vmatprep.subr.bf16.mxu1 %v4037_v1 }
 0x844   :  { %3414 = vmatpush3.bf16.msra.mxu1 %v4203_v31 }
 0x845   :  { %3415 = vmatprep.subr.bf16.mxu1 %v4037_v1 }
 0x848   :  { %3416 = vmatpush3.bf16.msra.mxu1 %v4212_v33 }
 0x849   :  { %3441 = vmatprep.subr.bf16.mxu1 %v4037_v1 }
 0x8fa   :  { %v652_v26 = vpop.f32.mrf.mxu0 }
 0x8fb   :  { %v653_v28 = vadd.f32 %v4251_v48, %v652_v26  ;;  %v723_v29 = vpop.f32.mrf.mxu1 }
 0x8fc   :  { %v729_v32 = vadd.f32 %v723_v29, %v168_v25  ;;  %v3399_v34 = vpop.f32.mrf.mxu0 }
 0x8fd   :  { %3808 = vtanh.f32 %v653_v28  ;;  %v3407_v35 = vpop.f32.mrf.mxu1  ;;  %v3095_v41 = vmul.f32 -1.442695, %v653_v28 }
 0x8fe   :  { %3810 = vtanh.f32 %v729_v32  ;;  %v655_v36 = vpop.f32.mrf.mxu0  ;;  %v3097_v47 = vmul.f32 -1.442695, %v729_v32 }
 0x8ff   :  { %v726_v37 = vpop.f32.mrf.mxu1  ;;  %3812 = vpow2.f32 %v3095_v41 }
 0x900   :  { %v3400_v38 = vpop.f32.mrf.mxu0  ;;  %3814 = vpow2.f32 %v3097_v47 }
 0x901   :  { %v3408_v39 = vpop.f32.mrf.mxu1 }
 0x90a   :  { %v3809_v40 = vpop.eup %3808 }
 0x90b   :  { %v3811_v42 = vpop.eup %3810  ;;  %667 = vrot.lane.b32.xlu1 %v3809_v40, %s4040_s24 }
 0x90c   :  { %739 = vrot.lane.b32.xlu0 %v3811_v42, %s4040_s24  ;;  %v3813_v49 = vpop.eup %3812 }
 0x90d   :  { %v3815_v50 = vpop.eup %3814  ;;  %v661_v51 = vadd.f32 1.0, %v3813_v49 }
 0x90e   :  { %v733_v52 = vadd.f32 1.0, %v3815_v50 }
 0x90f   :  { %3816 = vrcp.f32 %v661_v51 }
 0x910   :  { %3818 = vrcp.f32 %v733_v52 }
 0x91c   :  { %v3817_v53 = vpop.eup %3816 }
 0x91d   :  { %v3819_v9 = vpop.eup %3818  ;;  %v665_v58 = vmul.f32 %v3817_v53, %v4298_v11 }
 0x91e   :  { %v737_v60 = vmul.f32 %v3819_v9, %v4300_v12 }
 0x97d   :  { %v668_v54 = vpop.permute.xlu1 %667 }
 0x97e   :  { %v670_v55 = vmul.f32 %v3817_v53, %v668_v54  ;;  %v740_v56 = vpop.permute.xlu0 %739 }
 0x97f   :  { %v742_v57 = vmul.f32 %v3819_v9, %v740_v56 }
 0x980   :  { %672 = vrot.lane.b32.xlu1 %v670_v55, %s4041_s25 }
 0x981   :  { %744 = vrot.lane.b32.xlu0 %v742_v57, %s4041_s25 }
 0x9f2   :  { %v673_v59 = vpop.permute.xlu1 %672 }
 0x9f3   :  { %v4337_v61 = vadd.f32 %v673_v59, %v665_v58  ;;  %v745_v62 = vpop.permute.xlu0 %744 }
 0x9f4   :  { %v4339_v63 = vadd.f32 %v745_v62, %v737_v60 }
 0x9f5   :  { %3820 = vtanh.f32 %v4337_v61 }
 0x9f6   :  { %3822 = vtanh.f32 %v4339_v63 }
 0xa02   :  { %v3821_v0 = vpop.eup %3820 }
 0xa03   :  { %v3823_v3 = vpop.eup %3822  ;;  %678 = vrot.lane.b32.xlu1 %v3821_v0, %s4040_s24 }
 0xa04   :  { %750 = vrot.lane.b32.xlu0 %v3823_v3, %s4040_s24 }
 0xa75   :  { %v679_v5 = vpop.permute.xlu1 %678 }
 0xa76   :  { %v681_v6 = vmul.f32 %v3817_v53, %v679_v5  ;;  %v751_v7 = vpop.permute.xlu0 %750 }
 0xa77   :  { %v753_v8 = vmul.f32 %v3819_v9, %v751_v7 }
 0xa78   :  { %759 = vrot.lane.b32.xlu0 %v681_v6, %s4040_s24  ;;  %v176_v6 = vadd.f32 %v4169_v10, %v4245_v46 }
 0xa79   :  { %755 = vrot.lane.b32.xlu1 %v753_v8, %s4041_s25  ;;  %v831_v11 = vpack.c.bf16 %v753_v8, %v753_v8 }
 0xa7d   :  { %833 = vrot.lane.b32.xlu1 %v831_v11, %s4041_s25 }
 0xaea   :  { %v760_v12 = vpop.permute.xlu0 %759 }
 0xaeb   :  { %v756_v13 = vpop.permute.xlu1 %755 }
 0xaec   :  { %v762_v14 = vsel %vm109_vm1, %v756_v13, %v760_v12 }
 0xaed   :  { %v763_v15 = vpack.c.bf16 %v762_v14, %v762_v14 }
 0xaef   :  { %v834_v16 = vpop.permute.xlu1 %833  ;;  %3418 = vmatmul.mubr.msk.bf16.vlgmr.msra.gmra.mxu1 %vm316_vm2, %v763_v15 }
 0xaf0   :  { %3426 = vmatmul.mubr.msk.bf16.vlgmr.msra.gmra.mxu0 %vm109_vm1, %v834_v16  ;;  %3442 = vmatpush3.bf16.msra.mxu1 %v4133_v2 }
 0xaf1   :  { %3430 = vmatpush3.bf16.msra.mxu0 %v4180_v27  ;;  %3443 = vmatprep.subr.bf16.mxu1 %v4037_v1 }
 0xaf2   :  { %3431 = vmatprep.subr.bf16.mxu0 %v4037_v1  ;;  %3437 = vmatprep.mubr.msk.bf16.mxu0 %vm4038_vm0, %v4037_v1 }
 0xaf3   :  { %3445 = vmatprep.mubr.msk.bf16.mxu1 %vm4038_vm0, %v4037_v1 }
 0xaf4   :  { %3444 = vmatpush3.bf16.msra.mxu1 %v4144_v4 }
 0xaf5   :  { %3432 = vmatpush3.bf16.msra.mxu0 %v4192_v30  ;;  %3449 = vmatprep.subr.bf16.mxu1 %v4037_v1 }
 0xaf6   :  { %3433 = vmatprep.subr.bf16.mxu0 %v4037_v1 }
 0xaf9   :  { %3434 = vmatpush3.bf16.msra.mxu0 %v4203_v31 }
 0xafa   :  { %3435 = vmatprep.subr.bf16.mxu0 %v4037_v1 }
 0xafd   :  { %3436 = vmatpush3.bf16.msra.mxu0 %v4212_v33 }
 0xafe   :  { %3461 = vmatprep.subr.bf16.mxu0 %v4037_v1 }
 0xbaf   :  { %v801_v17 = vpop.f32.mrf.mxu1 }
 0xbb0   :  { %v802_v19 = vadd.f32 %v4251_v48, %v801_v17  ;;  %v872_v20 = vpop.f32.mrf.mxu0 }
 0xbb1   :  { %v878_v21 = vadd.f32 %v872_v20, %v173_v18  ;;  %v3419_v22 = vpop.f32.mrf.mxu1 }
 0xbb2   :  { %3824 = vtanh.f32 %v802_v19  ;;  %v3427_v23 = vpop.f32.mrf.mxu0  ;;  %v3099_v44 = vmul.f32 -1.442695, %v802_v19 }
 0xbb3   :  { %3826 = vtanh.f32 %v878_v21  ;;  %v804_v24 = vpop.f32.mrf.mxu1  ;;  %v3101_v34 = vmul.f32 -1.442695, %v878_v21 }
 0xbb4   :  { %v875_v25 = vpop.f32.mrf.mxu0  ;;  %3828 = vpow2.f32 %v3099_v44 }
 0xbb5   :  { %v3420_v26 = vpop.f32.mrf.mxu1  ;;  %3830 = vpow2.f32 %v3101_v34 }
 0xbb6   :  { %v3428_v28 = vpop.f32.mrf.mxu0 }
 0xbbf   :  { %v3825_v29 = vpop.eup %3824 }
 0xbc0   :  { %v3827_v32 = vpop.eup %3826  ;;  %816 = vrot.lane.b32.xlu0 %v3825_v29, %s4040_s24 }
 0xbc1   :  { %888 = vrot.lane.b32.xlu1 %v3827_v32, %s4040_s24  ;;  %v3829_v35 = vpop.eup %3828 }
 0xbc2   :  { %v3831_v36 = vpop.eup %3830  ;;  %v810_v37 = vadd.f32 1.0, %v3829_v35 }
 0xbc3   :  { %v882_v38 = vadd.f32 1.0, %v3831_v36 }
 0xbc4   :  { %3832 = vrcp.f32 %v810_v37 }
 0xbc5   :  { %3834 = vrcp.f32 %v882_v38 }
 0xbd1   :  { %v3833_v39 = vpop.eup %3832 }
 0xbd2   :  { %v3835_v42 = vpop.eup %3834  ;;  %v814_v50 = vmul.f32 %v3833_v39, %v4337_v61 }
 0xbd3   :  { %v886_v52 = vmul.f32 %v3835_v42, %v4339_v63 }
 0xc32   :  { %v817_v40 = vpop.permute.xlu0 %816 }
 0xc33   :  { %v819_v41 = vmul.f32 %v3833_v39, %v817_v40  ;;  %v889_v47 = vpop.permute.xlu1 %888 }
 0xc34   :  { %v891_v49 = vmul.f32 %v3835_v42, %v889_v47 }
 0xc35   :  { %821 = vrot.lane.b32.xlu0 %v819_v41, %s4041_s25 }
 0xc36   :  { %893 = vrot.lane.b32.xlu1 %v891_v49, %s4041_s25 }
 0xca7   :  { %v822_v51 = vpop.permute.xlu0 %821 }
 0xca8   :  { %v4376_v53 = vadd.f32 %v822_v51, %v814_v50  ;;  %v894_v54 = vpop.permute.xlu1 %893 }
 0xca9   :  { %v4378_v9 = vadd.f32 %v894_v54, %v886_v52 }
 0xcaa   :  { %3836 = vtanh.f32 %v4376_v53 }
 0xcab   :  { %3838 = vtanh.f32 %v4378_v9 }
 0xcb7   :  { %v3837_v55 = vpop.eup %3836 }
 0xcb8   :  { %v3839_v56 = vpop.eup %3838  ;;  %827 = vrot.lane.b32.xlu0 %v3837_v55, %s4040_s24 }
 0xcb9   :  { %899 = vrot.lane.b32.xlu1 %v3839_v56, %s4040_s24 }
 0xd2a   :  { %v828_v57 = vpop.permute.xlu0 %827 }
 0xd2b   :  { %v830_v58 = vmul.f32 %v3833_v39, %v828_v57  ;;  %v900_v59 = vpop.permute.xlu1 %899 }
 0xd2c   :  { %v902_v60 = vmul.f32 %v3835_v42, %v900_v59 }
 0xd2d   :  { %908 = vrot.lane.b32.xlu1 %v830_v58, %s4040_s24 }
 0xd2e   :  { %904 = vrot.lane.b32.xlu0 %v902_v60, %s4041_s25  ;;  %v980_v61 = vpack.c.bf16 %v902_v60, %v902_v60 }
 0xd32   :  { %982 = vrot.lane.b32.xlu0 %v980_v61, %s4041_s25 }
 0xd9f   :  { %v909_v62 = vpop.permute.xlu1 %908 }
 0xda0   :  { %v905_v63 = vpop.permute.xlu0 %904 }
 0xda1   :  { %v911_v0 = vsel %vm109_vm1, %v905_v63, %v909_v62 }
 0xda2   :  { %v912_v3 = vpack.c.bf16 %v911_v0, %v911_v0 }
 0xda4   :  { %3438 = vmatmul.mubr.msk.bf16.vlgmr.msra.gmra.mxu0 %vm316_vm2, %v912_v3  ;;  %v983_v5 = vpop.permute.xlu0 %982 }
 0xda5   :  { %3446 = vmatmul.mubr.msk.bf16.vlgmr.msra.gmra.mxu1 %vm109_vm1, %v983_v5  ;;  %3462 = vmatpush3.bf16.msra.mxu0 %v4133_v2 }
 0xda6   :  { %3450 = vmatpush3.bf16.msra.mxu1 %v4180_v27  ;;  %3463 = vmatprep.subr.bf16.mxu0 %v4037_v1 }
 0xda7   :  { %3451 = vmatprep.subr.bf16.mxu1 %v4037_v1  ;;  %3457 = vmatprep.mubr.msk.bf16.mxu1 %vm4038_vm0, %v4037_v1 }
 0xda8   :  { %3465 = vmatprep.mubr.msk.bf16.mxu0 %vm4038_vm0, %v4037_v1 }
 0xda9   :  { %3464 = vmatpush3.bf16.msra.mxu0 %v4144_v4 }
 0xdaa   :  { %3452 = vmatpush3.bf16.msra.mxu1 %v4192_v30  ;;  %3469 = vmatprep.subr.bf16.mxu0 %v4037_v1 }
 0xdab   :  { %3453 = vmatprep.subr.bf16.mxu1 %v4037_v1 }
 0xdae   :  { %3454 = vmatpush3.bf16.msra.mxu1 %v4203_v31 }
 0xdaf   :  { %3455 = vmatprep.subr.bf16.mxu1 %v4037_v1 }
 0xdb2   :  { %3456 = vmatpush3.bf16.msra.mxu1 %v4212_v33 }
 0xdb3   :  { %3481 = vmatprep.subr.bf16.mxu1 %v4037_v1 }
 0xe64   :  { %v950_v7 = vpop.f32.mrf.mxu0 }
 0xe65   :  { %v951_v8 = vadd.f32 %v4251_v48, %v950_v7  ;;  %v1021_v11 = vpop.f32.mrf.mxu1 }
 0xe66   :  { %v1027_v12 = vadd.f32 %v1021_v11, %v176_v6  ;;  %v3439_v13 = vpop.f32.mrf.mxu0 }
 0xe67   :  { %3840 = vtanh.f32 %v951_v8  ;;  %v3447_v14 = vpop.f32.mrf.mxu1  ;;  %v3103_v46 = vmul.f32 -1.442695, %v951_v8 }
 0xe68   :  { %3842 = vtanh.f32 %v1027_v12  ;;  %v953_v15 = vpop.f32.mrf.mxu0  ;;  %v3105_v21 = vmul.f32 -1.442695, %v1027_v12 }
 0xe69   :  { %v1024_v16 = vpop.f32.mrf.mxu1  ;;  %3844 = vpow2.f32 %v3103_v46 }
 0xe6a   :  { %v3440_v18 = vpop.f32.mrf.mxu0  ;;  %3846 = vpow2.f32 %v3105_v21 }
 0xe6b   :  { %v3448_v17 = vpop.f32.mrf.mxu1 }
 0xe74   :  { %v3841_v19 = vpop.eup %3840 }
 0xe75   :  { %v3843_v20 = vpop.eup %3842  ;;  %965 = vrot.lane.b32.xlu1 %v3841_v19, %s4040_s24 }
 0xe76   :  { %1037 = vrot.lane.b32.xlu0 %v3843_v20, %s4040_s24  ;;  %v3845_v22 = vpop.eup %3844 }
 0xe77   :  { %v3847_v23 = vpop.eup %3846  ;;  %v959_v24 = vadd.f32 1.0, %v3845_v22 }
 0xe78   :  { %v1031_v25 = vadd.f32 1.0, %v3847_v23 }
 0xe79   :  { %3848 = vrcp.f32 %v959_v24 }
 0xe7a   :  { %3850 = vrcp.f32 %v1031_v25 }
 0xe86   :  { %v3849_v26 = vpop.eup %3848 }
 0xe87   :  { %v3851_v29 = vpop.eup %3850  ;;  %v963_v35 = vmul.f32 %v3849_v26, %v4376_v53 }
 0xe88   :  { %v1035_v37 = vmul.f32 %v3851_v29, %v4378_v9 }
 0xee7   :  { %v966_v28 = vpop.permute.xlu1 %965 }
 0xee8   :  { %v968_v32 = vmul.f32 %v3849_v26, %v966_v28  ;;  %v1038_v44 = vpop.permute.xlu0 %1037 }
 0xee9   :  { %v1040_v34 = vmul.f32 %v3851_v29, %v1038_v44 }
 0xeea   :  { %970 = vrot.lane.b32.xlu1 %v968_v32, %s4041_s25 }
 0xeeb   :  { %1042 = vrot.lane.b32.xlu0 %v1040_v34, %s4041_s25 }
 0xf5c   :  { %v971_v36 = vpop.permute.xlu1 %970 }
 0xf5d   :  { %v4415_v38 = vadd.f32 %v971_v36, %v963_v35  ;;  %v1043_v39 = vpop.permute.xlu0 %1042 }
 0xf5e   :  { %v4417_v40 = vadd.f32 %v1043_v39, %v1035_v37 }
 0xf5f   :  { %3852 = vtanh.f32 %v4415_v38 }
 0xf60   :  { %3854 = vtanh.f32 %v4417_v40 }
 0xf6c   :  { %v3853_v42 = vpop.eup %3852 }
 0xf6d   :  { %v3855_v41 = vpop.eup %3854  ;;  %976 = vrot.lane.b32.xlu1 %v3853_v42, %s4040_s24 }
 0xf6e   :  { %1048 = vrot.lane.b32.xlu0 %v3855_v41, %s4040_s24 }
 0xfdf   :  { %v977_v47 = vpop.permute.xlu1 %976 }
 0xfe0   :  { %v979_v49 = vmul.f32 %v3849_v26, %v977_v47  ;;  %v1049_v50 = vpop.permute.xlu0 %1048 }
 0xfe1   :  { %v1051_v51 = vmul.f32 %v3851_v29, %v1049_v50 }
 0xfe2   :  { %1057 = vrot.lane.b32.xlu0 %v979_v49, %s4040_s24 }
 0xfe3   :  { %1053 = vrot.lane.b32.xlu1 %v1051_v51, %s4041_s25  ;;  %v1129_v52 = vpack.c.bf16 %v1051_v51, %v1051_v51 }
 0xfe7   :  { %1131 = vrot.lane.b32.xlu1 %v1129_v52, %s4041_s25 }
0x1054   :  { %v1058_v53 = vpop.permute.xlu0 %1057 }
0x1055   :  { %v1054_v54 = vpop.permute.xlu1 %1053 }
0x1056   :  { %v1060_v9 = vsel %vm109_vm1, %v1054_v54, %v1058_v53 }
0x1057   :  { %v1061_v55 = vpack.c.bf16 %v1060_v9, %v1060_v9 }
0x1059   :  { %v1132_v56 = vpop.permute.xlu1 %1131  ;;  %3458 = vmatmul.mubr.msk.bf16.vlgmr.msra.gmra.mxu1 %vm316_vm2, %v1061_v55 }
0x105a   :  { %3466 = vmatmul.mubr.msk.bf16.vlgmr.msra.gmra.mxu0 %vm109_vm1, %v1132_v56  ;;  %3482 = vmatpush3.bf16.msra.mxu1 %v4133_v2  ;;  %v181_v2 = vadd.f32 %v4239_v43, %v4169_v10 }
0x105b   :  { %3470 = vmatpush3.bf16.msra.mxu0 %v4180_v27  ;;  %3483 = vmatprep.subr.bf16.mxu1 %v4037_v1 }
0x105c   :  { %3471 = vmatprep.subr.bf16.mxu0 %v4037_v1  ;;  %3477 = vmatprep.mubr.msk.bf16.mxu0 %vm4038_vm0, %v4037_v1 }
0x105d   :  { %3485 = vmatprep.mubr.msk.bf16.mxu1 %vm4038_vm0, %v4037_v1 }
0x105e   :  { %3484 = vmatpush3.bf16.msra.mxu1 %v4144_v4 }
0x105f   :  { %3472 = vmatpush3.bf16.msra.mxu0 %v4192_v30  ;;  %3489 = vmatprep.subr.bf16.mxu1 %v4037_v1 }
0x1060   :  { %3473 = vmatprep.subr.bf16.mxu0 %v4037_v1 }
0x1063   :  { %3474 = vmatpush3.bf16.msra.mxu0 %v4203_v31 }
0x1064   :  { %3475 = vmatprep.subr.bf16.mxu0 %v4037_v1 }
0x1067   :  { %3476 = vmatpush3.bf16.msra.mxu0 %v4212_v33 }
0x1068   :  { %3501 = vmatprep.subr.bf16.mxu0 %v4037_v1 }
0x1119   :  { %v1099_v57 = vpop.f32.mrf.mxu1 }
0x111a   :  { %v1100_v4 = vadd.f32 %v4251_v48, %v1099_v57  ;;  %v1170_v58 = vpop.f32.mrf.mxu0 }
0x111b   :  { %v1176_v59 = vadd.f32 %v1170_v58, %v181_v2  ;;  %v3459_v60 = vpop.f32.mrf.mxu1 }
0x111c   :  { %3856 = vtanh.f32 %v1100_v4  ;;  %v3467_v61 = vpop.f32.mrf.mxu0  ;;  %v3107_v10 = vmul.f32 -1.442695, %v1100_v4 }
0x111d   :  { %3858 = vtanh.f32 %v1176_v59  ;;  %v1102_v62 = vpop.f32.mrf.mxu1  ;;  %v3109_v43 = vmul.f32 -1.442695, %v1176_v59 }
0x111e   :  { %v1173_v63 = vpop.f32.mrf.mxu0  ;;  %3860 = vpow2.f32 %v3107_v10 }
0x111f   :  { %v3460_v0 = vpop.f32.mrf.mxu1  ;;  %3862 = vpow2.f32 %v3109_v43  ;;  %v4502_v43 = vld [vmem:[%s5091_s1] sm:$0xff] }
0x1120   :  { %v3468_v3 = vpop.f32.mrf.mxu0 }
0x1129   :  { %v3857_v5 = vpop.eup %3856 }
0x112a   :  { %v3859_v6 = vpop.eup %3858  ;;  %1114 = vrot.lane.b32.xlu0 %v3857_v5, %s4040_s24 }
0x112b   :  { %1186 = vrot.lane.b32.xlu1 %v3859_v6, %s4040_s24  ;;  %v3861_v7 = vpop.eup %3860 }
0x112c   :  { %v3863_v8 = vpop.eup %3862  ;;  %v1108_v11 = vadd.f32 1.0, %v3861_v7  ;;  %v4507_v7 = vld [vmem:[%s5098_s8 + $0x10] sm:$0xff]  }
0x112d   :  { %v1180_v12 = vadd.f32 1.0, %v3863_v8  ;;  %v4515_v8 = vld [vmem:[%s5098_s8 + $0x8] sm:$0xff]  }
0x112e   :  { %3864 = vrcp.f32 %v1108_v11  ;;  %v4522_v11 = vld [vmem:[%s5098_s8] sm:$0xff]  }
0x112f   :  { %3866 = vrcp.f32 %v1180_v12 }
0x113b   :  { %v3865_v13 = vpop.eup %3864 }
0x113c   :  { %v3867_v15 = vpop.eup %3866  ;;  %v1112_v19 = vmul.f32 %v3865_v13, %v4415_v38 }
0x113d   :  { %v1184_v46 = vmul.f32 %v3867_v15, %v4417_v40 }
0x119c   :  { %v1115_v14 = vpop.permute.xlu0 %1114 }
0x119d   :  { %v1117_v16 = vmul.f32 %v3865_v13, %v1115_v14  ;;  %v1187_v18 = vpop.permute.xlu1 %1186 }
0x119e   :  { %v1189_v17 = vmul.f32 %v3867_v15, %v1187_v18 }
0x119f   :  { %1119 = vrot.lane.b32.xlu0 %v1117_v16, %s4041_s25  ;;  %v1441_v16 = vlaneseq }
0x11a0   :  { %1191 = vrot.lane.b32.xlu1 %v1189_v17, %s4041_s25 }
0x11a1   :  { %v4529_v17 = vand.u32 127, %v1441_v16 }
0x1211   :  { %v1120_v20 = vpop.permute.xlu0 %1119 }
0x1212   :  { %v4454_v21 = vadd.f32 %v1120_v20, %v1112_v19  ;;  %v1192_v22 = vpop.permute.xlu1 %1191 }
0x1213   :  { %v4456_v23 = vadd.f32 %v1192_v22, %v1184_v46 }
0x1214   :  { %3868 = vtanh.f32 %v4454_v21 }
0x1215   :  { %3870 = vtanh.f32 %v4456_v23 }
0x1221   :  { %v3869_v24 = vpop.eup %3868 }
0x1222   :  { %v3871_v25 = vpop.eup %3870  ;;  %1125 = vrot.lane.b32.xlu0 %v3869_v24, %s4040_s24 }
0x1223   :  { %1197 = vrot.lane.b32.xlu1 %v3871_v25, %s4040_s24 }
0x1294   :  { %v1126_v26 = vpop.permute.xlu0 %1125 }
0x1295   :  { %v1128_v28 = vmul.f32 %v3865_v13, %v1126_v26  ;;  %v1198_v29 = vpop.permute.xlu1 %1197 }
0x1296   :  { %v1200_v32 = vmul.f32 %v3867_v15, %v1198_v29 }
0x1297   :  { %1206 = vrot.lane.b32.xlu1 %v1128_v28, %s4040_s24  ;;  %v4009_v28 = vld [vmem:[%s5097_s7] ss:$0 sm:$0xff]  ;;  %s2166_s7 = scalar_select %p2165_p7, 1, 0 }
0x1298   :  { %1202 = vrot.lane.b32.xlu0 %v1200_v32, %s4041_s25  ;;  %v1278_v44 = vpack.c.bf16 %v1200_v32, %v1200_v32 }
0x129c   :  { %1280 = vrot.lane.b32.xlu0 %v1278_v44, %s4041_s25 }
0x1309   :  { %v1207_v34 = vpop.permute.xlu1 %1206 }
0x130a   :  { %v1203_v35 = vpop.permute.xlu0 %1202 }
0x130b   :  { %v1209_v36 = vsel %vm109_vm1, %v1203_v35, %v1207_v34 }
0x130c   :  { %v1210_v37 = vpack.c.bf16 %v1209_v36, %v1209_v36 }
0x130e   :  { %3478 = vmatmul.mubr.msk.bf16.vlgmr.msra.gmra.mxu0 %vm316_vm2, %v1210_v37  ;;  %v1281_v38 = vpop.permute.xlu0 %1280 }
0x130f   :  { %3486 = vmatmul.mubr.msk.bf16.vlgmr.msra.gmra.mxu1 %vm109_vm1, %v1281_v38  ;;  %3507 = vmatprep.mubr.msk.bf16.mxu0 %vm4038_vm0, %v4037_v1 }
0x1310   :  { %3490 = vmatpush3.bf16.msra.mxu1 %v4180_v27  ;;  %3497 = vmatprep.mubr.msk.bf16.mxu1 %vm4038_vm0, %v4037_v1  ;;  %v4008_v27 = vld [vmem:[%s5095_s5] ss:$0 sm:$0xff] }
0x1311   :  { %3491 = vmatprep.subr.bf16.mxu1 %v4037_v1  ;;  %v184_v39 = vadd.f32 %v4008_v27, %v4243_v45  ;;  %3502 = vmatpush3.bf16.msra.mxu0 %v4507_v7 }
0x1312   :  { %3503 = vmatprep.subr.bf16.mxu0 %v4037_v1 }
0x1314   :  { %3492 = vmatpush3.bf16.msra.mxu1 %v4192_v30 }
0x1315   :  { %3493 = vmatprep.subr.bf16.mxu1 %v4037_v1  ;;  %3504 = vmatpush3.bf16.msra.mxu0 %v4515_v8 }
0x1316   :  { %3505 = vmatprep.subr.bf16.mxu0 %v4037_v1 }
0x1318   :  { %3494 = vmatpush3.bf16.msra.mxu1 %v4203_v31 }
0x1319   :  { %3495 = vmatprep.subr.bf16.mxu1 %v4037_v1  ;;  %3506 = vmatpush3.bf16.msra.mxu0 %v4522_v11 }
0x131a   :  { %3523 = vmatprep.subr.bf16.mxu0 %v4037_v1 }
0x131c   :  { %3496 = vmatpush3.bf16.msra.mxu1 %v4212_v33 }
0x131d   :  { %3511 = vmatprep.subr.bf16.mxu1 %v4037_v1 }
0x13ce   :  { %v1248_v40 = vpop.f32.mrf.mxu0 }
0x13cf   :  { %v1249_v42 = vadd.f32 %v4251_v48, %v1248_v40  ;;  %v1319_v30 = vpop.f32.mrf.mxu1 }
0x13d0   :  { %v1325_v41 = vadd.f32 %v1319_v30, %v184_v39  ;;  %v3479_v47 = vpop.f32.mrf.mxu0 }
0x13d1   :  { %3872 = vtanh.f32 %v1249_v42  ;;  %v3487_v31 = vpop.f32.mrf.mxu1  ;;  %v3111_v45 = vmul.f32 -1.442695, %v1249_v42 }
0x13d2   :  { %3874 = vtanh.f32 %v1325_v41  ;;  %v1251_v49 = vpop.f32.mrf.mxu0  ;;  %v3113_v54 = vmul.f32 -1.442695, %v1325_v41 }
0x13d3   :  { %v1322_v50 = vpop.f32.mrf.mxu1  ;;  %3876 = vpow2.f32 %v3111_v45 }
0x13d4   :  { %v3480_v33 = vpop.f32.mrf.mxu0  ;;  %3878 = vpow2.f32 %v3113_v54 }
0x13d5   :  { %v3488_v51 = vpop.f32.mrf.mxu1 }
0x13de   :  { %v3873_v52 = vpop.eup %3872 }
0x13df   :  { %v3875_v53 = vpop.eup %3874  ;;  %1263 = vrot.lane.b32.xlu1 %v3873_v52, %s4040_s24 }
0x13e0   :  { %1335 = vrot.lane.b32.xlu0 %v3875_v53, %s4040_s24  ;;  %v3877_v48 = vpop.eup %3876 }
0x13e1   :  { %v3879_v9 = vpop.eup %3878  ;;  %v1257_v55 = vadd.f32 1.0, %v3877_v48 }
0x13e2   :  { %v1329_v56 = vadd.f32 1.0, %v3879_v9 }
0x13e3   :  { %3880 = vrcp.f32 %v1257_v55 }
0x13e4   :  { %3882 = vrcp.f32 %v1329_v56 }
0x13f0   :  { %v3881_v2 = vpop.eup %3880 }
0x13f1   :  { %v3883_v4 = vpop.eup %3882  ;;  %v1261_v61 = vmul.f32 %v3881_v2, %v4454_v21 }
0x13f2   :  { %v1333_v63 = vmul.f32 %v3883_v4, %v4456_v23 }
0x1451   :  { %v1264_v57 = vpop.permute.xlu1 %1263 }
0x1452   :  { %v1266_v58 = vmul.f32 %v3881_v2, %v1264_v57  ;;  %v1336_v59 = vpop.permute.xlu0 %1335  ;;  %v4562_v57 = vld [vmem:[%s5099_s9 + $0x10] sm:$0xff]  }
0x1453   :  { %v1338_v60 = vmul.f32 %v3883_v4, %v1336_v59 }
0x1454   :  { %1268 = vrot.lane.b32.xlu1 %v1266_v58, %s4041_s25 }
0x1455   :  { %1340 = vrot.lane.b32.xlu0 %v1338_v60, %s4041_s25  ;;  %v4579_v60 = vld [vmem:[%s5099_s9] sm:$0xff]  }
0x14c6   :  { %v1269_v62 = vpop.permute.xlu1 %1268 }
0x14c7   :  { %v4491_v0 = vadd.f32 %v1269_v62, %v1261_v61  ;;  %v1341_v3 = vpop.permute.xlu0 %1340 }
0x14c8   :  { %v4493_v5 = vadd.f32 %v1341_v3, %v1333_v63 }
0x14c9   :  { %3884 = vtanh.f32 %v4491_v0 }
0x14ca   :  { %3886 = vtanh.f32 %v4493_v5 }
0x14d6   :  { %v3885_v6 = vpop.eup %3884 }
0x14d7   :  { %v3887_v10 = vpop.eup %3886  ;;  %1274 = vrot.lane.b32.xlu1 %v3885_v6, %s4040_s24 }
0x14d8   :  { %1346 = vrot.lane.b32.xlu0 %v3887_v10, %s4040_s24 }
0x14db   :  { %1446 = vperm.xlu1 %3740, %v4502_v43  }
0x1549   :  { %v1275_v12 = vpop.permute.xlu1 %1274 }
0x154a   :  { %v1277_v13 = vmul.f32 %v3881_v2, %v1275_v12  ;;  %v1347_v14 = vpop.permute.xlu0 %1346  ;;  %v4556_v2 = vld [vmem:[%s5099_s9 + $0x18] sm:$0xff]   ;;  %v4603_v12 = vld [vmem:[%s5100_s10] ss:$0 sm:$0xff] }
0x154b   :  { %v1349_v15 = vmul.f32 %v3883_v4, %v1347_v14  ;;  %v4569_v4 = vld [vmem:[%s5099_s9 + $0x8] sm:$0xff]  }
0x154c   :  { %1355 = vrot.lane.b32.xlu1 %v1277_v13, %s4040_s24 }
0x154d   :  { %1351 = vrot.lane.b32.xlu0 %v1349_v15, %s4041_s25 }
0x1551   :  { %1451 = vrot.lane.b32.xlu0 %v1349_v15, %s4042_s29 }
0x1556   :  { %v1447_v18 = vpop.permute.xlu1 %1446 }
0x1557   :  { %vm1448_vm3 = vcmp.eq.s32.totalorder %v1447_v18, %v4529_v17 }
0x1558   :  { %v3118_v22 = vsel %vm1448_vm3, 1.0, %v4037_v1 }
0x15be   :  { %v1356_v19 = vpop.permute.xlu1 %1355 }
0x15bf   :  { %v1352_v20 = vpop.permute.xlu0 %1351 }
0x15c0   :  { %v1358_v46 = vsel %vm109_vm1, %v1352_v20, %v1356_v19 }
0x15c1   :  { %v1359_v21 = vpack.c.bf16 %v1358_v46, %v1358_v46 }
0x15c3   :  { %3498 = vmatmul.mubr.msk.bf16.vlgmr.msra.gmra.mxu1 %vm316_vm2, %v1359_v21  ;;  %v1452_v23 = vpop.permute.xlu0 %1451 }
0x15c4   :  { %v1455_v24 = vsel %vm1454_vm4, %v3118_v22, %v1452_v23  ;;  %3519 = vmatprep.mubr.msk.bf16.mxu1 %vm4038_vm0, %v4037_v1  ;;  %3512 = vmatpush3.bf16.msra.mxu1 %v4556_v2 }
0x15c5   :  { %v1456_v25 = vpack.c.bf16 %v1455_v24, %v1455_v24  ;;  %3513 = vmatprep.subr.bf16.mxu1 %v4037_v1 }
0x15c7   :  { %3508 = vmatmul.mubr.msk.bf16.vlgmr.msra.gmra.mxu0 %vm1481_vm5, %v1456_v25 }
0x15c8   :  { %3527 = vmatprep.mubr.msk.bf16.mxu0 %vm4038_vm0, %v4037_v1  ;;  %3514 = vmatpush3.bf16.msra.mxu1 %v4562_v57 }
0x15c9   :  { %3515 = vmatprep.subr.bf16.mxu1 %v4037_v1 }
0x15cc   :  { %3516 = vmatpush3.bf16.msra.mxu1 %v4569_v4 }
0x15cd   :  { %3517 = vmatprep.subr.bf16.mxu1 %v4037_v1 }
0x15d0   :  { %3518 = vmatpush3.bf16.msra.mxu1 %v4579_v60 }
0x15d1   :  { %3541 = vmatprep.subr.bf16.mxu1 %v4037_v1 }
0x1683   :  { %v1397_v26 = vpop.f32.mrf.mxu1 }
0x1684   :  { %v1398_v29 = vadd.f32 %v4009_v28, %v1397_v26 }
0x1685   :  { %v3499_v32 = vpop.f32.mrf.mxu1 }
0x1686   :  { %3888 = vtanh.f32 %v1398_v29  ;;  %v3115_v40 = vmul.f32 -1.442695, %v1398_v29  ;;  %v4614_v29 = vld [vmem:[%s5101_s11 + $0x8] sm:$0xff]   ;;  %v4620_v32 = vld [vmem:[%s5101_s11] sm:$0xff]  }
0x1687   :  { %v1400_v44 = vpop.f32.mrf.mxu1  ;;  %v1519_v34 = vpop.f32.mrf.mxu0  ;;  %3524 = vmatpush3.bf16.msra.mxu0 %v4614_v29 }
0x1688   :  { %3890 = vtanh.f32 %v1519_v34  ;;  %v3123_v42 = vmul.f32 -1.442695, %v1519_v34  ;;  %3525 = vmatprep.subr.bf16.mxu0 %v4037_v1 }
0x1689   :  { %v3500_v35 = vpop.f32.mrf.mxu1  ;;  %v3509_v36 = vpop.f32.mrf.mxu0  ;;  %3892 = vpow2.f32 %v3115_v40 }
0x168a   :  { %3894 = vpow2.f32 %v3123_v42 }
0x168b   :  { %v1522_v37 = vpop.f32.mrf.mxu0  ;;  %3526 = vmatpush3.bf16.msra.mxu0 %v4620_v32 }
0x168c   :  { %3531 = vmatprep.subr.bf16.mxu0 %v4037_v1 }
0x168d   :  { %v3510_v38 = vpop.f32.mrf.mxu0 }
0x168e   :  { %v4643_v38 = vld [vmem:[%s5102_s12] ss:$0 sm:$0xff] }
0x1693   :  { %v3889_v27 = vpop.eup %3888 }
0x1694   :  { %1412 = vrot.lane.b32.xlu1 %v3889_v27, %s4040_s24 }
0x1695   :  { %v3891_v39 = vpop.eup %3890 }
0x1696   :  { %1534 = vrot.lane.b32.xlu0 %v3891_v39, %s4040_s24  ;;  %v3893_v30 = vpop.eup %3892 }
0x1697   :  { %v3895_v41 = vpop.eup %3894  ;;  %v1406_v47 = vadd.f32 1.0, %v3893_v30 }
0x1698   :  { %v1528_v31 = vadd.f32 1.0, %v3895_v41 }
0x1699   :  { %3896 = vrcp.f32 %v1406_v47  ;;  %v4653_v47 = vcvt.s32.f32 %v4529_v17 }
0x169a   :  { %3898 = vrcp.f32 %v1528_v31 }
0x16a6   :  { %v3897_v49 = vpop.eup %3896 }
0x16a7   :  { %v3899_v51 = vpop.eup %3898  ;;  %v1410_v45 = vmul.f32 %v3897_v49, %v4491_v0 }
0x16a8   :  { %v1532_v9 = vmul.f32 %v3899_v51, %v4493_v5 }
0x1706   :  { %v1413_v50 = vpop.permute.xlu1 %1412 }
0x1707   :  { %v1415_v33 = vmul.f32 %v3897_v49, %v1413_v50 }
0x1708   :  { %v1535_v52 = vpop.permute.xlu0 %1534 }
0x1709   :  { %1417 = vrot.lane.b32.xlu1 %v1415_v33, %s4041_s25  ;;  %v1537_v53 = vmul.f32 %v3899_v51, %v1535_v52  ;;  %v4043_v33 = vmov 1  }
0x170a   :  { %3741 = vset.pattern.permute.xlu0 %v4043_v33 }
0x170b   :  { %1539 = vrot.lane.b32.xlu0 %v1537_v53, %s4041_s25 }
0x177b   :  { %v1418_v54 = vpop.permute.xlu1 %1417 }
0x177c   :  { %v1420_v48 = vadd.f32 %v1418_v54, %v1410_v45 }
0x177d   :  { %v1540_v55 = vpop.permute.xlu0 %1539 }
0x177e   :  { %3900 = vtanh.f32 %v1420_v48  ;;  %v4550_v56 = vadd.f32 %v1540_v55, %v1532_v9 }
0x1780   :  { %3902 = vtanh.f32 %v4550_v56 }
0x178b   :  { %v3901_v58 = vpop.eup %3900 }
0x178c   :  { %1423 = vrot.lane.b32.xlu1 %v3901_v58, %s4040_s24 }
0x178d   :  { %v3903_v59 = vpop.eup %3902 }
0x178e   :  { %1545 = vrot.lane.b32.xlu0 %v3903_v59, %s4040_s24 }
0x17fe   :  { %v1424_v61 = vpop.permute.xlu1 %1423 }
0x17ff   :  { %v1426_v62 = vmul.f32 %v3897_v49, %v1424_v61 }
0x1800   :  { %v1546_v63 = vpop.permute.xlu0 %1545 }
0x1801   :  { %1554 = vrot.lane.b32.xlu0 %v1426_v62, %s4040_s24  ;;  %v4584_v0 = vmul.f32 %v3899_v51, %v1546_v63  ;;  %v1733_v51 = vstv %s1732_s27 }
0x1802   :  { %vm1734_vm7 = vcmp.eq.s32.totalorder %v1733_v51, 1 }
0x1803   :  { %1550 = vrot.lane.b32.xlu1 %v4584_v0, %s4041_s25 }
0x1873   :  { %v1555_v3 = vpop.permute.xlu0 %1554 }
0x1875   :  { %v1551_v5 = vpop.permute.xlu1 %1550 }
0x1876   :  { %v1557_v6 = vsel %vm109_vm1, %v1551_v5, %v1555_v3 }
0x1877   :  { %v1558_v10 = vpack.c.bf16 %v1557_v6, %v1557_v6 }
0x1879   :  { %3520 = vmatmul.mubr.msk.bf16.vlgmr.msra.gmra.mxu1 %vm316_vm2, %v1558_v10 }
0x187a   :  { %3542 = vmatpush3.bf16.msra.mxu1 %v4556_v2  ;;  %3549 = vmatprep.mubr.msk.bf16.mxu1 %vm4038_vm0, %v4037_v1 }
0x187b   :  { %3543 = vmatprep.subr.bf16.mxu1 %v4037_v1 }
0x187e   :  { %3544 = vmatpush3.bf16.msra.mxu1 %v4562_v57 }
0x187f   :  { %3545 = vmatprep.subr.bf16.mxu1 %v4037_v1 }
0x1882   :  { %3546 = vmatpush3.bf16.msra.mxu1 %v4569_v4 }
0x1883   :  { %3547 = vmatprep.subr.bf16.mxu1 %v4037_v1 }
0x1886   :  { %3548 = vmatpush3.bf16.msra.mxu1 %v4579_v60 }
0x1887   :  { %3571 = vmatprep.subr.bf16.mxu1 %v4037_v1 }
0x1939   :  { %v1628_v13 = vpop.f32.mrf.mxu1 }
0x193a   :  { %v1629_v14 = vadd.f32 %v4603_v12, %v1628_v13 }
0x193b   :  { %v3521_v15 = vpop.f32.mrf.mxu1 }
0x193c   :  { %3904 = vtanh.f32 %v1629_v14  ;;  %v3129_v20 = vmul.f32 -1.442695, %v1629_v14 }
0x193d   :  { %v1631_v16 = vpop.f32.mrf.mxu1 }
0x193e   :  { %3906 = vpow2.f32 %v3129_v20 }
0x193f   :  { %v3522_v18 = vpop.f32.mrf.mxu1 }
0x1949   :  { %v3905_v19 = vpop.eup %3904 }
0x194a   :  { %1643 = vrot.lane.b32.xlu1 %v3905_v19, %s4040_s24 }
0x194b   :  { %v3907_v46 = vpop.eup %3906 }
0x194c   :  { %v1637_v21 = vadd.f32 1.0, %v3907_v46 }
0x194e   :  { %3908 = vrcp.f32 %v1637_v21 }
0x195b   :  { %v3909_v22 = vpop.eup %3908 }
0x195c   :  { %v1641_v25 = vmul.f32 %v3909_v22, %v1420_v48 }
0x19bc   :  { %v1644_v23 = vpop.permute.xlu1 %1643 }
0x19bd   :  { %v1646_v24 = vmul.f32 %v3909_v22, %v1644_v23 }
0x19bf   :  { %1648 = vrot.lane.b32.xlu0 %v1646_v24, %s4041_s25 }
0x1a31   :  { %v1649_v26 = vpop.permute.xlu0 %1648 }
0x1a32   :  { %v4608_v28 = vadd.f32 %v1649_v26, %v1641_v25 }
0x1a34   :  { %3910 = vtanh.f32 %v4608_v28 }
0x1a41   :  { %v3911_v44 = vpop.eup %3910 }
0x1a42   :  { %1654 = vrot.lane.b32.xlu1 %v3911_v44, %s4040_s24 }
0x1ab4   :  { %v1655_v34 = vpop.permute.xlu1 %1654 }
0x1ab5   :  { %v4626_v35 = vmul.f32 %v3909_v22, %v1655_v34 }
0x1ab7   :  { %v1658_v36 = vpack.c.bf16 %v4626_v35, %v4626_v35 }
0x1ab9   :  { %1664 = vrot.lane.b32.xlu0 %v1658_v36, %s4041_s25 }
0x1b2b   :  { %v1665_v37 = vpop.permute.xlu0 %1664 }
0x1b2c   :  { %3528 = vmatmul.mubr.msk.bf16.vlgmr.msra.gmra.mxu0 %vm109_vm1, %v1665_v37 }
0x1b2d   :  { %3532 = vmatpush3.bf16.msra.mxu0 %v4507_v7  ;;  %3537 = vmatprep.mubr.msk.bf16.mxu0 %vm4038_vm0, %v4037_v1 }
0x1b2e   :  { %3533 = vmatprep.subr.bf16.mxu0 %v4037_v1 }
0x1b31   :  { %3534 = vmatpush3.bf16.msra.mxu0 %v4515_v8 }
0x1b32   :  { %3535 = vmatprep.subr.bf16.mxu0 %v4037_v1 }
0x1b35   :  { %3536 = vmatpush3.bf16.msra.mxu0 %v4522_v11 }
0x1b36   :  { %3553 = vmatprep.subr.bf16.mxu0 %v4037_v1 }
0x1bec   :  { %v1715_v27 = vpop.f32.mrf.mxu0 }
0x1bed   :  { %v4646_v39 = vadd.f32 %v4643_v38, %v1715_v27 }
0x1bee   :  { %v3529_v40 = vpop.f32.mrf.mxu0 }
0x1bef   :  { %v1721_v42 = vsel %vm1454_vm4, %v4646_v39, -inf }
0x1bf0   :  { %1722 = vmax.xlane.f32.xlu1 %v1721_v42  ;;  %v1718_v30 = vpop.f32.mrf.mxu0 }
0x1bf2   :  { %v3530_v41 = vpop.f32.mrf.mxu0 }
0x1c01   :  { %1742 = vrot.lane.b32.xlu1 %v4584_v0, %s4042_s29 }
0x1c79   :  { %v1723_v31 = vpop.xlane.xlu1 %1722 }
0x1c7a   :  { %vm1724_vm6 = vcmp.eq.f32.partialorder %v4646_v39, %v1723_v31 }
0x1c7b   :  { %v1725_v49 = vsel %vm1724_vm6, %v4653_v47, 16.0 }
0x1c7c   :  { %v1726_v50 = vsel %vm1454_vm4, %v1725_v49, inf }
0x1c7d   :  { %1727 = vmin.xlane.f32.xlu0 %v1726_v50  ;;  %v1743_v9 = vpop.permute.xlu1 %1742 }
0x1d06   :  { %v1728_v52 = vpop.xlane.xlu0 %1727 }
0x1d07   :  { %v3711_v53 = vtrunc.f32 %v1728_v52 }
0x1d09   :  { %v3712_v45 = vcvt.f32.s32 %v3711_v53 }
0x1d0b   :  { %v1735_v54 = vsel %vm1734_vm7, %v4502_v43, %v3712_v45 }
0x1d0c   :  { %1737 = vperm.xlu0 %3741, %v1735_v54  }
0x1d87   :  { %v1738_v48 = vpop.permute.xlu0 %1737 }
0x1d88   :  { %vm1739_vm8 = vcmp.eq.s32.totalorder %v1738_v48, %v4529_v17 }
0x1d89   :  { %v3134_v55 = vsel %vm1739_vm8, 1.0, %v4037_v1 }
0x1d8a   :  { %v1745_v58 = vsel %vm1454_vm4, %v3134_v55, %v1743_v9 }
0x1d8b   :  { %v1746_v59 = vpack.c.bf16 %v1745_v58, %v1745_v58 }
0x1d8d   :  { %3538 = vmatmul.mubr.msk.bf16.vlgmr.msra.gmra.mxu0 %vm1481_vm5, %v1746_v59 }
0x1d8e   :  { %3554 = vmatpush3.bf16.msra.mxu0 %v4614_v29  ;;  %3557 = vmatprep.mubr.msk.bf16.mxu0 %vm4038_vm0, %v4037_v1 }
0x1d8f   :  { %3555 = vmatprep.subr.bf16.mxu0 %v4037_v1 }
0x1d92   :  { %3556 = vmatpush3.bf16.msra.mxu0 %v4620_v32 }
0x1d93   :  { %3561 = vmatprep.subr.bf16.mxu0 %v4037_v1 }
0x1e4d   :  { %v1784_v61 = vpop.f32.mrf.mxu0 }
0x1e4e   :  { %3912 = vtanh.f32 %v1784_v61  ;;  %v3136_v5 = vmul.f32 -1.442695, %v1784_v61 }
0x1e4f   :  { %v3539_v62 = vpop.f32.mrf.mxu0 }
0x1e50   :  { %3914 = vpow2.f32 %v3136_v5 }
0x1e51   :  { %v1787_v63 = vpop.f32.mrf.mxu0 }
0x1e52   :  { %v4044_v63 = vmov 2  }
0x1e53   :  { %v3540_v0 = vpop.f32.mrf.mxu0  ;;  %3742 = vset.pattern.permute.xlu0 %v4044_v63 }
0x1e54   :  { %v1950_v0 = vstv %s1949_s30 }
0x1e55   :  { %vm1951_vm10 = vcmp.eq.s32.totalorder %v1950_v0, 1 }
0x1e5b   :  { %v3913_v3 = vpop.eup %3912 }
0x1e5c   :  { %1799 = vrot.lane.b32.xlu1 %v3913_v3, %s4040_s24 }
0x1e5d   :  { %v3915_v6 = vpop.eup %3914 }
0x1e5e   :  { %v1793_v10 = vadd.f32 1.0, %v3915_v6 }
0x1e60   :  { %3916 = vrcp.f32 %v1793_v10 }
0x1e6d   :  { %v3917_v13 = vpop.eup %3916 }
0x1e6e   :  { %v1797_v16 = vmul.f32 %v3917_v13, %v4550_v56 }
0x1ece   :  { %v1800_v14 = vpop.permute.xlu1 %1799 }
0x1ecf   :  { %v1802_v15 = vmul.f32 %v3917_v13, %v1800_v14 }
0x1ed1   :  { %1804 = vrot.lane.b32.xlu1 %v1802_v15, %s4041_s25 }
0x1f43   :  { %v1805_v18 = vpop.permute.xlu1 %1804 }
0x1f44   :  { %v4672_v19 = vadd.f32 %v1805_v18, %v1797_v16 }
0x1f46   :  { %3918 = vtanh.f32 %v4672_v19 }
0x1f53   :  { %v3919_v20 = vpop.eup %3918 }
0x1f54   :  { %1810 = vrot.lane.b32.xlu1 %v3919_v20, %s4040_s24 }
0x1fc6   :  { %v1811_v46 = vpop.permute.xlu1 %1810 }
0x1fc7   :  { %v4676_v21 = vmul.f32 %v3917_v13, %v1811_v46 }
0x1fc9   :  { %1815 = vrot.lane.b32.xlu1 %v4676_v21, %s4041_s25 }
0x1fcd   :  { %1819 = vrot.lane.b32.xlu1 %v4626_v35, %s4040_s24 }
0x203b   :  { %v1816_v22 = vpop.permute.xlu1 %1815 }
0x203f   :  { %v1820_v23 = vpop.permute.xlu1 %1819 }
0x2040   :  { %v1822_v56 = vsel %vm109_vm1, %v1816_v22, %v1820_v23 }
0x2041   :  { %v1823_v24 = vpack.c.bf16 %v1822_v56, %v1822_v56 }
0x2043   :  { %3550 = vmatmul.mubr.msk.bf16.vlgmr.msra.gmra.mxu1 %vm316_vm2, %v1823_v24 }
0x2044   :  { %3572 = vmatpush3.bf16.msra.mxu1 %v4556_v2  ;;  %3579 = vmatprep.mubr.msk.bf16.mxu1 %vm4038_vm0, %v4037_v1 }
0x2045   :  { %3573 = vmatprep.subr.bf16.mxu1 %v4037_v1 }
0x2048   :  { %3574 = vmatpush3.bf16.msra.mxu1 %v4562_v57 }
0x2049   :  { %3575 = vmatprep.subr.bf16.mxu1 %v4037_v1 }
0x204c   :  { %3576 = vmatpush3.bf16.msra.mxu1 %v4569_v4 }
0x204d   :  { %3577 = vmatprep.subr.bf16.mxu1 %v4037_v1 }
0x2050   :  { %3578 = vmatpush3.bf16.msra.mxu1 %v4579_v60 }
0x2051   :  { %3591 = vmatprep.subr.bf16.mxu1 %v4037_v1 }
0x2103   :  { %v1861_v25 = vpop.f32.mrf.mxu1 }
0x2104   :  { %v1862_v26 = vadd.f32 %v4603_v12, %v1861_v25 }
0x2105   :  { %v3551_v44 = vpop.f32.mrf.mxu1 }
0x2106   :  { %3920 = vtanh.f32 %v1862_v26  ;;  %v3138_v37 = vmul.f32 -1.442695, %v1862_v26 }
0x2107   :  { %v1864_v34 = vpop.f32.mrf.mxu1 }
0x2108   :  { %3922 = vpow2.f32 %v3138_v37 }
0x2109   :  { %v3552_v35 = vpop.f32.mrf.mxu1 }
0x2113   :  { %v3921_v36 = vpop.eup %3920 }
0x2114   :  { %1876 = vrot.lane.b32.xlu1 %v3921_v36, %s4040_s24 }
0x2115   :  { %v3923_v27 = vpop.eup %3922 }
0x2116   :  { %v1870_v40 = vadd.f32 1.0, %v3923_v27 }
0x2118   :  { %3924 = vrcp.f32 %v1870_v40 }
0x2125   :  { %v3925_v42 = vpop.eup %3924 }
0x2126   :  { %v1874_v31 = vmul.f32 %v3925_v42, %v4608_v28 }
0x2186   :  { %v1877_v30 = vpop.permute.xlu1 %1876 }
0x2187   :  { %v1879_v41 = vmul.f32 %v3925_v42, %v1877_v30 }
0x2189   :  { %1881 = vrot.lane.b32.xlu1 %v1879_v41, %s4041_s25 }
0x21fb   :  { %v1882_v49 = vpop.permute.xlu1 %1881 }
0x21fc   :  { %v4698_v50 = vadd.f32 %v1882_v49, %v1874_v31 }
0x21fe   :  { %3926 = vtanh.f32 %v4698_v50 }
0x220b   :  { %v3927_v33 = vpop.eup %3926 }
0x220c   :  { %1887 = vrot.lane.b32.xlu0 %v3927_v33, %s4040_s24 }
0x227e   :  { %v1888_v51 = vpop.permute.xlu0 %1887 }
0x227f   :  { %v4702_v52 = vmul.f32 %v3925_v42, %v1888_v51 }
0x2281   :  { %v1891_v53 = vpack.c.bf16 %v4702_v52, %v4702_v52 }
0x2283   :  { %1893 = vrot.lane.b32.xlu1 %v1891_v53, %s4041_s25 }
0x22f5   :  { %v1894_v45 = vpop.permute.xlu1 %1893 }
0x22f6   :  { %3558 = vmatmul.mubr.msk.bf16.vlgmr.msra.gmra.mxu0 %vm109_vm1, %v1894_v45 }
0x22f7   :  { %3562 = vmatpush3.bf16.msra.mxu0 %v4507_v7  ;;  %3567 = vmatprep.mubr.msk.bf16.mxu0 %vm4038_vm0, %v4037_v1 }
0x22f8   :  { %3563 = vmatprep.subr.bf16.mxu0 %v4037_v1 }
0x22fb   :  { %3564 = vmatpush3.bf16.msra.mxu0 %v4515_v8 }
0x22fc   :  { %3565 = vmatprep.subr.bf16.mxu0 %v4037_v1 }
0x22ff   :  { %3566 = vmatpush3.bf16.msra.mxu0 %v4522_v11 }
0x2300   :  { %3583 = vmatprep.subr.bf16.mxu0 %v4037_v1 }
0x23b6   :  { %v1932_v28 = vpop.f32.mrf.mxu0 }
0x23b7   :  { %v4717_v54 = vadd.f32 %v4643_v38, %v1932_v28 }
0x23b8   :  { %v3559_v48 = vpop.f32.mrf.mxu0 }
0x23b9   :  { %v1938_v9 = vsel %vm1454_vm4, %v4717_v54, -inf }
0x23ba   :  { %1939 = vmax.xlane.f32.xlu0 %v1938_v9  ;;  %v1935_v55 = vpop.f32.mrf.mxu0 }
0x23bc   :  { %v3560_v58 = vpop.f32.mrf.mxu0 }
0x2443   :  { %v1940_v59 = vpop.xlane.xlu0 %1939 }
0x2444   :  { %vm1941_vm9 = vcmp.eq.f32.partialorder %v4717_v54, %v1940_v59 }
0x2445   :  { %v1942_v61 = vsel %vm1941_vm9, %v4653_v47, 16.0 }
0x2446   :  { %v1943_v62 = vsel %vm1454_vm4, %v1942_v61, inf }
0x2447   :  { %1944 = vmin.xlane.f32.xlu1 %v1943_v62 }
0x2458   :  { %1959 = vrot.lane.b32.xlu1 %v4676_v21, %s4042_s29 }
0x24d0   :  { %v1945_v3 = vpop.xlane.xlu1 %1944 }
0x24d1   :  { %v3713_v5 = vtrunc.f32 %v1945_v3 }
0x24d3   :  { %v3714_v6 = vcvt.f32.s32 %v3713_v5 }
0x24d4   :  { %v1960_v14 = vpop.permute.xlu1 %1959 }
0x24d5   :  { %v1952_v10 = vsel %vm1951_vm10, %v4502_v43, %v3714_v6 }
0x24d6   :  { %1954 = vperm.xlu0 %3742, %v1952_v10  }
0x2551   :  { %v1955_v13 = vpop.permute.xlu0 %1954 }
0x2552   :  { %vm1956_vm11 = vcmp.eq.s32.totalorder %v1955_v13, %v4529_v17 }
0x2553   :  { %v3141_v15 = vsel %vm1956_vm11, 1.0, %v4037_v1 }
0x2554   :  { %v1962_v16 = vsel %vm1454_vm4, %v3141_v15, %v1960_v14 }
0x2555   :  { %v1963_v18 = vpack.c.bf16 %v1962_v16, %v1962_v16 }
0x2557   :  { %3568 = vmatmul.mubr.msk.bf16.vlgmr.msra.gmra.mxu0 %vm1481_vm5, %v1963_v18 }
0x2558   :  { %3584 = vmatpush3.bf16.msra.mxu0 %v4614_v29  ;;  %3587 = vmatprep.mubr.msk.bf16.mxu0 %vm4038_vm0, %v4037_v1 }
0x2559   :  { %3585 = vmatprep.subr.bf16.mxu0 %v4037_v1 }
0x255c   :  { %3586 = vmatpush3.bf16.msra.mxu0 %v4620_v32 }
0x255d   :  { %3601 = vmatprep.subr.bf16.mxu0 %v4037_v1 }
0x2617   :  { %v2001_v20 = vpop.f32.mrf.mxu0 }
0x2618   :  { %3928 = vtanh.f32 %v2001_v20  ;;  %v3143_v56 = vmul.f32 -1.442695, %v2001_v20 }
0x2619   :  { %v3569_v46 = vpop.f32.mrf.mxu0 }
0x261a   :  { %3930 = vpow2.f32 %v3143_v56 }
0x261b   :  { %v2004_v21 = vpop.f32.mrf.mxu0 }
0x261d   :  { %v3570_v22 = vpop.f32.mrf.mxu0 }
0x261e   :  { %v4045_v22 = vmov 3  }
0x261f   :  { %3743 = vset.pattern.permute.xlu0 %v4045_v22 }
0x2625   :  { %v3929_v23 = vpop.eup %3928 }
0x2626   :  { %2016 = vrot.lane.b32.xlu1 %v3929_v23, %s4040_s24  ;;  %v2167_v23 = vstv %s2166_s7 }
0x2627   :  { %v3931_v24 = vpop.eup %3930  ;;  %vm2168_vm13 = vcmp.eq.s32.totalorder %v2167_v23, 1 }
0x2628   :  { %v2010_v25 = vadd.f32 1.0, %v3931_v24 }
0x262a   :  { %3932 = vrcp.f32 %v2010_v25 }
0x2637   :  { %v3933_v26 = vpop.eup %3932 }
0x2638   :  { %v2014_v35 = vmul.f32 %v3933_v26, %v4672_v19 }
0x2698   :  { %v2017_v44 = vpop.permute.xlu1 %2016 }
0x2699   :  { %v2019_v34 = vmul.f32 %v3933_v26, %v2017_v44 }
0x269b   :  { %2021 = vrot.lane.b32.xlu1 %v2019_v34, %s4041_s25 }
0x270d   :  { %v2022_v36 = vpop.permute.xlu1 %2021 }
0x270e   :  { %v4740_v37 = vadd.f32 %v2022_v36, %v2014_v35 }
0x2710   :  { %3934 = vtanh.f32 %v4740_v37 }
0x271d   :  { %v3935_v27 = vpop.eup %3934 }
0x271e   :  { %2027 = vrot.lane.b32.xlu1 %v3935_v27, %s4040_s24 }
0x2790   :  { %v2028_v40 = vpop.permute.xlu1 %2027 }
0x2791   :  { %v4744_v42 = vmul.f32 %v3933_v26, %v2028_v40 }
0x2793   :  { %2032 = vrot.lane.b32.xlu1 %v4744_v42, %s4041_s25 }
0x2797   :  { %2036 = vrot.lane.b32.xlu1 %v4702_v52, %s4040_s24 }
0x2805   :  { %v2033_v30 = vpop.permute.xlu1 %2032 }
0x2809   :  { %v2037_v41 = vpop.permute.xlu1 %2036 }
0x280a   :  { %v2039_v19 = vsel %vm109_vm1, %v2033_v30, %v2037_v41 }
0x280b   :  { %v2040_v31 = vpack.c.bf16 %v2039_v19, %v2039_v19 }
0x280d   :  { %3580 = vmatmul.mubr.msk.bf16.vlgmr.msra.gmra.mxu1 %vm316_vm2, %v2040_v31 }
0x280e   :  { %3592 = vmatpush3.bf16.msra.mxu1 %v4507_v7  ;;  %3597 = vmatprep.mubr.msk.bf16.mxu1 %vm4038_vm0, %v4037_v1 }
0x280f   :  { %3593 = vmatprep.subr.bf16.mxu1 %v4037_v1 }
0x2812   :  { %3594 = vmatpush3.bf16.msra.mxu1 %v4515_v8 }
0x2813   :  { %3595 = vmatprep.subr.bf16.mxu1 %v4037_v1 }
0x2816   :  { %3596 = vmatpush3.bf16.msra.mxu1 %v4522_v11 }
0x2817   :  { %3613 = vmatprep.subr.bf16.mxu1 %v4037_v1 }
0x28cd   :  { %v2078_v49 = vpop.f32.mrf.mxu1 }
0x28ce   :  { %v2079_v33 = vadd.f32 %v4603_v12, %v2078_v49 }
0x28cf   :  { %v3581_v51 = vpop.f32.mrf.mxu1 }
0x28d0   :  { %3936 = vtanh.f32 %v2079_v33  ;;  %v3145_v28 = vmul.f32 -1.442695, %v2079_v33 }
0x28d1   :  { %v2081_v52 = vpop.f32.mrf.mxu1 }
0x28d2   :  { %3938 = vpow2.f32 %v3145_v28 }
0x28d3   :  { %v3582_v53 = vpop.f32.mrf.mxu1 }
0x28dd   :  { %v3937_v45 = vpop.eup %3936 }
0x28de   :  { %2093 = vrot.lane.b32.xlu0 %v3937_v45, %s4040_s24 }
0x28df   :  { %v3939_v48 = vpop.eup %3938 }
0x28e0   :  { %v2087_v9 = vadd.f32 1.0, %v3939_v48 }
0x28e2   :  { %3940 = vrcp.f32 %v2087_v9 }
0x28ef   :  { %v3941_v55 = vpop.eup %3940 }
0x28f0   :  { %v2091_v61 = vmul.f32 %v3941_v55, %v4698_v50 }
0x2950   :  { %v2094_v58 = vpop.permute.xlu0 %2093 }
0x2951   :  { %v2096_v59 = vmul.f32 %v3941_v55, %v2094_v58 }
0x2953   :  { %2098 = vrot.lane.b32.xlu1 %v2096_v59, %s4041_s25 }
0x29c5   :  { %v2099_v62 = vpop.permute.xlu1 %2098 }
0x29c6   :  { %v4764_v63 = vadd.f32 %v2099_v62, %v2091_v61 }
0x29c8   :  { %3942 = vtanh.f32 %v4764_v63 }
0x29d5   :  { %v3943_v0 = vpop.eup %3942 }
0x29d6   :  { %2104 = vrot.lane.b32.xlu0 %v3943_v0, %s4040_s24 }
0x2a48   :  { %v2105_v3 = vpop.permute.xlu0 %2104 }
0x2a49   :  { %v4768_v5 = vmul.f32 %v3941_v55, %v2105_v3 }
0x2a4b   :  { %v2108_v6 = vpack.c.bf16 %v4768_v5, %v4768_v5 }
0x2a4d   :  { %2110 = vrot.lane.b32.xlu1 %v2108_v6, %s4041_s25 }
0x2abf   :  { %v2111_v10 = vpop.permute.xlu1 %2110 }
0x2ac0   :  { %3588 = vmatmul.mubr.msk.bf16.vlgmr.msra.gmra.mxu0 %vm109_vm1, %v2111_v10 }
0x2ac1   :  { %3602 = vmatpush3.bf16.msra.mxu0 %v4556_v2  ;;  %3609 = vmatprep.mubr.msk.bf16.mxu0 %vm4038_vm0, %v4037_v1 }
0x2ac2   :  { %3603 = vmatprep.subr.bf16.mxu0 %v4037_v1 }
0x2ac5   :  { %3604 = vmatpush3.bf16.msra.mxu0 %v4562_v57 }
0x2ac6   :  { %3605 = vmatprep.subr.bf16.mxu0 %v4037_v1 }
0x2ac9   :  { %3606 = vmatpush3.bf16.msra.mxu0 %v4569_v4 }
0x2aca   :  { %3607 = vmatprep.subr.bf16.mxu0 %v4037_v1 }
0x2acd   :  { %3608 = vmatpush3.bf16.msra.mxu0 %v4579_v60 }
0x2ace   :  { %3621 = vmatprep.subr.bf16.mxu0 %v4037_v1 }
0x2b80   :  { %v2149_v50 = vpop.f32.mrf.mxu0 }
0x2b81   :  { %v4785_v13 = vadd.f32 %v4643_v38, %v2149_v50 }
0x2b82   :  { %v3589_v14 = vpop.f32.mrf.mxu0 }
0x2b83   :  { %v2155_v15 = vsel %vm1454_vm4, %v4785_v13, -inf }
0x2b84   :  { %2156 = vmax.xlane.f32.xlu0 %v2155_v15  ;;  %v2152_v16 = vpop.f32.mrf.mxu0 }
0x2b86   :  { %v3590_v18 = vpop.f32.mrf.mxu0 }
0x2c0d   :  { %v2157_v20 = vpop.xlane.xlu0 %2156 }
0x2c0e   :  { %vm2158_vm12 = vcmp.eq.f32.partialorder %v4785_v13, %v2157_v20 }
0x2c0f   :  { %v2159_v46 = vsel %vm2158_vm12, %v4653_v47, 16.0 }
0x2c10   :  { %v2160_v21 = vsel %vm1454_vm4, %v2159_v46, inf }
0x2c11   :  { %2161 = vmin.xlane.f32.xlu1 %v2160_v21 }
0x2c22   :  { %2176 = vrot.lane.b32.xlu1 %v4744_v42, %s4042_s29 }
0x2c9a   :  { %v2162_v56 = vpop.xlane.xlu1 %2161 }
0x2c9b   :  { %v3715_v24 = vtrunc.f32 %v2162_v56 }
0x2c9d   :  { %v3716_v25 = vcvt.f32.s32 %v3715_v24 }
0x2c9e   :  { %v2177_v34 = vpop.permute.xlu1 %2176 }
0x2c9f   :  { %v2169_v26 = vsel %vm2168_vm13, %v4502_v43, %v3716_v25  ;;  %vm3057_vm13 = vcmask 785408  }
0x2ca0   :  { %2171 = vperm.xlu0 %3743, %v2169_v26  }
0x2d1b   :  { %v2172_v44 = vpop.permute.xlu0 %2171 }
0x2d1c   :  { %vm2173_vm14 = vcmp.eq.s32.totalorder %v2172_v44, %v4529_v17 }
0x2d1d   :  { %v3148_v35 = vsel %vm2173_vm14, 1.0, %v4037_v1  ;;  %vm3059_vm14 = vcmask 916480  }
0x2d1e   :  { %v2179_v36 = vsel %vm1454_vm4, %v3148_v35, %v2177_v34  ;;  %v4046_v34 = vmov 4   ;;  %v2384_v35 = vstv %s2383_s15 }
0x2d1f   :  { %v2180_v27 = vpack.c.bf16 %v2179_v36, %v2179_v36  ;;  %3744 = vset.pattern.permute.xlu0 %v4046_v34  ;;  %vm2385_vm3 = vcmp.eq.s32.totalorder %v2384_v35, 1 }
0x2d21   :  { %3598 = vmatmul.mubr.msk.bf16.vlgmr.msra.gmra.mxu1 %vm1481_vm5, %v2180_v27 }
0x2d22   :  { %3614 = vmatpush3.bf16.msra.mxu1 %v4614_v29  ;;  %3617 = vmatprep.mubr.msk.bf16.mxu1 %vm4038_vm0, %v4037_v1 }
0x2d23   :  { %3615 = vmatprep.subr.bf16.mxu1 %v4037_v1 }
0x2d26   :  { %3616 = vmatpush3.bf16.msra.mxu1 %v4620_v32 }
0x2d27   :  { %3631 = vmatprep.subr.bf16.mxu1 %v4037_v1 }
0x2de1   :  { %v2218_v43 = vpop.f32.mrf.mxu1 }
0x2de2   :  { %3944 = vtanh.f32 %v2218_v43  ;;  %v3150_v19 = vmul.f32 -1.442695, %v2218_v43 }
0x2de3   :  { %v3599_v40 = vpop.f32.mrf.mxu1 }
0x2de4   :  { %3946 = vpow2.f32 %v3150_v19  ;;  %v4861_v40 = vld [vmem:[%s5091_s1] sm:$0xff]  ;;  %s4050_s1 = smov 80  }
0x2de5   :  { %v2221_v42 = vpop.f32.mrf.mxu1 }
0x2de7   :  { %v3600_v30 = vpop.f32.mrf.mxu1 }
0x2def   :  { %v3945_v41 = vpop.eup %3944 }
0x2df0   :  { %2233 = vrot.lane.b32.xlu1 %v3945_v41, %s4040_s24 }
0x2df1   :  { %v3947_v31 = vpop.eup %3946 }
0x2df2   :  { %v2227_v49 = vadd.f32 1.0, %v3947_v31 }
0x2df4   :  { %3948 = vrcp.f32 %v2227_v49 }
0x2e01   :  { %v3949_v33 = vpop.eup %3948 }
0x2e02   :  { %v2231_v53 = vmul.f32 %v3949_v33, %v4740_v37 }
0x2e62   :  { %v2234_v51 = vpop.permute.xlu1 %2233 }
0x2e63   :  { %v2236_v52 = vmul.f32 %v3949_v33, %v2234_v51 }
0x2e65   :  { %2238 = vrot.lane.b32.xlu1 %v2236_v52, %s4041_s25 }
0x2ed7   :  { %v2239_v45 = vpop.permute.xlu1 %2238 }
0x2ed8   :  { %v4808_v28 = vadd.f32 %v2239_v45, %v2231_v53 }
0x2eda   :  { %3950 = vtanh.f32 %v4808_v28 }
0x2ee7   :  { %v3951_v48 = vpop.eup %3950 }
0x2ee8   :  { %2244 = vrot.lane.b32.xlu1 %v3951_v48, %s4040_s24 }
0x2f5a   :  { %v2245_v9 = vpop.permute.xlu1 %2244 }
0x2f5b   :  { %v2247_v55 = vmul.f32 %v3949_v33, %v2245_v9 }
0x2f5d   :  { %2249 = vrot.lane.b32.xlu1 %v2247_v55, %s4041_s25 }
0x2f61   :  { %2253 = vrot.lane.b32.xlu1 %v4768_v5, %s4040_s24 }
0x2fcf   :  { %v2250_v58 = vpop.permute.xlu1 %2249 }
0x2fd3   :  { %v2254_v59 = vpop.permute.xlu1 %2253 }
0x2fd4   :  { %v2256_v61 = vsel %vm109_vm1, %v2250_v58, %v2254_v59 }
0x2fd5   :  { %v2257_v37 = vpack.c.bf16 %v2256_v61, %v2256_v61 }
0x2fd7   :  { %3610 = vmatmul.mubr.msk.bf16.vlgmr.msra.gmra.mxu0 %vm316_vm2, %v2257_v37 }
0x2fd8   :  { %3622 = vmatpush3.bf16.msra.mxu0 %v4507_v7  ;;  %3627 = vmatprep.mubr.msk.bf16.mxu0 %vm4038_vm0, %v4037_v1 }
0x2fd9   :  { %3623 = vmatprep.subr.bf16.mxu0 %v4037_v1 }
0x2fdc   :  { %3624 = vmatpush3.bf16.msra.mxu0 %v4515_v8 }
0x2fdd   :  { %3625 = vmatprep.subr.bf16.mxu0 %v4037_v1 }
0x2fe0   :  { %3626 = vmatpush3.bf16.msra.mxu0 %v4522_v11 }
0x2fe1   :  { %3643 = vmatprep.subr.bf16.mxu0 %v4037_v1 }
0x3097   :  { %v2295_v62 = vpop.f32.mrf.mxu0 }
0x3098   :  { %v2296_v0 = vadd.f32 %v4603_v12, %v2295_v62 }
0x3099   :  { %v3611_v3 = vpop.f32.mrf.mxu0 }
0x309a   :  { %3952 = vtanh.f32 %v2296_v0  ;;  %v3152_v10 = vmul.f32 -1.442695, %v2296_v0 }
0x309b   :  { %v2298_v5 = vpop.f32.mrf.mxu0 }
0x309c   :  { %3954 = vpow2.f32 %v3152_v10 }
0x309d   :  { %v3612_v7 = vpop.f32.mrf.mxu0 }
0x30a7   :  { %v3953_v6 = vpop.eup %3952 }
0x30a8   :  { %2310 = vrot.lane.b32.xlu1 %v3953_v6, %s4040_s24 }
0x30a9   :  { %v3955_v50 = vpop.eup %3954 }
0x30aa   :  { %v2304_v8 = vadd.f32 1.0, %v3955_v50 }
0x30ac   :  { %3956 = vrcp.f32 %v2304_v8  ;;  %v4892_v8 = vld [vmem:[%s5098_s8 + $0x10] sm:$0xff]  }
0x30b9   :  { %v3957_v14 = vpop.eup %3956 }
0x30ba   :  { %v2308_v16 = vmul.f32 %v3957_v14, %v4764_v63 }
0x311a   :  { %v2311_v15 = vpop.permute.xlu1 %2310 }
0x311b   :  { %v2313_v11 = vmul.f32 %v3957_v14, %v2311_v15  ;;  %v4908_v15 = vld [vmem:[%s5098_s8] sm:$0xff]  }
0x311d   :  { %2315 = vrot.lane.b32.xlu0 %v2313_v11, %s4041_s25 }
0x318f   :  { %v2316_v18 = vpop.permute.xlu0 %2315 }
0x3190   :  { %v4829_v20 = vadd.f32 %v2316_v18, %v2308_v16 }
0x3192   :  { %3958 = vtanh.f32 %v4829_v20 }
0x319f   :  { %v3959_v46 = vpop.eup %3958 }
0x31a0   :  { %2321 = vrot.lane.b32.xlu1 %v3959_v46, %s4040_s24 }
0x3212   :  { %v2322_v21 = vpop.permute.xlu1 %2321 }
0x3213   :  { %v4833_v22 = vmul.f32 %v3957_v14, %v2322_v21  ;;  %v4901_v14 = vld [vmem:[%s5098_s8 + $0x8] sm:$0xff]  }
0x3215   :  { %v2325_v23 = vpack.c.bf16 %v4833_v22, %v4833_v22 }
0x3217   :  { %2327 = vrot.lane.b32.xlu0 %v2325_v23, %s4041_s25 }
0x3289   :  { %v2328_v56 = vpop.permute.xlu0 %2327 }
0x328a   :  { %3618 = vmatmul.mubr.msk.bf16.vlgmr.msra.gmra.mxu1 %vm109_vm1, %v2328_v56 }
0x328b   :  { %3632 = vmatpush3.bf16.msra.mxu1 %v4556_v2  ;;  %3639 = vmatprep.mubr.msk.bf16.mxu1 %vm4038_vm0, %v4037_v1 }
0x328c   :  { %3633 = vmatprep.subr.bf16.mxu1 %v4037_v1 }
0x328f   :  { %3634 = vmatpush3.bf16.msra.mxu1 %v4562_v57 }
0x3290   :  { %3635 = vmatprep.subr.bf16.mxu1 %v4037_v1 }
0x3293   :  { %3636 = vmatpush3.bf16.msra.mxu1 %v4569_v4 }
0x3294   :  { %3637 = vmatprep.subr.bf16.mxu1 %v4037_v1 }
0x3297   :  { %3638 = vmatpush3.bf16.msra.mxu1 %v4579_v60 }
0x3298   :  { %3651 = vmatprep.subr.bf16.mxu1 %v4037_v1 }
0x334a   :  { %v2366_v63 = vpop.f32.mrf.mxu1 }
0x334b   :  { %v4850_v2 = vadd.f32 %v4643_v38, %v2366_v63 }
0x334c   :  { %v3619_v24 = vpop.f32.mrf.mxu1 }
0x334d   :  { %v2372_v25 = vsel %vm1454_vm4, %v4850_v2, -inf }
0x334e   :  { %2373 = vmax.xlane.f32.xlu1 %v2372_v25  ;;  %v2369_v57 = vpop.f32.mrf.mxu1 }
0x3350   :  { %v3620_v26 = vpop.f32.mrf.mxu1 }
0x335f   :  { %2393 = vrot.lane.b32.xlu1 %v2247_v55, %s4042_s29 }
0x33d7   :  { %v2374_v4 = vpop.xlane.xlu1 %2373 }
0x33d8   :  { %vm2375_vm15 = vcmp.eq.f32.partialorder %v4850_v2, %v2374_v4 }
0x33d9   :  { %v2376_v60 = vsel %vm2375_vm15, %v4653_v47, 16.0 }
0x33da   :  { %v2377_v44 = vsel %vm1454_vm4, %v2376_v60, inf }
0x33db   :  { %2378 = vmin.xlane.f32.xlu0 %v2377_v44  ;;  %v2394_v41 = vpop.permute.xlu1 %2393 }
0x3464   :  { %v2379_v36 = vpop.xlane.xlu0 %2378 }
0x3465   :  { %v3717_v27 = vtrunc.f32 %v2379_v36 }
0x3467   :  { %v3718_v43 = vcvt.f32.s32 %v3717_v27  ;;  %v4938_v27 = vld [vmem:[%s5099_s9 + $0x10] sm:$0xff]  }
0x3469   :  { %v2386_v42 = vsel %vm2385_vm3, %v4861_v40, %v3718_v43  ;;  %v4945_v43 = vld [vmem:[%s5099_s9 + $0x8] sm:$0xff]  }
0x346a   :  { %2388 = vperm.xlu0 %3744, %v2386_v42   ;;  %v4952_v42 = vld [vmem:[%s5099_s9] sm:$0xff]  }
0x34e5   :  { %v2389_v30 = vpop.permute.xlu0 %2388 }
0x34e6   :  { %vm2390_vm6 = vcmp.eq.s32.totalorder %v2389_v30, %v4529_v17 }
0x34e7   :  { %v3155_v19 = vsel %vm2390_vm6, 1.0, %v4037_v1 }
0x34e8   :  { %v2396_v31 = vsel %vm1454_vm4, %v3155_v19, %v2394_v41 }
0x34e9   :  { %v2397_v49 = vpack.c.bf16 %v2396_v31, %v2396_v31 }
0x34eb   :  { %3628 = vmatmul.mubr.msk.bf16.vlgmr.msra.gmra.mxu0 %vm1481_vm5, %v2397_v49 }
0x34ec   :  { %3644 = vmatpush3.bf16.msra.mxu0 %v4614_v29  ;;  %3647 = vmatprep.mubr.msk.bf16.mxu0 %vm4038_vm0, %v4037_v1 }
0x34ed   :  { %3645 = vmatprep.subr.bf16.mxu0 %v4037_v1 }
0x34f0   :  { %3646 = vmatpush3.bf16.msra.mxu0 %v4620_v32 }
0x34f1   :  { %3661 = vmatprep.subr.bf16.mxu0 %v4037_v1 }
0x35ab   :  { %v2435_v33 = vpop.f32.mrf.mxu0 }
0x35ac   :  { %3960 = vtanh.f32 %v2435_v33  ;;  %v3157_v48 = vmul.f32 -1.442695, %v2435_v33 }
0x35ad   :  { %v3629_v51 = vpop.f32.mrf.mxu0 }
0x35ae   :  { %3962 = vpow2.f32 %v3157_v48 }
0x35af   :  { %v2438_v52 = vpop.f32.mrf.mxu0 }
0x35b1   :  { %v3630_v53 = vpop.f32.mrf.mxu0 }
0x35b9   :  { %v3961_v45 = vpop.eup %3960 }
0x35ba   :  { %2450 = vrot.lane.b32.xlu1 %v3961_v45, %s4040_s24 }
0x35bb   :  { %v3963_v9 = vpop.eup %3962 }
0x35bc   :  { %v2444_v55 = vadd.f32 1.0, %v3963_v9 }
0x35be   :  { %3964 = vrcp.f32 %v2444_v55 }
0x35cb   :  { %v3965_v58 = vpop.eup %3964 }
0x35cc   :  { %v2448_v37 = vmul.f32 %v3965_v58, %v4808_v28 }
0x362c   :  { %v2451_v59 = vpop.permute.xlu1 %2450 }
0x362d   :  { %v2453_v61 = vmul.f32 %v3965_v58, %v2451_v59 }
0x362f   :  { %2455 = vrot.lane.b32.xlu1 %v2453_v61, %s4041_s25 }
0x36a1   :  { %v2456_v62 = vpop.permute.xlu1 %2455 }
0x36a2   :  { %v4877_v0 = vadd.f32 %v2456_v62, %v2448_v37 }
0x36a4   :  { %3966 = vtanh.f32 %v4877_v0 }
0x36b1   :  { %v3967_v3 = vpop.eup %3966 }
0x36b2   :  { %2461 = vrot.lane.b32.xlu1 %v3967_v3, %s4040_s24 }
0x3724   :  { %v2462_v5 = vpop.permute.xlu1 %2461 }
0x3725   :  { %v4881_v7 = vmul.f32 %v3965_v58, %v2462_v5 }
0x3727   :  { %2466 = vrot.lane.b32.xlu1 %v4881_v7, %s4041_s25 }
0x372b   :  { %2470 = vrot.lane.b32.xlu1 %v4833_v22, %s4040_s24 }
0x3799   :  { %v2467_v6 = vpop.permute.xlu1 %2466 }
0x379d   :  { %v2471_v10 = vpop.permute.xlu1 %2470 }
0x379e   :  { %v2473_v28 = vsel %vm109_vm1, %v2467_v6, %v2471_v10 }
0x379f   :  { %v2474_v50 = vpack.c.bf16 %v2473_v28, %v2473_v28 }
0x37a1   :  { %3640 = vmatmul.mubr.msk.bf16.vlgmr.msra.gmra.mxu1 %vm316_vm2, %v2474_v50 }
0x37a2   :  { %3652 = vmatpush3.bf16.msra.mxu1 %v4892_v8  ;;  %3657 = vmatprep.mubr.msk.bf16.mxu1 %vm4038_vm0, %v4037_v1 }
0x37a3   :  { %3653 = vmatprep.subr.bf16.mxu1 %v4037_v1 }
0x37a6   :  { %3654 = vmatpush3.bf16.msra.mxu1 %v4901_v14 }
0x37a7   :  { %3655 = vmatprep.subr.bf16.mxu1 %v4037_v1 }
0x37aa   :  { %3656 = vmatpush3.bf16.msra.mxu1 %v4908_v15 }
0x37ab   :  { %3673 = vmatprep.subr.bf16.mxu1 %v4037_v1 }
0x3861   :  { %v2512_v11 = vpop.f32.mrf.mxu1 }
0x3862   :  { %v2513_v16 = vadd.f32 %v4603_v12, %v2512_v11 }
0x3863   :  { %v3641_v18 = vpop.f32.mrf.mxu1 }
0x3864   :  { %3968 = vtanh.f32 %v2513_v16  ;;  %v3159_v23 = vmul.f32 -1.442695, %v2513_v16 }
0x3865   :  { %v2515_v46 = vpop.f32.mrf.mxu1 }
0x3866   :  { %3970 = vpow2.f32 %v3159_v23 }
0x3867   :  { %v3642_v21 = vpop.f32.mrf.mxu1 }
0x3871   :  { %v3969_v22 = vpop.eup %3968 }
0x3872   :  { %2527 = vrot.lane.b32.xlu1 %v3969_v22, %s4040_s24 }
0x3873   :  { %v3971_v56 = vpop.eup %3970 }
0x3874   :  { %v2521_v63 = vadd.f32 1.0, %v3971_v56 }
0x3876   :  { %3972 = vrcp.f32 %v2521_v63 }
0x3883   :  { %v3973_v24 = vpop.eup %3972 }
0x3884   :  { %v2525_v26 = vmul.f32 %v3973_v24, %v4829_v20  ;;  %v4929_v20 = vld [vmem:[%s5099_s9 + $0x18] sm:$0xff]   ;;  %s3161_s9 = sld [smem:[#allocation2 + $0x5]] }
0x388a   :  { %p2599_p9 = scmp.ne.s32.totalorder %s3161_s9, 0 }
0x388c   :  { %s2600_s27 = scalar_select %p2599_p9, 1, 0 }
0x388e   :  { %v2601_v45 = vstv %s2600_s27 }
0x388f   :  { %vm2602_vm8 = vcmp.eq.s32.totalorder %v2601_v45, 1 }
0x38e4   :  { %v2528_v25 = vpop.permute.xlu1 %2527 }
0x38e5   :  { %v2530_v57 = vmul.f32 %v3973_v24, %v2528_v25 }
0x38e7   :  { %2532 = vrot.lane.b32.xlu0 %v2530_v57, %s4041_s25 }
0x3959   :  { %v2533_v12 = vpop.permute.xlu0 %2532 }
0x395a   :  { %v4916_v4 = vadd.f32 %v2533_v12, %v2525_v26  ;;  %v5003_v12 = vld [vmem:[%s5100_s10] ss:$0 sm:$0xff] }
0x395c   :  { %3974 = vtanh.f32 %v4916_v4 }
0x3969   :  { %v3975_v60 = vpop.eup %3974 }
0x396a   :  { %2538 = vrot.lane.b32.xlu1 %v3975_v60, %s4040_s24 }
0x39dc   :  { %v2539_v44 = vpop.permute.xlu1 %2538 }
0x39dd   :  { %v4920_v34 = vmul.f32 %v3973_v24, %v2539_v44 }
0x39df   :  { %v2542_v35 = vpack.c.bf16 %v4920_v34, %v4920_v34 }
0x39e1   :  { %2544 = vrot.lane.b32.xlu0 %v2542_v35, %s4041_s25 }
0x3a53   :  { %v2545_v36 = vpop.permute.xlu0 %2544 }
0x3a54   :  { %3648 = vmatmul.mubr.msk.bf16.vlgmr.msra.gmra.mxu0 %vm109_vm1, %v2545_v36 }
0x3a55   :  { %3662 = vmatpush3.bf16.msra.mxu0 %v4929_v20  ;;  %3669 = vmatprep.mubr.msk.bf16.mxu0 %vm4038_vm0, %v4037_v1 }
0x3a56   :  { %3663 = vmatprep.subr.bf16.mxu0 %v4037_v1 }
0x3a59   :  { %3664 = vmatpush3.bf16.msra.mxu0 %v4938_v27 }
0x3a5a   :  { %3665 = vmatprep.subr.bf16.mxu0 %v4037_v1 }
0x3a5d   :  { %3666 = vmatpush3.bf16.msra.mxu0 %v4945_v43 }
0x3a5e   :  { %3667 = vmatprep.subr.bf16.mxu0 %v4037_v1 }
0x3a61   :  { %3668 = vmatpush3.bf16.msra.mxu0 %v4952_v42 }
0x3a62   :  { %3681 = vmatprep.subr.bf16.mxu0 %v4037_v1 }
0x3b14   :  { %v2583_v30 = vpop.f32.mrf.mxu0 }
0x3b15   :  { %v4957_v41 = vadd.f32 %v4643_v38, %v2583_v30  ;;  %v4047_v38 = vmov 5  }
0x3b16   :  { %v3649_v19 = vpop.f32.mrf.mxu0  ;;  %3745 = vset.pattern.permute.xlu0 %v4047_v38 }
0x3b17   :  { %v2589_v31 = vsel %vm1454_vm4, %v4957_v41, -inf }
0x3b18   :  { %2590 = vmax.xlane.f32.xlu1 %v2589_v31  ;;  %v2586_v49 = vpop.f32.mrf.mxu0 }
0x3b1a   :  { %v3650_v33 = vpop.f32.mrf.mxu0 }
0x3b29   :  { %2610 = vrot.lane.b32.xlu1 %v4881_v7, %s4042_s29 }
0x3ba1   :  { %v2591_v51 = vpop.xlane.xlu1 %2590 }
0x3ba2   :  { %vm2592_vm7 = vcmp.eq.f32.partialorder %v4957_v41, %v2591_v51 }
0x3ba3   :  { %v2593_v52 = vsel %vm2592_vm7, %v4653_v47, 16.0 }
0x3ba4   :  { %v2594_v53 = vsel %vm1454_vm4, %v2593_v52, inf }
0x3ba5   :  { %2595 = vmin.xlane.f32.xlu0 %v2594_v53  ;;  %v2611_v61 = vpop.permute.xlu1 %2610 }
0x3c2e   :  { %v2596_v48 = vpop.xlane.xlu0 %2595 }
0x3c2f   :  { %v3719_v9 = vtrunc.f32 %v2596_v48 }
0x3c31   :  { %v3720_v55 = vcvt.f32.s32 %v3719_v9 }
0x3c33   :  { %v2603_v58 = vsel %vm2602_vm8, %v4861_v40, %v3720_v55 }
0x3c34   :  { %2605 = vperm.xlu0 %3745, %v2603_v58  }
0x3caf   :  { %v2606_v59 = vpop.permute.xlu0 %2605 }
0x3cb0   :  { %vm2607_vm9 = vcmp.eq.s32.totalorder %v2606_v59, %v4529_v17 }
0x3cb1   :  { %v3162_v37 = vsel %vm2607_vm9, 1.0, %v4037_v1 }
0x3cb2   :  { %v2613_v62 = vsel %vm1454_vm4, %v3162_v37, %v2611_v61  ;;  %v4048_v37 = vmov 6  }
0x3cb3   :  { %v2614_v3 = vpack.c.bf16 %v2613_v62, %v2613_v62  ;;  %3746 = vset.pattern.permute.xlu0 %v4048_v37 }
0x3cb5   :  { %3658 = vmatmul.mubr.msk.bf16.vlgmr.msra.gmra.mxu1 %vm1481_vm5, %v2614_v3 }
0x3cb6   :  { %3674 = vmatpush3.bf16.msra.mxu1 %v4614_v29  ;;  %3677 = vmatprep.mubr.msk.bf16.mxu1 %vm4038_vm0, %v4037_v1 }
0x3cb7   :  { %3675 = vmatprep.subr.bf16.mxu1 %v4037_v1 }
0x3cba   :  { %3676 = vmatpush3.bf16.msra.mxu1 %v4620_v32 }
0x3cbb   :  { %3691 = vmatprep.subr.bf16.mxu1 %v4037_v1 }
0x3d75   :  { %v2652_v5 = vpop.f32.mrf.mxu1 }
0x3d76   :  { %3976 = vtanh.f32 %v2652_v5  ;;  %v3164_v50 = vmul.f32 -1.442695, %v2652_v5 }
0x3d77   :  { %v3659_v7 = vpop.f32.mrf.mxu1 }
0x3d78   :  { %3978 = vpow2.f32 %v3164_v50 }
0x3d79   :  { %v2655_v6 = vpop.f32.mrf.mxu1 }
0x3d7b   :  { %v3660_v10 = vpop.f32.mrf.mxu1 }
0x3d83   :  { %v3977_v28 = vpop.eup %3976 }
0x3d84   :  { %2667 = vrot.lane.b32.xlu1 %v3977_v28, %s4040_s24 }
0x3d85   :  { %v3979_v29 = vpop.eup %3978 }
0x3d86   :  { %v2661_v11 = vadd.f32 1.0, %v3979_v29 }
0x3d88   :  { %3980 = vrcp.f32 %v2661_v11  ;;  %v4020_v11 = vld [vmem:[%s5101_s11 + $0x8] sm:$0xff]  }
0x3d95   :  { %v3981_v16 = vpop.eup %3980 }
0x3d96   :  { %v2665_v32 = vmul.f32 %v3981_v16, %v4877_v0 }
0x3df6   :  { %v2668_v18 = vpop.permute.xlu1 %2667 }
0x3df7   :  { %v2670_v46 = vmul.f32 %v3981_v16, %v2668_v18 }
0x3df9   :  { %2672 = vrot.lane.b32.xlu1 %v2670_v46, %s4041_s25 }
0x3e6b   :  { %v2673_v21 = vpop.permute.xlu1 %2672 }
0x3e6c   :  { %v4980_v22 = vadd.f32 %v2673_v21, %v2665_v32 }
0x3e6e   :  { %3982 = vtanh.f32 %v4980_v22 }
0x3e7b   :  { %v3983_v23 = vpop.eup %3982 }
0x3e7c   :  { %2678 = vrot.lane.b32.xlu1 %v3983_v23, %s4040_s24 }
0x3eee   :  { %v2679_v56 = vpop.permute.xlu1 %2678 }
0x3eef   :  { %v4984_v63 = vmul.f32 %v3981_v16, %v2679_v56 }
0x3ef1   :  { %2683 = vrot.lane.b32.xlu1 %v4984_v63, %s4041_s25 }
0x3ef5   :  { %2687 = vrot.lane.b32.xlu1 %v4920_v34, %s4040_s24 }
0x3f63   :  { %v2684_v24 = vpop.permute.xlu1 %2683 }
0x3f67   :  { %v2688_v25 = vpop.permute.xlu1 %2687 }
0x3f68   :  { %v2690_v0 = vsel %vm109_vm1, %v2684_v24, %v2688_v25 }
0x3f69   :  { %v2691_v57 = vpack.c.bf16 %v2690_v0, %v2690_v0 }
0x3f6b   :  { %3670 = vmatmul.mubr.msk.bf16.vlgmr.msra.gmra.mxu0 %vm316_vm2, %v2691_v57 }
0x3f6c   :  { %3682 = vmatpush3.bf16.msra.mxu0 %v4892_v8  ;;  %3687 = vmatprep.mubr.msk.bf16.mxu0 %vm4038_vm0, %v4037_v1 }
0x3f6d   :  { %3683 = vmatprep.subr.bf16.mxu0 %v4037_v1 }
0x3f70   :  { %3684 = vmatpush3.bf16.msra.mxu0 %v4901_v14 }
0x3f71   :  { %3685 = vmatprep.subr.bf16.mxu0 %v4037_v1 }
0x3f74   :  { %3686 = vmatpush3.bf16.msra.mxu0 %v4908_v15 }
0x3f75   :  { %3703 = vmatprep.subr.bf16.mxu0 %v4037_v1 }
0x402b   :  { %v2729_v26 = vpop.f32.mrf.mxu0 }
0x402c   :  { %v2730_v8 = vadd.f32 %v5003_v12, %v2729_v26 }
0x402d   :  { %v3671_v60 = vpop.f32.mrf.mxu0 }
0x402e   :  { %3984 = vtanh.f32 %v2730_v8  ;;  %v3166_v14 = vmul.f32 -1.442695, %v2730_v8 }
0x402f   :  { %v2732_v44 = vpop.f32.mrf.mxu0 }
0x4030   :  { %3986 = vpow2.f32 %v3166_v14 }
0x4031   :  { %v3672_v34 = vpop.f32.mrf.mxu0 }
0x403b   :  { %v3985_v35 = vpop.eup %3984 }
0x403c   :  { %2744 = vrot.lane.b32.xlu1 %v3985_v35, %s4040_s24 }
0x403d   :  { %v3987_v15 = vpop.eup %3986 }
0x403e   :  { %v2738_v36 = vadd.f32 1.0, %v3987_v15 }
0x4040   :  { %3988 = vrcp.f32 %v2738_v36 }
0x404d   :  { %v3989_v30 = vpop.eup %3988 }
0x404e   :  { %v2742_v49 = vmul.f32 %v3989_v30, %v4916_v4 }
0x40ae   :  { %v2745_v19 = vpop.permute.xlu1 %2744 }
0x40af   :  { %v2747_v31 = vmul.f32 %v3989_v30, %v2745_v19 }
0x40b1   :  { %2749 = vrot.lane.b32.xlu1 %v2747_v31, %s4041_s25 }
0x4123   :  { %v2750_v33 = vpop.permute.xlu1 %2749 }
0x4124   :  { %v5009_v51 = vadd.f32 %v2750_v33, %v2742_v49 }
0x4126   :  { %3990 = vtanh.f32 %v5009_v51 }
0x4133   :  { %v3991_v52 = vpop.eup %3990 }
0x4134   :  { %2755 = vrot.lane.b32.xlu0 %v3991_v52, %s4040_s24 }
0x41a6   :  { %v2756_v53 = vpop.permute.xlu0 %2755 }
0x41a7   :  { %v5013_v38 = vmul.f32 %v3989_v30, %v2756_v53 }
0x41a9   :  { %v2759_v45 = vpack.c.bf16 %v5013_v38, %v5013_v38 }
0x41ab   :  { %2761 = vrot.lane.b32.xlu1 %v2759_v45, %s4041_s25 }
0x421d   :  { %v2762_v48 = vpop.permute.xlu1 %2761 }
0x421e   :  { %3678 = vmatmul.mubr.msk.bf16.vlgmr.msra.gmra.mxu1 %vm109_vm1, %v2762_v48 }
0x421f   :  { %3692 = vmatpush3.bf16.msra.mxu1 %v4929_v20  ;;  %3699 = vmatprep.mubr.msk.bf16.mxu1 %vm4038_vm0, %v4037_v1  ;;  %v5031_v20 = vld [vmem:[%s5102_s12] ss:$0 sm:$0xff]  ;;  %s3168_s12 = sld [smem:[#allocation2 + $0x6]] }
0x4220   :  { %3693 = vmatprep.subr.bf16.mxu1 %v4037_v1 }
0x4223   :  { %3694 = vmatpush3.bf16.msra.mxu1 %v4938_v27 }
0x4224   :  { %3695 = vmatprep.subr.bf16.mxu1 %v4037_v1 }
0x4225   :  { %p2816_p10 = scmp.ne.s32.totalorder %s3168_s12, 0 }
0x4227   :  { %3696 = vmatpush3.bf16.msra.mxu1 %v4945_v43  ;;  %s2817_s7 = scalar_select %p2816_p10, 1, 0 }
0x4228   :  { %3697 = vmatprep.subr.bf16.mxu1 %v4037_v1 }
0x4229   :  { %v2818_v62 = vstv %s2817_s7 }
0x422a   :  { %vm2819_vm11 = vcmp.eq.s32.totalorder %v2818_v62, 1 }
0x422b   :  { %3698 = vmatpush3.bf16.msra.mxu1 %v4952_v42 }
0x42de   :  { %v2800_v4 = vpop.f32.mrf.mxu1 }
0x42df   :  { %v5034_v9 = vadd.f32 %v5031_v20, %v2800_v4 }
0x42e0   :  { %v3679_v55 = vpop.f32.mrf.mxu1 }
0x42e1   :  { %v2806_v27 = vsel %vm1454_vm4, %v5034_v9, -inf }
0x42e2   :  { %2807 = vmax.xlane.f32.xlu0 %v2806_v27  ;;  %v2803_v58 = vpop.f32.mrf.mxu1 }
0x42e4   :  { %v3680_v43 = vpop.f32.mrf.mxu1 }
0x436b   :  { %v2808_v59 = vpop.xlane.xlu0 %2807 }
0x436c   :  { %vm2809_vm10 = vcmp.eq.f32.partialorder %v5034_v9, %v2808_v59 }
0x436d   :  { %v2810_v42 = vsel %vm2809_vm10, %v4653_v47, 16.0 }
0x436e   :  { %v2811_v61 = vsel %vm1454_vm4, %v2810_v42, inf }
0x436f   :  { %2812 = vmin.xlane.f32.xlu1 %v2811_v61 }
0x4380   :  { %2827 = vrot.lane.b32.xlu1 %v4984_v63, %s4042_s29 }
0x43f8   :  { %v2813_v3 = vpop.xlane.xlu1 %2812 }
0x43f9   :  { %v3721_v5 = vtrunc.f32 %v2813_v3 }
0x43fb   :  { %v3722_v7 = vcvt.f32.s32 %v3721_v5 }
0x43fc   :  { %v2828_v10 = vpop.permute.xlu1 %2827 }
0x43fd   :  { %v2820_v6 = vsel %vm2819_vm11, %v4861_v40, %v3722_v7 }
0x43fe   :  { %2822 = vperm.xlu0 %3746, %v2820_v6  }
0x4479   :  { %v2823_v47 = vpop.permute.xlu0 %2822 }
0x447a   :  { %vm2824_vm12 = vcmp.eq.s32.totalorder %v2823_v47, %v4529_v17  ;;  %v4021_v17 = vld [vmem:[%s5101_s11] sm:$0xff]   ;;  %s4049_s11 = smov 16  }
0x447b   :  { %v3169_v28 = vsel %vm2824_vm12, 1.0, %v4037_v1 }
0x447c   :  { %v2830_v50 = vsel %vm1454_vm4, %v3169_v28, %v2828_v10 }
0x447d   :  { %v2831_v29 = vpack.c.bf16 %v2830_v50, %v2830_v50 }
0x447f   :  { %3688 = vmatmul.mubr.msk.bf16.vlgmr.msra.gmra.mxu0 %vm1481_vm5, %v2831_v29 }
0x4480   :  { %3704 = vmatpush3.bf16.msra.mxu0 %v4020_v11  ;;  %3707 = vmatprep.mubr.msk.bf16.mxu0 %vm4038_vm0, %v4037_v1  ;;  %vm3055_vm0 = vcmask 654336  }
0x4481   :  { %3705 = vmatprep.subr.bf16.mxu0 %v4037_v1 }
0x4484   :  { %3706 = vmatpush3.bf16.msra.mxu0 %v4021_v17 }
0x453f   :  { %v2869_v40 = vpop.f32.mrf.mxu0 }
0x4540   :  { %3992 = vtanh.f32 %v2869_v40  ;;  %v3171_v21 = vmul.f32 -1.442695, %v2869_v40 }
0x4541   :  { %v3689_v16 = vpop.f32.mrf.mxu0 }
0x4542   :  { %3994 = vpow2.f32 %v3171_v21 }
0x4543   :  { %v2872_v18 = vpop.f32.mrf.mxu0 }
0x4545   :  { %v3690_v46 = vpop.f32.mrf.mxu0 }
0x454d   :  { %v3993_v32 = vpop.eup %3992 }
0x454e   :  { %2884 = vrot.lane.b32.xlu1 %v3993_v32, %s4040_s24 }
0x454f   :  { %v3995_v23 = vpop.eup %3994 }
0x4550   :  { %v2878_v56 = vadd.f32 1.0, %v3995_v23 }
0x4552   :  { %3996 = vrcp.f32 %v2878_v56 }
0x455f   :  { %v3997_v63 = vpop.eup %3996 }
0x4560   :  { %v2882_v25 = vmul.f32 %v3997_v63, %v4980_v22 }
0x45c0   :  { %v2885_v1 = vpop.permute.xlu1 %2884 }
0x45c1   :  { %v2887_v24 = vmul.f32 %v3997_v63, %v2885_v1 }
0x45c3   :  { %2889 = vrot.lane.b32.xlu1 %v2887_v24, %s4041_s25 }
0x4635   :  { %v2890_v0 = vpop.permute.xlu1 %2889 }
0x4636   :  { %v2892_v57 = vadd.f32 %v2890_v0, %v2882_v25 }
0x4638   :  { %3998 = vtanh.f32 %v2892_v57 }
0x4645   :  { %v3999_v26 = vpop.eup %3998 }
0x4646   :  { %2895 = vrot.lane.b32.xlu1 %v3999_v26, %s4040_s24 }
0x46b8   :  { %v2896_v8 = vpop.permute.xlu1 %2895 }
0x46b9   :  { %v2898_v60 = vmul.f32 %v3997_v63, %v2896_v8 }
0x46bb   :  { %2900 = vrot.lane.b32.xlu1 %v2898_v60, %s4041_s25 }
0x46bf   :  { %2904 = vrot.lane.b32.xlu1 %v5013_v38, %s4040_s24 }
0x472d   :  { %v2901_v44 = vpop.permute.xlu1 %2900 }
0x4731   :  { %v2905_v34 = vpop.permute.xlu1 %2904 }
0x4732   :  { %v2907_v35 = vsel %vm109_vm1, %v2901_v44, %v2905_v34 }
0x4733   :  { %v2908_v14 = vpack.c.bf16 %v2907_v35, %v2907_v35 }
0x4735   :  { %3700 = vmatmul.mubr.msk.bf16.vlgmr.msra.gmra.mxu1 %vm316_vm2, %v2908_v14 }
0x47f5   :  { %v2946_v22 = vpop.f32.mrf.mxu1 }
0x47f6   :  { %v2947_v15 = vadd.f32 %v5003_v12, %v2946_v22 }
0x47f7   :  { %v3701_v36 = vpop.f32.mrf.mxu1 }
0x47f8   :  { %4000 = vtanh.f32 %v2947_v15  ;;  %v3173_v49 = vmul.f32 -1.442695, %v2947_v15 }
0x47f9   :  { %v2949_v30 = vpop.f32.mrf.mxu1 }
0x47fa   :  { %4002 = vpow2.f32 %v3173_v49 }
0x47fb   :  { %v3702_v19 = vpop.f32.mrf.mxu1 }
0x4805   :  { %v4001_v31 = vpop.eup %4000 }
0x4806   :  { %2961 = vrot.lane.b32.xlu0 %v4001_v31, %s4040_s24 }
0x4807   :  { %v4003_v33 = vpop.eup %4002 }
0x4808   :  { %v2955_v52 = vadd.f32 1.0, %v4003_v33 }
0x480a   :  { %4004 = vrcp.f32 %v2955_v52 }
0x4817   :  { %v4005_v53 = vpop.eup %4004 }
0x4818   :  { %v2959_v48 = vmul.f32 %v4005_v53, %v5009_v51 }
0x4878   :  { %v2962_v38 = vpop.permute.xlu0 %2961 }
0x4879   :  { %v2964_v45 = vmul.f32 %v4005_v53, %v2962_v38 }
0x487b   :  { %2966 = vrot.lane.b32.xlu1 %v2964_v45, %s4041_s25 }
0x48ed   :  { %v2967_v12 = vpop.permute.xlu1 %2966 }
0x48ee   :  { %v2969_v4 = vadd.f32 %v2967_v12, %v2959_v48 }
0x48f0   :  { %4006 = vtanh.f32 %v2969_v4 }
0x48fd   :  { %v4007_v55 = vpop.eup %4006 }
0x48fe   :  { %2972 = vrot.lane.b32.xlu0 %v4007_v55, %s4040_s24 }
0x4902   :  { %3024 = vrot.lane.b32.xlu0 %v4646_v39, %s4049_s11 }
0x4906   :  { %3032 = vrot.lane.b32.xlu0 %v4785_v13, %s4042_s29  ;;  %s4052_s29 = smov 112  }
0x490a   :  { %3040 = vrot.lane.b32.xlu0 %v4957_v41, %s4050_s1 }
0x4970   :  { %v2973_v27 = vpop.permute.xlu0 %2972 }
0x4971   :  { %v2975_v58 = vmul.f32 %v4005_v53, %v2973_v27 }
0x4973   :  { %v2976_v43 = vpack.c.bf16 %v2975_v58, %v2975_v58 }
0x4974   :  { %v3025_v61 = vpop.permute.xlu0 %3024 }
0x4975   :  { %2978 = vrot.lane.b32.xlu1 %v2976_v43, %s4041_s25  ;;  %v3051_v62 = vsel %vm1454_vm4, 0.0, %v3025_v61 }
0x4979   :  { %3028 = vrot.lane.b32.xlu1 %v4717_v54, %s4041_s25  ;;  %v3033_v54 = vpop.permute.xlu0 %3032 }
0x497d   :  { %3036 = vrot.lane.b32.xlu1 %v4850_v2, %s4040_s24  ;;  %v3041_v5 = vpop.permute.xlu0 %3040 }
0x4981   :  { %3044 = vrot.lane.b32.xlu1 %v5034_v9, %s4051_s17 }
0x49e7   :  { %v2979_v39 = vpop.permute.xlu1 %2978 }
0x49e8   :  { %3708 = vmatmul.mubr.msk.bf16.vlgmr.msra.gmra.mxu0 %vm109_vm1, %v2979_v39 }
0x49eb   :  { %v3029_v37 = vpop.permute.xlu1 %3028 }
0x49ec   :  { %v3052_v3 = vsel %vm109_vm1, %v3051_v62, %v3029_v37 }
0x49ed   :  { %v3053_v9 = vsel %vm1481_vm5, %v3052_v3, %v3033_v54 }
0x49ef   :  { %v3037_v2 = vpop.permute.xlu1 %3036 }
0x49f0   :  { %v3054_v7 = vsel %vm316_vm2, %v3053_v9, %v3037_v2 }
0x49f1   :  { %v3056_v6 = vsel %vm3055_vm0, %v3054_v7, %v3041_v5 }
0x4aa8   :  { %v3017_v13 = vpop.f32.mrf.mxu0 }
0x4aa9   :  { %v3018_v41 = vadd.f32 %v5031_v20, %v3017_v13  ;;  %v3045_v20 = vpop.permute.xlu1 %3044 }
0x4aaa   :  { %v3709_v51 = vpop.f32.mrf.mxu0  ;;  %v3058_v47 = vsel %vm3057_vm13, %v3056_v6, %v3045_v20 }
0x4aab   :  { %3048 = vrot.lane.b32.xlu0 %v3018_v41, %s4052_s29 }
0x4aac   :  { %v3020_v59 = vpop.f32.mrf.mxu0 }
0x4aae   :  { %v3710_v42 = vpop.f32.mrf.mxu0 }
0x4b1d   :  { %v3049_v10 = vpop.permute.xlu0 %3048 }
0x4b1e   :  { %v3060_v28 = vsel %vm3059_vm14, %v3058_v47, %v3049_v10 }
0x4b1f   :  { %3061 = vst [vmem:[%s5103_s13] sm:$0xff] %v3060_v28 }
0x4b20   :  { %3066 = vsyncpa [#allocation3], 1 }

</bundles_post_ra>
